<compile_context>
chip_gen: v7x
topology: tpu7x:2x2x1
jax: 0.10.0
libtpu: 0.0.40
codegen_flags: <defaults>
</compile_context>

<pallas_src>
import functools

import jax
import jax.numpy as jnp
from jax.experimental import pallas as pl
from jax.experimental.pallas import tpu as pltpu


NEG_SLOPE = 0.01  # F.leaky_relu default


def _lrelu(x):
    return jnp.where(x >= 0.0, x, NEG_SLOPE * x)


def _round_up(x, m):
    return (x + m - 1) // m * m


# ---------------------------------------------------------------------------
# Shared im2col helper (pool-window-grouped columns)
# ---------------------------------------------------------------------------

def _grouped_pool_cols(xpad, P, stride, ksize, dy, dx):
    """im2col rows for the conv outputs (2*p+dy, 2*q+dx), p,q in [0, P).

    xpad: (B, Hp, Wp, C) padded NHWC input.  Returns (B, P*P, ksize*ksize*C)
    with K ordered (kh, kw, cin) -- matches w.reshape(K, Cout).
    """
    B, _, _, C = xpad.shape
    step = 2 * stride
    pats = []
    for kh in range(ksize):
        for kw in range(ksize):
            r0 = stride * dy + kh
            c0 = stride * dx + kw
            pats.append(xpad[:, r0:r0 + step * (P - 1) + 1:step,
                             c0:c0 + step * (P - 1) + 1:step, :])
    col = jnp.stack(pats, axis=3)                         # (B, P, P, k*k, C)
    return col.reshape(B, P * P, ksize * ksize * C)


# ---------------------------------------------------------------------------
# Kernel 1: conv1 + leaky_relu + 2x2 max-pool (fused)
# ---------------------------------------------------------------------------

def _conv_pool_kernel(ca_ref, cb_ref, cc_ref, cd_ref, w_ref, b_ref, o_ref):
    """4 grouped im2col matmuls (one per 2x2 pool offset) -> max -> bias -> lrelu."""
    w = w_ref[...]                                        # (K, Cout) bf16

    def conv(ref):
        return jnp.dot(ref[...], w, preferred_element_type=jnp.float32)

    acc = jnp.maximum(jnp.maximum(conv(ca_ref), conv(cb_ref)),
                      jnp.maximum(conv(cc_ref), conv(cd_ref)))
    o_ref[...] = _lrelu(acc + b_ref[...])                 # f32 epilogue


def conv_lrelu_pool_grouped(x, w, b, stride, padding, *, tile_cap=2048,
                            min_tiles=2):
    """Fused conv(stride, padding) + leaky_relu + 2x2 max-pool (floor mode).

    x: (B, H, W, Cin) f32 NHWC.  Returns (B, P, P, Cout) f32, P = conv_out // 2.
    """
    B, H, W, Cin = x.shape
    KH, KW, _, Cout = w.shape
    Ho = (H + 2 * padding - KH) // stride + 1
    P = Ho // 2                                           # floor pooling
    K = KH * KW * Cin

    xpad = jnp.pad(x, ((0, 0), (padding, padding), (padding, padding), (0, 0)))
    cols = [_grouped_pool_cols(xpad, P, stride, KH, dy, dx)
            .reshape(B * P * P, K).astype(jnp.bfloat16)
            for dy in (0, 1) for dx in (0, 1)]

    M = B * P * P
    # Big tiles (overhead-bound otherwise), but >= 2 grid steps for v7x's two
    # TensorCores and a cap so per-tile VMEM stays bounded as batch grows.
    n_tiles = max(min_tiles, pl.cdiv(M, tile_cap))
    tm = _round_up(pl.cdiv(M, n_tiles), 8)
    n_tiles = pl.cdiv(M, tm)
    Mp = n_tiles * tm
    cols = [jnp.pad(c, ((0, Mp - M), (0, 0))) for c in cols]

    w2 = w.reshape(K, Cout).astype(jnp.bfloat16)
    b2 = b.reshape(1, Cout).astype(jnp.float32)

    col_spec = pl.BlockSpec((tm, K), lambda i: (i, 0))
    flops = 2 * 4 * Mp * K * Cout
    bytes_accessed = 4 * Mp * K * 2 + K * Cout * 2 + Cout * 4 + Mp * Cout * 4
    out = pl.pallas_call(
        _conv_pool_kernel,
        out_shape=jax.ShapeDtypeStruct((Mp, Cout), jnp.float32),
        grid=(n_tiles,),
        in_specs=[col_spec, col_spec, col_spec, col_spec,
                  pl.BlockSpec((K, Cout), lambda i: (0, 0)),
                  pl.BlockSpec((1, Cout), lambda i: (0, 0))],
        out_specs=pl.BlockSpec((tm, Cout), lambda i: (i, 0)),
        compiler_params=pltpu.CompilerParams(
            dimension_semantics=("parallel",)),
        cost_estimate=pl.CostEstimate(flops=flops, transcendentals=0,
                                      bytes_accessed=bytes_accessed),
    )(*cols, w2, b2)
    return out[:M].reshape(B, P, P, Cout)


# ---------------------------------------------------------------------------
# Kernel 2: conv2 + pool2 + conv3 + pool3 + conv4, batched & gridded over batch
# ---------------------------------------------------------------------------

def _tail_kernel(cols_ref, w2_ref, b2_ref, w3_ref, b3_ref, w4_ref, b4_ref,
                 o_ref, *, bb, G, Pb):
    c2out = w2_ref.shape[1]

    # ---- conv2 + pool2: ONE matmul over the 4 concatenated pool-offset
    #      groups, then max over the 4 aligned row-slabs (bias/lrelu commute).
    y2 = jnp.dot(cols_ref[0], w2_ref[...], preferred_element_type=jnp.float32)
    m2 = jnp.maximum(jnp.maximum(y2[0 * G:1 * G], y2[1 * G:2 * G]),
                     jnp.maximum(y2[2 * G:3 * G], y2[3 * G:4 * G]))
    h = _lrelu(m2 + b2_ref[...])               # (G, c2out); rows (spatial, b)

    # ---- conv3 (3x3, stride 2, pad 1 on 3x3 -> 2x2) as ONE im2col matmul:
    #      LHS rows = 4 pool positions x Pb (padded) batch rows,
    #      LHS cols = 9 taps x c2out channels (zeros for out-of-range taps).
    taps = [h[s * bb:(s + 1) * bb, :] for s in range(9)]   # contiguous slices
    zero_tap = jnp.zeros((bb, c2out), jnp.float32)
    zero_rows = (jnp.zeros((Pb - bb, 9 * c2out), jnp.float32)
                 if Pb > bb else None)
    pieces = []
    for (pi, pj) in ((0, 0), (0, 1), (1, 0), (1, 1)):      # 2x2 conv3 outputs
        chunks = []
        for kh in range(3):
            for kw in range(3):
                r, c = 2 * pi + kh - 1, 2 * pj + kw - 1    # padded-by-1 window
                chunks.append(taps[r * 3 + c]
                              if (0 <= r < 3 and 0 <= c < 3) else zero_tap)
        pieces.append(jnp.concatenate(chunks, axis=1))     # (bb, 9*c2out)
        if zero_rows is not None:
            pieces.append(zero_rows)                       # pad slab to Pb rows
    lhs3 = jnp.concatenate(pieces, axis=0).astype(jnp.bfloat16)  # (4*Pb, 9*c2out)

    y3 = jnp.dot(lhs3, w3_ref[...], preferred_element_type=jnp.float32)
    m3 = jnp.maximum(jnp.maximum(y3[0 * Pb:1 * Pb], y3[1 * Pb:2 * Pb]),
                     jnp.maximum(y3[2 * Pb:3 * Pb], y3[3 * Pb:4 * Pb]))
    pooled = _lrelu(m3 + b3_ref[...]).astype(jnp.bfloat16)       # (Pb, c3out)

    # ---- conv4 on a 1x1 input (pad=1): only the centre tap contributes.
    #      ONE matmul + ONE lane-dense (256-wide) store.
    y4 = jnp.dot(pooled, w4_ref[...], preferred_element_type=jnp.float32)
    o_ref[0] = _lrelu(y4 + b4_ref[...])[:bb]


def tail_forward(p1, params2, params3, params4):
    """p1: (B, 21, 21, 64) pooled conv1 output.  Returns (B, out_dim) f32."""
    B = p1.shape[0]
    # Fused tail is written for the spatial trajectory of 128x128 inputs:
    # 21 -> conv2(5,s4,p2) 6 -> pool 3 -> conv3(3,s2,p1) 2 -> pool 1 -> conv4 1.
    assert p1.shape[1] == 21 and p1.shape[2] == 21, "tail expects 21x21 input"
    (w2, b2), (w3, b3), (w4, b4) = params2, params3, params4
    c2in, c2out = w2.shape[2], w2.shape[3]
    c3out, c4out = w3.shape[3], w4.shape[3]
    K2 = 5 * 5 * c2in                                     # 1600

    # Batch blocking: >= 2 grid steps (v7x megacore) capped at 8 rows/block
    # (bounds per-step VMEM and keeps input double-buffering for large B).
    n_blocks = max(2, pl.cdiv(B, 8))
    bb = pl.cdiv(B, n_blocks)
    n_blocks = pl.cdiv(B, bb)
    Bp = n_blocks * bb
    if Bp > B:
        p1 = jnp.pad(p1, ((0, Bp - B), (0, 0), (0, 0), (0, 0)))

    G = _round_up(9 * bb, 8)      # conv2 rows per pool-offset group (padded)
    Pb = _round_up(bb, 8)         # conv3 rows per pool-position slab (padded)

    # conv2 grouped im2col, rows ordered (spatial, batch) within each block so
    # the in-kernel conv3 tap gather is a contiguous bb-row static slice.
    p1pad = jnp.pad(p1, ((0, 0), (2, 2), (2, 2), (0, 0)))
    groups = []
    for dy in (0, 1):
        for dx in (0, 1):
            g = _grouped_pool_cols(p1pad, 3, 4, 5, dy, dx)       # (Bp, 9, K2)
            g = g.reshape(n_blocks, bb, 9, K2)
            g = jnp.transpose(g, (0, 2, 1, 3)).reshape(n_blocks, 9 * bb, K2)
            g = jnp.pad(g, ((0, 0), (0, G - 9 * bb), (0, 0)))
            groups.append(g)
    cols = jnp.concatenate(groups, axis=1).astype(jnp.bfloat16)  # (nb, 4G, K2)

    w2m = w2.reshape(K2, c2out).astype(jnp.bfloat16)
    b2m = b2.reshape(1, c2out).astype(jnp.float32)
    w3m = w3.reshape(9 * w3.shape[2], c3out).astype(jnp.bfloat16)
    b3m = b3.reshape(1, c3out).astype(jnp.float32)
    w4c = w4[1, 1].astype(jnp.bfloat16)                   # (256, out) centre tap
    b4m = b4.reshape(1, c4out).astype(jnp.float32)

    kernel = functools.partial(_tail_kernel, bb=bb, G=G, Pb=Pb)
    flops = 2 * n_blocks * (4 * G * K2 * c2out
                            + 4 * Pb * (9 * c2out) * c3out
                            + Pb * c3out * c4out)
    bytes_accessed = (cols.size * 2 + w2m.size * 2 + w3m.size * 2
                      + w4c.size * 2
                      + (b2m.size + b3m.size + b4m.size) * 4
                      + Bp * c4out * 4)
    out = pl.pallas_call(
        kernel,
        out_shape=jax.ShapeDtypeStruct((n_blocks, bb, c4out), jnp.float32),
        grid=(n_blocks,),
        in_specs=[pl.BlockSpec((1, 4 * G, K2), lambda i: (i, 0, 0)),
                  pl.BlockSpec((K2, c2out), lambda i: (0, 0)),
                  pl.BlockSpec((1, c2out), lambda i: (0, 0)),
                  pl.BlockSpec((9 * c2out, c3out), lambda i: (0, 0)),
                  pl.BlockSpec((1, c3out), lambda i: (0, 0)),
                  pl.BlockSpec((c3out, c4out), lambda i: (0, 0)),
                  pl.BlockSpec((1, c4out), lambda i: (0, 0))],
        out_specs=pl.BlockSpec((1, bb, c4out), lambda i: (i, 0, 0)),
        compiler_params=pltpu.CompilerParams(
            dimension_semantics=("parallel",)),
        cost_estimate=pl.CostEstimate(flops=flops, transcendentals=0,
                                      bytes_accessed=bytes_accessed),
    )(cols, w2m, b2m, w3m, b3m, w4c, b4m)
    return out.reshape(Bp, c4out)[:B]


# ---------------------------------------------------------------------------
# Parameters (deterministic; matches the module's weights_init scheme)
# ---------------------------------------------------------------------------

def _kaiming_uniform(key, shape):
    # shape = (KH, KW, Cin, Cout); kaiming_uniform_(a=0, fan_in, leaky_relu)
    fan_in = shape[0] * shape[1] * shape[2]
    gain = 2.0 ** 0.5
    bound = gain * (3.0 / fan_in) ** 0.5
    return jax.random.uniform(key, shape, jnp.float32, -bound, bound)


def init_cnn_params(key, input_dim=1, out_dim=256):
    specs = [(5, input_dim, 64), (5, 64, 128), (3, 128, 256), (3, 256, out_dim)]
    params = []
    for (k, cin, cout) in specs:
        key, sub = jax.random.split(key)
        w = _kaiming_uniform(sub, (k, k, cin, cout))
        b = jnp.full((cout,), 0.01, jnp.float32)
        params.append((w, b))
    return params


def cnn_forward(params, x_nchw, out_dim=256):
    # NCHW (PyTorch convention) -> NHWC for the kernels
    x = jnp.transpose(x_nchw, (0, 2, 3, 1)).astype(jnp.float32)
    w1, b1 = params[0]
    p1 = conv_lrelu_pool_grouped(x, w1, b1, stride=3, padding=2)  # (B,21,21,64)
    out = tail_forward(p1, params[1], params[2], params[3])       # (B, out_dim)
    # final spatial is 1x1, so NCHW .view(-1, out_dim) == this (B, out_dim)
    return out.reshape(-1, out_dim)


if __name__ == "__main__":
    key = jax.random.PRNGKey(0)
    pkey, xkey = jax.random.split(key)
    params = init_cnn_params(pkey, input_dim=1, out_dim=256)
    # Smallest "natural" spatial size for which every max_pool2d(2,2) stays
    # valid and the output reaches 1x1: 128 -> 43 -> 21 -> 6 -> 3 -> 2 -> 1 -> 1.
    x = jax.random.normal(xkey, (2, 1, 128, 128), jnp.float32)  # NCHW
    out = jax.jit(cnn_forward)(params, x)
    jax.block_until_ready(out)
    assert out.shape == (2, 256) and out.dtype == jnp.float32
    print("KERNEL_OK")
</pallas_src>

<mosaic_0001>
module attributes {stable_mosaic.version = 11 : i64} {
  func.func @_conv_pool_kernel(%arg0: i32, %arg1: memref<448x25xbf16, #tpu.memory_space<vmem>>, %arg2: memref<448x25xbf16, #tpu.memory_space<vmem>>, %arg3: memref<448x25xbf16, #tpu.memory_space<vmem>>, %arg4: memref<448x25xbf16, #tpu.memory_space<vmem>>, %arg5: memref<25x64xbf16, #tpu.memory_space<vmem>>, %arg6: memref<1x64xf32, #tpu.memory_space<vmem>>, %arg7: memref<448x64xf32, #tpu.memory_space<vmem>>) attributes {dimension_semantics = [#tpu.dimension_semantics<parallel>], iteration_bounds = array<i64: 2>, scalar_prefetch = 0 : i64, scratch_operands = 0 : i64, tpu.core_type = #tpu.core_type<tc>, window_params = [{transform_indices = @transform_0, window_bounds = array<i64: 448, 25>}, {transform_indices = @transform_1, window_bounds = array<i64: 448, 25>}, {transform_indices = @transform_2, window_bounds = array<i64: 448, 25>}, {transform_indices = @transform_3, window_bounds = array<i64: 448, 25>}, {pipeline_mode = #tpu.pipeline_mode<synchronous>, transform_indices = @transform_4, window_bounds = array<i64: 25, 64>}, {pipeline_mode = #tpu.pipeline_mode<synchronous>, transform_indices = @transform_5, window_bounds = array<i64: 1, 64>}, {transform_indices = @transform_6, window_bounds = array<i64: 448, 64>}]} {
    %c0 = arith.constant 0 : index
    %c0_0 = arith.constant 0 : index
    %0 = vector.load %arg5[%c0, %c0_0] : memref<25x64xbf16, #tpu.memory_space<vmem>>, vector<25x64xbf16>
    %c0_1 = arith.constant 0 : index
    %c0_2 = arith.constant 0 : index
    %1 = vector.load %arg1[%c0_1, %c0_2] : memref<448x25xbf16, #tpu.memory_space<vmem>>, vector<448x25xbf16>
    %cst = arith.constant dense<0.000000e+00> : vector<448x64xf32>
    %2 = tpu.matmul %1, %0, %cst {dimension_numbers = #tpu.dot_dimension_numbers<[1], [0], [0], [1], [0, 0, 1, 1], [], []>} : vector<448x25xbf16>, vector<25x64xbf16>, vector<448x64xf32> -> vector<448x64xf32>
    %c0_3 = arith.constant 0 : index
    %c0_4 = arith.constant 0 : index
    %3 = vector.load %arg2[%c0_3, %c0_4] : memref<448x25xbf16, #tpu.memory_space<vmem>>, vector<448x25xbf16>
    %cst_5 = arith.constant dense<0.000000e+00> : vector<448x64xf32>
    %4 = tpu.matmul %3, %0, %cst_5 {dimension_numbers = #tpu.dot_dimension_numbers<[1], [0], [0], [1], [0, 0, 1, 1], [], []>} : vector<448x25xbf16>, vector<25x64xbf16>, vector<448x64xf32> -> vector<448x64xf32>
    %5 = arith.maximumf %2, %4 : vector<448x64xf32>
    %c0_6 = arith.constant 0 : index
    %c0_7 = arith.constant 0 : index
    %6 = vector.load %arg3[%c0_6, %c0_7] : memref<448x25xbf16, #tpu.memory_space<vmem>>, vector<448x25xbf16>
    %cst_8 = arith.constant dense<0.000000e+00> : vector<448x64xf32>
    %7 = tpu.matmul %6, %0, %cst_8 {dimension_numbers = #tpu.dot_dimension_numbers<[1], [0], [0], [1], [0, 0, 1, 1], [], []>} : vector<448x25xbf16>, vector<25x64xbf16>, vector<448x64xf32> -> vector<448x64xf32>
    %c0_9 = arith.constant 0 : index
    %c0_10 = arith.constant 0 : index
    %8 = vector.load %arg4[%c0_9, %c0_10] : memref<448x25xbf16, #tpu.memory_space<vmem>>, vector<448x25xbf16>
    %cst_11 = arith.constant dense<0.000000e+00> : vector<448x64xf32>
    %9 = tpu.matmul %8, %0, %cst_11 {dimension_numbers = #tpu.dot_dimension_numbers<[1], [0], [0], [1], [0, 0, 1, 1], [], []>} : vector<448x25xbf16>, vector<25x64xbf16>, vector<448x64xf32> -> vector<448x64xf32>
    %10 = arith.maximumf %7, %9 : vector<448x64xf32>
    %11 = arith.maximumf %5, %10 : vector<448x64xf32>
    %c0_12 = arith.constant 0 : index
    %c0_13 = arith.constant 0 : index
    %12 = vector.load %arg6[%c0_12, %c0_13] : memref<1x64xf32, #tpu.memory_space<vmem>>, vector<1x64xf32>
    %13 = vector.broadcast %12 : vector<1x64xf32> to vector<448x64xf32>
    %14 = arith.addf %11, %13 : vector<448x64xf32>
    %cst_14 = arith.constant 0.000000e+00 : f32
    %15 = vector.broadcast %cst_14 : f32 to vector<448x64xf32>
    %16 = arith.cmpf oge, %14, %15 : vector<448x64xf32>
    %cst_15 = arith.constant 0.00999999977 : f32
    %17 = vector.broadcast %cst_15 : f32 to vector<448x64xf32>
    %18 = arith.mulf %17, %14 : vector<448x64xf32>
    %19 = arith.select %16, %14, %18 : vector<448x64xi1>, vector<448x64xf32>
    %c0_16 = arith.constant 0 : index
    %c0_17 = arith.constant 0 : index
    %20 = vector.load %arg7[%c0_16, %c0_17] : memref<448x64xf32, #tpu.memory_space<vmem>>, vector<448x64xf32>
    tpu.vector_store %arg7[%c0_16, %c0_17], %19 {strides = array<i32>} : memref<448x64xf32, #tpu.memory_space<vmem>>, vector<448x64xf32>,
    return
  }
  func.func @transform_0(%arg0: i32) -> (i32, i32) {
    %c0_i32 = arith.constant 0 : i32
    %c0_i32_0 = arith.constant 0 : i32
    return %arg0, %c0_i32 : i32, i32
  }
  func.func @transform_1(%arg0: i32) -> (i32, i32) {
    %c0_i32 = arith.constant 0 : i32
    %c0_i32_0 = arith.constant 0 : i32
    return %arg0, %c0_i32 : i32, i32
  }
  func.func @transform_2(%arg0: i32) -> (i32, i32) {
    %c0_i32 = arith.constant 0 : i32
    %c0_i32_0 = arith.constant 0 : i32
    return %arg0, %c0_i32 : i32, i32
  }
  func.func @transform_3(%arg0: i32) -> (i32, i32) {
    %c0_i32 = arith.constant 0 : i32
    %c0_i32_0 = arith.constant 0 : i32
    return %arg0, %c0_i32 : i32, i32
  }
  func.func @transform_4(%arg0: i32) -> (i32, i32) {
    %c0_i32 = arith.constant 0 : i32
    %c0_i32_0 = arith.constant 0 : i32
    %c0_i32_1 = arith.constant 0 : i32
    return %c0_i32, %c0_i32_0 : i32, i32
  }
  func.func @transform_5(%arg0: i32) -> (i32, i32) {
    %c0_i32 = arith.constant 0 : i32
    %c0_i32_0 = arith.constant 0 : i32
    %c0_i32_1 = arith.constant 0 : i32
    return %c0_i32, %c0_i32_0 : i32, i32
  }
  func.func @transform_6(%arg0: i32) -> (i32, i32) {
    %c0_i32 = arith.constant 0 : i32
    %c0_i32_0 = arith.constant 0 : i32
    return %arg0, %c0_i32 : i32, i32
  }
}

module attributes {stable_mosaic.version = 11 : i64} {
  func.func @_tail_kernel(%arg0: i32, %arg1: memref<1x64x1600xbf16, #tpu.memory_space<vmem>>, %arg2: memref<1600x128xbf16, #tpu.memory_space<vmem>>, %arg3: memref<1x128xf32, #tpu.memory_space<vmem>>, %arg4: memref<1152x256xbf16, #tpu.memory_space<vmem>>, %arg5: memref<1x256xf32, #tpu.memory_space<vmem>>, %arg6: memref<256x256xbf16, #tpu.memory_space<vmem>>, %arg7: memref<1x256xf32, #tpu.memory_space<vmem>>, %arg8: memref<1x1x256xf32, #tpu.memory_space<vmem>>) attributes {dimension_semantics = [#tpu.dimension_semantics<parallel>], iteration_bounds = array<i64: 2>, scalar_prefetch = 0 : i64, scratch_operands = 0 : i64, tpu.core_type = #tpu.core_type<tc>, window_params = [{transform_indices = @transform_0, window_bounds = array<i64: 1, 64, 1600>}, {pipeline_mode = #tpu.pipeline_mode<synchronous>, transform_indices = @transform_1, window_bounds = array<i64: 1600, 128>}, {pipeline_mode = #tpu.pipeline_mode<synchronous>, transform_indices = @transform_2, window_bounds = array<i64: 1, 128>}, {pipeline_mode = #tpu.pipeline_mode<synchronous>, transform_indices = @transform_3, window_bounds = array<i64: 1152, 256>}, {pipeline_mode = #tpu.pipeline_mode<synchronous>, transform_indices = @transform_4, window_bounds = array<i64: 1, 256>}, {pipeline_mode = #tpu.pipeline_mode<synchronous>, transform_indices = @transform_5, window_bounds = array<i64: 256, 256>}, {pipeline_mode = #tpu.pipeline_mode<synchronous>, transform_indices = @transform_6, window_bounds = array<i64: 1, 256>}, {transform_indices = @transform_7, window_bounds = array<i64: 1, 1, 256>}]} {
    %c0 = arith.constant 0 : index
    %c0_0 = arith.constant 0 : index
    %c0_1 = arith.constant 0 : index
    %0 = vector.load %arg1[%c0, %c0_0, %c0_1] : memref<1x64x1600xbf16, #tpu.memory_space<vmem>>, vector<1x64x1600xbf16>
    %1 = vector.shape_cast %0 : vector<1x64x1600xbf16> to vector<64x1600xbf16>
    %c0_2 = arith.constant 0 : index
    %c0_3 = arith.constant 0 : index
    %2 = vector.load %arg2[%c0_2, %c0_3] : memref<1600x128xbf16, #tpu.memory_space<vmem>>, vector<1600x128xbf16>
    %cst = arith.constant dense<0.000000e+00> : vector<64x128xf32>
    %3 = tpu.matmul %1, %2, %cst {dimension_numbers = #tpu.dot_dimension_numbers<[1], [0], [0], [1], [0, 0, 1, 1], [], []>} : vector<64x1600xbf16>, vector<1600x128xbf16>, vector<64x128xf32> -> vector<64x128xf32>
    %4 = vector.extract_strided_slice %3 {offsets = [0, 0], sizes = [16, 128], strides = [1, 1]} : vector<64x128xf32> to vector<16x128xf32>
    %5 = vector.extract_strided_slice %3 {offsets = [16, 0], sizes = [16, 128], strides = [1, 1]} : vector<64x128xf32> to vector<16x128xf32>
    %6 = arith.maximumf %4, %5 : vector<16x128xf32>
    %7 = vector.extract_strided_slice %3 {offsets = [32, 0], sizes = [16, 128], strides = [1, 1]} : vector<64x128xf32> to vector<16x128xf32>
    %8 = vector.extract_strided_slice %3 {offsets = [48, 0], sizes = [16, 128], strides = [1, 1]} : vector<64x128xf32> to vector<16x128xf32>
    %9 = arith.maximumf %7, %8 : vector<16x128xf32>
    %10 = arith.maximumf %6, %9 : vector<16x128xf32>
    %c0_4 = arith.constant 0 : index
    %c0_5 = arith.constant 0 : index
    %11 = vector.load %arg3[%c0_4, %c0_5] : memref<1x128xf32, #tpu.memory_space<vmem>>, vector<1x128xf32>
    %12 = vector.broadcast %11 : vector<1x128xf32> to vector<16x128xf32>
    %13 = arith.addf %10, %12 : vector<16x128xf32>
    %cst_6 = arith.constant 0.000000e+00 : f32
    %14 = vector.broadcast %cst_6 : f32 to vector<16x128xf32>
    %15 = arith.cmpf oge, %13, %14 : vector<16x128xf32>
    %cst_7 = arith.constant 0.00999999977 : f32
    %16 = vector.broadcast %cst_7 : f32 to vector<16x128xf32>
    %17 = arith.mulf %16, %13 : vector<16x128xf32>
    %18 = arith.select %15, %13, %17 : vector<16x128xi1>, vector<16x128xf32>
    %19 = vector.extract_strided_slice %18 {offsets = [0, 0], sizes = [1, 128], strides = [1, 1]} : vector<16x128xf32> to vector<1x128xf32>
    %20 = vector.extract_strided_slice %18 {offsets = [1, 0], sizes = [1, 128], strides = [1, 1]} : vector<16x128xf32> to vector<1x128xf32>
    %21 = vector.extract_strided_slice %18 {offsets = [2, 0], sizes = [1, 128], strides = [1, 1]} : vector<16x128xf32> to vector<1x128xf32>
    %22 = vector.extract_strided_slice %18 {offsets = [3, 0], sizes = [1, 128], strides = [1, 1]} : vector<16x128xf32> to vector<1x128xf32>
    %23 = vector.extract_strided_slice %18 {offsets = [4, 0], sizes = [1, 128], strides = [1, 1]} : vector<16x128xf32> to vector<1x128xf32>
    %24 = vector.extract_strided_slice %18 {offsets = [5, 0], sizes = [1, 128], strides = [1, 1]} : vector<16x128xf32> to vector<1x128xf32>
    %25 = vector.extract_strided_slice %18 {offsets = [6, 0], sizes = [1, 128], strides = [1, 1]} : vector<16x128xf32> to vector<1x128xf32>
    %26 = vector.extract_strided_slice %18 {offsets = [7, 0], sizes = [1, 128], strides = [1, 1]} : vector<16x128xf32> to vector<1x128xf32>
    %27 = vector.extract_strided_slice %18 {offsets = [8, 0], sizes = [1, 128], strides = [1, 1]} : vector<16x128xf32> to vector<1x128xf32>
    %cst_8 = arith.constant 0.000000e+00 : f32
    %28 = vector.broadcast %cst_8 : f32 to vector<1x128xf32>
    %cst_9 = arith.constant 0.000000e+00 : f32
    %29 = vector.broadcast %cst_9 : f32 to vector<7x1152xf32>
    %30 = tpu.concatenate %28, %28, %28, %28, %19, %20, %28, %22, %23 in 1 : vector<1x128xf32>, vector<1x128xf32>, vector<1x128xf32>, vector<1x128xf32>, vector<1x128xf32>, vector<1x128xf32>, vector<1x128xf32>, vector<1x128xf32>, vector<1x128xf32> -> vector<1x1152xf32>
    %31 = tpu.concatenate %28, %28, %28, %20, %21, %28, %23, %24, %28 in 1 : vector<1x128xf32>, vector<1x128xf32>, vector<1x128xf32>, vector<1x128xf32>, vector<1x128xf32>, vector<1x128xf32>, vector<1x128xf32>, vector<1x128xf32>, vector<1x128xf32> -> vector<1x1152xf32>
    %32 = tpu.concatenate %28, %22, %23, %28, %25, %26, %28, %28, %28 in 1 : vector<1x128xf32>, vector<1x128xf32>, vector<1x128xf32>, vector<1x128xf32>, vector<1x128xf32>, vector<1x128xf32>, vector<1x128xf32>, vector<1x128xf32>, vector<1x128xf32> -> vector<1x1152xf32>
    %33 = tpu.concatenate %23, %24, %28, %26, %27, %28, %28, %28, %28 in 1 : vector<1x128xf32>, vector<1x128xf32>, vector<1x128xf32>, vector<1x128xf32>, vector<1x128xf32>, vector<1x128xf32>, vector<1x128xf32>, vector<1x128xf32>, vector<1x128xf32> -> vector<1x1152xf32>
    %34 = tpu.concatenate %30, %29, %31, %29, %32, %29, %33, %29 in 0 : vector<1x1152xf32>, vector<7x1152xf32>, vector<1x1152xf32>, vector<7x1152xf32>, vector<1x1152xf32>, vector<7x1152xf32>, vector<1x1152xf32>, vector<7x1152xf32> -> vector<32x1152xf32>
    %35 = arith.truncf %34 : vector<32x1152xf32> to vector<32x1152xbf16>
    %c0_10 = arith.constant 0 : index
    %c0_11 = arith.constant 0 : index
    %36 = vector.load %arg4[%c0_10, %c0_11] : memref<1152x256xbf16, #tpu.memory_space<vmem>>, vector<1152x256xbf16>
    %cst_12 = arith.constant dense<0.000000e+00> : vector<32x256xf32>
    %37 = tpu.matmul %35, %36, %cst_12 {dimension_numbers = #tpu.dot_dimension_numbers<[1], [0], [0], [1], [0, 0, 1, 1], [], []>} : vector<32x1152xbf16>, vector<1152x256xbf16>, vector<32x256xf32> -> vector<32x256xf32>
    %38 = vector.extract_strided_slice %37 {offsets = [0, 0], sizes = [8, 256], strides = [1, 1]} : vector<32x256xf32> to vector<8x256xf32>
    %39 = vector.extract_strided_slice %37 {offsets = [8, 0], sizes = [8, 256], strides = [1, 1]} : vector<32x256xf32> to vector<8x256xf32>
    %40 = arith.maximumf %38, %39 : vector<8x256xf32>
    %41 = vector.extract_strided_slice %37 {offsets = [16, 0], sizes = [8, 256], strides = [1, 1]} : vector<32x256xf32> to vector<8x256xf32>
    %42 = vector.extract_strided_slice %37 {offsets = [24, 0], sizes = [8, 256], strides = [1, 1]} : vector<32x256xf32> to vector<8x256xf32>
    %43 = arith.maximumf %41, %42 : vector<8x256xf32>
    %44 = arith.maximumf %40, %43 : vector<8x256xf32>
    %c0_13 = arith.constant 0 : index
    %c0_14 = arith.constant 0 : index
    %45 = vector.load %arg5[%c0_13, %c0_14] : memref<1x256xf32, #tpu.memory_space<vmem>>, vector<1x256xf32>
    %46 = vector.broadcast %45 : vector<1x256xf32> to vector<8x256xf32>
    %47 = arith.addf %44, %46 : vector<8x256xf32>
    %cst_15 = arith.constant 0.000000e+00 : f32
    %48 = vector.broadcast %cst_15 : f32 to vector<8x256xf32>
    %49 = arith.cmpf oge, %47, %48 : vector<8x256xf32>
    %cst_16 = arith.constant 0.00999999977 : f32
    %50 = vector.broadcast %cst_16 : f32 to vector<8x256xf32>
    %51 = arith.mulf %50, %47 : vector<8x256xf32>
    %52 = arith.select %49, %47, %51 : vector<8x256xi1>, vector<8x256xf32>
    %53 = arith.truncf %52 : vector<8x256xf32> to vector<8x256xbf16>
    %c0_17 = arith.constant 0 : index
    %c0_18 = arith.constant 0 : index
    %54 = vector.load %arg6[%c0_17, %c0_18] : memref<256x256xbf16, #tpu.memory_space<vmem>>, vector<256x256xbf16>
    %cst_19 = arith.constant dense<0.000000e+00> : vector<8x256xf32>
    %55 = tpu.matmul %53, %54, %cst_19 {dimension_numbers = #tpu.dot_dimension_numbers<[1], [0], [0], [1], [0, 0, 1, 1], [], []>} : vector<8x256xbf16>, vector<256x256xbf16>, vector<8x256xf32> -> vector<8x256xf32>
    %c0_20 = arith.constant 0 : index
    %c0_21 = arith.constant 0 : index
    %56 = vector.load %arg7[%c0_20, %c0_21] : memref<1x256xf32, #tpu.memory_space<vmem>>, vector<1x256xf32>
    %57 = vector.broadcast %56 : vector<1x256xf32> to vector<8x256xf32>
    %58 = arith.addf %55, %57 : vector<8x256xf32>
    %cst_22 = arith.constant 0.000000e+00 : f32
    %59 = vector.broadcast %cst_22 : f32 to vector<8x256xf32>
    %60 = arith.cmpf oge, %58, %59 : vector<8x256xf32>
    %cst_23 = arith.constant 0.00999999977 : f32
    %61 = vector.broadcast %cst_23 : f32 to vector<8x256xf32>
    %62 = arith.mulf %61, %58 : vector<8x256xf32>
    %63 = arith.select %60, %58, %62 : vector<8x256xi1>, vector<8x256xf32>
    %64 = vector.extract_strided_slice %63 {offsets = [0, 0], sizes = [1, 256], strides = [1, 1]} : vector<8x256xf32> to vector<1x256xf32>
    %c0_24 = arith.constant 0 : index
    %c0_25 = arith.constant 0 : index
    %c0_26 = arith.constant 0 : index
    %65 = vector.load %arg8[%c0_24, %c0_25, %c0_26] : memref<1x1x256xf32, #tpu.memory_space<vmem>>, vector<1x1x256xf32>
    %66 = vector.shape_cast %65 : vector<1x1x256xf32> to vector<1x256xf32>
    %67 = vector.shape_cast %64 : vector<1x256xf32> to vector<1x1x256xf32>
    tpu.vector_store %arg8[%c0_24, %c0_25, %c0_26], %67 {strides = array<i32>} : memref<1x1x256xf32, #tpu.memory_space<vmem>>, vector<1x1x256xf32>,
    return
  }
  func.func @transform_0(%arg0: i32) -> (i32, i32, i32) {
    %c0_i32 = arith.constant 0 : i32
    %c0_i32_0 = arith.constant 0 : i32
    %c0_i32_1 = arith.constant 0 : i32
    return %arg0, %c0_i32, %c0_i32_0 : i32, i32, i32
  }
  func.func @transform_1(%arg0: i32) -> (i32, i32) {
    %c0_i32 = arith.constant 0 : i32
    %c0_i32_0 = arith.constant 0 : i32
    %c0_i32_1 = arith.constant 0 : i32
    return %c0_i32, %c0_i32_0 : i32, i32
  }
  func.func @transform_2(%arg0: i32) -> (i32, i32) {
    %c0_i32 = arith.constant 0 : i32
    %c0_i32_0 = arith.constant 0 : i32
    %c0_i32_1 = arith.constant 0 : i32
    return %c0_i32, %c0_i32_0 : i32, i32
  }
  func.func @transform_3(%arg0: i32) -> (i32, i32) {
    %c0_i32 = arith.constant 0 : i32
    %c0_i32_0 = arith.constant 0 : i32
    %c0_i32_1 = arith.constant 0 : i32
    return %c0_i32, %c0_i32_0 : i32, i32
  }
  func.func @transform_4(%arg0: i32) -> (i32, i32) {
    %c0_i32 = arith.constant 0 : i32
    %c0_i32_0 = arith.constant 0 : i32
    %c0_i32_1 = arith.constant 0 : i32
    return %c0_i32, %c0_i32_0 : i32, i32
  }
  func.func @transform_5(%arg0: i32) -> (i32, i32) {
    %c0_i32 = arith.constant 0 : i32
    %c0_i32_0 = arith.constant 0 : i32
    %c0_i32_1 = arith.constant 0 : i32
    return %c0_i32, %c0_i32_0 : i32, i32
  }
  func.func @transform_6(%arg0: i32) -> (i32, i32) {
    %c0_i32 = arith.constant 0 : i32
    %c0_i32_0 = arith.constant 0 : i32
    %c0_i32_1 = arith.constant 0 : i32
    return %c0_i32, %c0_i32_0 : i32, i32
  }
  func.func @transform_7(%arg0: i32) -> (i32, i32, i32) {
    %c0_i32 = arith.constant 0 : i32
    %c0_i32_0 = arith.constant 0 : i32
    %c0_i32_1 = arith.constant 0 : i32
    return %arg0, %c0_i32, %c0_i32_0 : i32, i32, i32
  }
}

</mosaic_0001>

<bundles_post_ra>
// kernel: cnn_forward.2
= control target key start
LH: loop header
LB: loop body
LE: loop exit
PB: predicated region body
PF: predicated region fallthrough
CT: control target
= control target key end

     0   :  { %s3807_s21 = smov 0   ;;  %s4760_s0 = inlined_call_operand.vmem [shape: bf16[896,25], index: 0, kind: input, shape index: {}]   ;;  %s4761_s1 = inlined_call_operand.vmem [shape: bf16[896,25], index: 1, kind: input, shape index: {}]   ;;  %s4762_s2 = inlined_call_operand.vmem [shape: bf16[896,25], index: 2, kind: input, shape index: {}]   ;;  %s4763_s3 = inlined_call_operand.vmem [shape: bf16[896,25], index: 3, kind: input, shape index: {}]   ;;  %s4764_s4 = inlined_call_operand.vmem [shape: bf16[25,64], index: 4, kind: input, shape index: {}]   ;;  %s4765_s5 = inlined_call_operand.vmem [shape: f32[1,64], index: 5, kind: input, shape index: {}]   ;;  %s4766_s6 = inlined_call_operand.vmem [shape: f32[896,64], index: 6, kind: output, shape index: {}]  }
   0x1 LB: > { %s3041_s22 = sadd.s32 4294967295, %s3769_s21   ;;  %p3045_p0 = scmp.ge.s32.totalorder %s3769_s21, 1  ;;  %s3769_s21 = sphi %s3807_s21, %s16_s21  }
   0x2   : > { %p246_p1 = scmp.lt.s32.totalorder %s3769_s21, 3 }
   0x4   : > { %p247_p2 = pnand %p3045_p0, %p246_p1 }
   0x6   : > { %250 = sbr.rel (%p247_p2) target bundleno = 465 (0x1d1), region = 44 }
   0xd   : > { %v3649_v0 = vld [vmem:[%s4764_s4] sm:$0xff]   ;;  %vm618_vm0 = vcmask 1043456   ;;  %v3650_v1 = vld [vmem:[%s4764_s4 + $0x8] sm:$0x1f]   ;;  %vm619_vm1 = vcmask 1044480   ;;  %s291_s27 = smul.u32 56, %s3041_s22 }
   0xe   : > { %3400 = vmatprep.subr.bf16.mxu0 %v3649_v0  ;;  %3460 = vmatprep.subr.bf16.mxu1 %v3649_v0  ;;  %v3771_v2 = vmov 65535   ;;  %vm533_vm2 = vcmask 203776   ;;  %vm2892_vm4 = vcmask 523264  }
   0xf   : > { %3401 = vmatpush3.bf16.msra.mxu0 %v3649_v0  ;;  %3461 = vmatpush3.bf16.msra.mxu1 %v3649_v0  ;;  %v620_v3 = vsel %vm618_vm0, 4294967295, %v3771_v2  ;;  %p292_p3 = scmp.lt.s32.totalorder %s291_s27, 111 }
  0x10   : > { %v621_v4 = vsel %vm619_vm1, %v620_v3, 0 }
  0x11   : > { %v623_v5 = vand.u32 %v3650_v1, %v621_v4  ;;  %s5019_s27 = smov (!%p292_p3, %s291_s27), 111 }
  0x12   : > { %s3824_s28 = sshll.u32 %s5019_s27, 2  ;;  %s3050_s19 = sshll.u32 %s5019_s27, 3 }
  0x13   : > { %3402 = vmatprep.subr.bf16.mxu0 %v623_v5  ;;  %3462 = vmatprep.subr.bf16.mxu1 %v623_v5  ;;  %s3830_s7 = scalar_lea.vmem %s4760_s0, %s3824_s28  ;;  %s3837_s10 = scalar_lea.vmem %s4761_s1, %s3824_s28 }
  0x14   : > { %3403 = vmatpush3.bf16.msra.mxu0 %v623_v5  ;;  %3463 = vmatpush3.bf16.msra.mxu1 %v623_v5  ;;  %v3651_v6 = vld [vmem:[%s3830_s7] sm:$0xff]   ;;  %v3653_v8 = vld [vmem:[%s3830_s7 + $0x8] sm:$0xff]   ;;  %v3655_v10 = vld [vmem:[%s3830_s7 + $0x10] sm:$0xff]   ;;  %s3903_s13 = scalar_lea.vmem %s4762_s2, %s3824_s28  ;;  %s3910_s16 = scalar_lea.vmem %s4763_s3, %s3824_s28 }
  0x15   : > { %3520 = vmatprep.subr.bf16.mxu0 %v3649_v0  ;;  %3580 = vmatprep.subr.bf16.mxu1 %v3649_v0  ;;  %v3652_v7 = vld [vmem:[%s3837_s10] sm:$0xff]   ;;  %v3654_v9 = vld [vmem:[%s3837_s10 + $0x8] sm:$0xff]   ;;  %v3656_v11 = vld [vmem:[%s3837_s10 + $0x10] sm:$0xff]   ;;  %s4433_s23 = scalar_lea.vmem %s4766_s6, %s3050_s19 }
  0x16   : > { %3404 = vmatprep.mubr.msk.bf16.mxu0 %vm533_vm2, %v3651_v6  ;;  %3464 = vmatprep.mubr.msk.bf16.mxu1 %vm533_vm2, %v3652_v7  ;;  %v3657_v12 = vld [vmem:[%s3830_s7 + $0x18] sm:$0xff]   ;;  %v3659_v14 = vld [vmem:[%s3830_s7 + $0x20] sm:$0xff]   ;;  %v3661_v16 = vld [vmem:[%s3830_s7 + $0x28] sm:$0xff]  }
  0x17   : > { %3405 = vmatmul.mubr.msk.bf16.vlgmr.msra.gmra.mrb[0].mxu0 %vm533_vm2, %v3653_v8  ;;  %3465 = vmatmul.mubr.msk.bf16.vlgmr.msra.gmra.mrb[0].mxu1 %vm533_vm2, %v3654_v9  ;;  %v3658_v13 = vld [vmem:[%s3837_s10 + $0x18] sm:$0xff]   ;;  %v3660_v15 = vld [vmem:[%s3837_s10 + $0x20] sm:$0xff]   ;;  %v3662_v17 = vld [vmem:[%s3837_s10 + $0x28] sm:$0xff]  }
  0x18   : > { %3521 = vmatpush3.bf16.msra.mxu0 %v3649_v0  ;;  %3581 = vmatpush3.bf16.msra.mxu1 %v3649_v0  ;;  %v3663_v18 = vld [vmem:[%s3830_s7 + $0x30] sm:$0xff]   ;;  %v3665_v20 = vld [vmem:[%s3830_s7 + $0x38] sm:$0xff]   ;;  %v3667_v22 = vld [vmem:[%s3830_s7 + $0x40] sm:$0xff]  }
  0x19   : > { %3408 = vmatprep.mubr.msk.bf16.mxu0 %vm533_vm2, %v3655_v10  ;;  %3468 = vmatprep.mubr.msk.bf16.mxu1 %vm533_vm2, %v3656_v11  ;;  %v3664_v19 = vld [vmem:[%s3837_s10 + $0x30] sm:$0xff]   ;;  %v3666_v21 = vld [vmem:[%s3837_s10 + $0x38] sm:$0xff]   ;;  %v3668_v23 = vld [vmem:[%s3837_s10 + $0x40] sm:$0xff]  }
  0x1a   : > { %3522 = vmatprep.subr.bf16.mxu0 %v623_v5  ;;  %3582 = vmatprep.subr.bf16.mxu1 %v623_v5  ;;  %v3669_v24 = vld [vmem:[%s3830_s7 + $0x48] sm:$0xff]   ;;  %v3671_v26 = vld [vmem:[%s3830_s7 + $0x50] sm:$0xff]   ;;  %v3673_v28 = vld [vmem:[%s3830_s7 + $0x58] sm:$0xff]  }
  0x1b   : > { %v3670_v25 = vld [vmem:[%s3837_s10 + $0x48] sm:$0xff]   ;;  %v3672_v27 = vld [vmem:[%s3837_s10 + $0x50] sm:$0xff]   ;;  %v3674_v29 = vld [vmem:[%s3837_s10 + $0x58] sm:$0xff]  }
  0x1c   : > { %3523 = vmatpush3.bf16.msra.mxu0 %v623_v5  ;;  %3583 = vmatpush3.bf16.msra.mxu1 %v623_v5  ;;  %v3675_v30 = vld [vmem:[%s3830_s7 + $0x60] sm:$0xff]   ;;  %v3677_v32 = vld [vmem:[%s3830_s7 + $0x68] sm:$0xff]   ;;  %v3679_v34 = vld [vmem:[%s3830_s7 + $0x70] sm:$0xff]  }
  0x1d   : > { %v3676_v31 = vld [vmem:[%s3837_s10 + $0x60] sm:$0xff]   ;;  %v3678_v33 = vld [vmem:[%s3837_s10 + $0x68] sm:$0xff]   ;;  %v3680_v35 = vld [vmem:[%s3837_s10 + $0x70] sm:$0xff]  }
  0x1e   : > { %v3681_v36 = vld [vmem:[%s3830_s7 + $0x78] sm:$0xff]   ;;  %v3683_v38 = vld [vmem:[%s3830_s7 + $0x80] sm:$0xff]   ;;  %v3685_v40 = vld [vmem:[%s3830_s7 + $0x88] sm:$0xff]  }
  0x1f   : > { %3409 = vmatmul.mubr.msk.bf16.gmra.mrb[4].mxu0 %vm533_vm2, %v3657_v12  ;;  %3469 = vmatmul.mubr.msk.bf16.gmra.mrb[4].mxu1 %vm533_vm2, %v3658_v13  ;;  %v3682_v37 = vld [vmem:[%s3837_s10 + $0x78] sm:$0xff]   ;;  %v3684_v39 = vld [vmem:[%s3837_s10 + $0x80] sm:$0xff]   ;;  %v3686_v41 = vld [vmem:[%s3837_s10 + $0x88] sm:$0xff]  }
  0x20   : > { %3412 = vmatprep.mubr.msk.bf16.mxu0 %vm533_vm2, %v3659_v14  ;;  %3472 = vmatprep.mubr.msk.bf16.mxu1 %vm533_vm2, %v3660_v15  ;;  %v3687_v42 = vld [vmem:[%s3830_s7 + $0x90] sm:$0xff]   ;;  %v3689_v44 = vld [vmem:[%s3830_s7 + $0x98] sm:$0xff]   ;;  %v3691_v46 = vld [vmem:[%s3830_s7 + $0xa0] sm:$0xff]  }
  0x21   : > { %v3688_v43 = vld [vmem:[%s3837_s10 + $0x90] sm:$0xff]   ;;  %v3690_v45 = vld [vmem:[%s3837_s10 + $0x98] sm:$0xff]   ;;  %v3692_v47 = vld [vmem:[%s3837_s10 + $0xa0] sm:$0xff]  }
  0x22   : > { %v3693_v48 = vld [vmem:[%s3830_s7 + $0xa8] sm:$0xff]   ;;  %v3695_v50 = vld [vmem:[%s3830_s7 + $0xb0] sm:$0xff]   ;;  %v3697_v52 = vld [vmem:[%s3830_s7 + $0xb8] sm:$0xff]  }
  0x23   : > { %v3694_v49 = vld [vmem:[%s3837_s10 + $0xa8] sm:$0xff]   ;;  %v3696_v51 = vld [vmem:[%s3837_s10 + $0xb0] sm:$0xff]   ;;  %v3698_v53 = vld [vmem:[%s3837_s10 + $0xb8] sm:$0xff]  }
  0x24   : > { %v3699_v54 = vld [vmem:[%s3830_s7 + $0xc0] sm:$0xff]   ;;  %v3701_v56 = vld [vmem:[%s3830_s7 + $0xc8] sm:$0xff]   ;;  %v3703_v58 = vld [vmem:[%s3830_s7 + $0xd0] sm:$0xff]  }
  0x25   : > { %v3700_v55 = vld [vmem:[%s3837_s10 + $0xc0] sm:$0xff]   ;;  %v3702_v57 = vld [vmem:[%s3837_s10 + $0xc8] sm:$0xff]   ;;  %v3704_v59 = vld [vmem:[%s3837_s10 + $0xd0] sm:$0xff]  }
  0x26   : > { %v3705_v60 = vld [vmem:[%s3830_s7 + $0xd8] sm:$0xff]   ;;  %v3707_v62 = vld [vmem:[%s3903_s13] sm:$0xff]   ;;  %v3709_v0 = vld [vmem:[%s3903_s13 + $0x8] sm:$0xff]  }
  0x27   : > { %3413 = vmatmul.mubr.msk.bf16.gmra.mrb[8].mxu0 %vm533_vm2, %v3661_v16  ;;  %3473 = vmatmul.mubr.msk.bf16.gmra.mrb[8].mxu1 %vm533_vm2, %v3662_v17  ;;  %v3706_v61 = vld [vmem:[%s3837_s10 + $0xd8] sm:$0xff]   ;;  %v3708_v63 = vld [vmem:[%s3910_s16] sm:$0xff]   ;;  %v3710_v1 = vld [vmem:[%s3910_s16 + $0x8] sm:$0xff]  }
  0x28   : > { %3416 = vmatprep.mubr.msk.bf16.mxu0 %vm533_vm2, %v3663_v18  ;;  %3476 = vmatprep.mubr.msk.bf16.mxu1 %vm533_vm2, %v3664_v19  ;;  %v3711_v2 = vld [vmem:[%s3903_s13 + $0x10] sm:$0xff]   ;;  %v3713_v4 = vld [vmem:[%s3903_s13 + $0x18] sm:$0xff]   ;;  %v3715_v6 = vld [vmem:[%s3903_s13 + $0x20] sm:$0xff]  }
  0x29   : > { %v3712_v3 = vld [vmem:[%s3910_s16 + $0x10] sm:$0xff]   ;;  %v3714_v5 = vld [vmem:[%s3910_s16 + $0x18] sm:$0xff]   ;;  %v3716_v7 = vld [vmem:[%s3910_s16 + $0x20] sm:$0xff]  }
  0x2a   : > { %v3717_v8 = vld [vmem:[%s3903_s13 + $0x28] sm:$0xff]   ;;  %v3719_v10 = vld [vmem:[%s3903_s13 + $0x30] sm:$0xff]   ;;  %v3721_v12 = vld [vmem:[%s3903_s13 + $0x38] sm:$0xff]  }
  0x2b   : > { %v3718_v9 = vld [vmem:[%s3910_s16 + $0x28] sm:$0xff]   ;;  %v3720_v11 = vld [vmem:[%s3910_s16 + $0x30] sm:$0xff]   ;;  %v3722_v13 = vld [vmem:[%s3910_s16 + $0x38] sm:$0xff]  }
  0x2c   : > { %v3723_v14 = vld [vmem:[%s3903_s13 + $0x40] sm:$0xff]   ;;  %v3725_v16 = vld [vmem:[%s3903_s13 + $0x48] sm:$0xff]   ;;  %v3727_v18 = vld [vmem:[%s3903_s13 + $0x50] sm:$0xff]  }
  0x2d   : > { %v3724_v15 = vld [vmem:[%s3910_s16 + $0x40] sm:$0xff]   ;;  %v3726_v17 = vld [vmem:[%s3910_s16 + $0x48] sm:$0xff]   ;;  %v3728_v19 = vld [vmem:[%s3910_s16 + $0x50] sm:$0xff]  }
  0x2f   : > { %3417 = vmatmul.mubr.msk.bf16.gmra.mrb[12].mxu0 %vm533_vm2, %v3665_v20  ;;  %3477 = vmatmul.mubr.msk.bf16.gmra.mrb[12].mxu1 %vm533_vm2, %v3666_v21  ;;  %v3729_v20 = vld [vmem:[%s3903_s13 + $0x58] sm:$0xff]  }
  0x30   : > { %3420 = vmatprep.mubr.msk.bf16.mxu0 %vm533_vm2, %v3667_v22  ;;  %3480 = vmatprep.mubr.msk.bf16.mxu1 %vm533_vm2, %v3668_v23  ;;  %v3730_v21 = vld [vmem:[%s3910_s16 + $0x58] sm:$0xff]   ;;  %v3731_v22 = vld [vmem:[%s3903_s13 + $0x60] sm:$0xff]  }
  0x31   : > { %v3732_v23 = vld [vmem:[%s3910_s16 + $0x60] sm:$0xff]  }
  0x37   : > { %3421 = vmatmul.mubr.msk.bf16.gmra.mrb[16].mxu0 %vm533_vm2, %v3669_v24  ;;  %3481 = vmatmul.mubr.msk.bf16.gmra.mrb[16].mxu1 %vm533_vm2, %v3670_v25  ;;  %v3733_v24 = vld [vmem:[%s3903_s13 + $0x68] sm:$0xff]  }
  0x38   : > { %3424 = vmatprep.mubr.msk.bf16.mxu0 %vm533_vm2, %v3671_v26  ;;  %3484 = vmatprep.mubr.msk.bf16.mxu1 %vm533_vm2, %v3672_v27  ;;  %v3734_v25 = vld [vmem:[%s3910_s16 + $0x68] sm:$0xff]   ;;  %v3735_v26 = vld [vmem:[%s3903_s13 + $0x70] sm:$0xff]  }
  0x39   : > { %v3736_v27 = vld [vmem:[%s3910_s16 + $0x70] sm:$0xff]  }
  0x3f   : > { %3425 = vmatmul.mubr.msk.bf16.gmra.mrb[20].mxu0 %vm533_vm2, %v3673_v28  ;;  %3485 = vmatmul.mubr.msk.bf16.gmra.mrb[20].mxu1 %vm533_vm2, %v3674_v29  ;;  %v3737_v28 = vld [vmem:[%s3903_s13 + $0x78] sm:$0xff]  }
  0x40   : > { %3428 = vmatprep.mubr.msk.bf16.mxu0 %vm533_vm2, %v3675_v30  ;;  %3488 = vmatprep.mubr.msk.bf16.mxu1 %vm533_vm2, %v3676_v31  ;;  %v3738_v29 = vld [vmem:[%s3910_s16 + $0x78] sm:$0xff]   ;;  %v3739_v30 = vld [vmem:[%s3903_s13 + $0x80] sm:$0xff]  }
  0x41   : > { %v3740_v31 = vld [vmem:[%s3910_s16 + $0x80] sm:$0xff]  }
  0x47   : > { %3429 = vmatmul.mubr.msk.bf16.gmra.mrb[24].mxu0 %vm533_vm2, %v3677_v32  ;;  %3489 = vmatmul.mubr.msk.bf16.gmra.mrb[24].mxu1 %vm533_vm2, %v3678_v33  ;;  %v3741_v32 = vld [vmem:[%s3903_s13 + $0x88] sm:$0xff]  }
  0x48   : > { %3432 = vmatprep.mubr.msk.bf16.mxu0 %vm533_vm2, %v3679_v34  ;;  %3492 = vmatprep.mubr.msk.bf16.mxu1 %vm533_vm2, %v3680_v35  ;;  %v3742_v33 = vld [vmem:[%s3910_s16 + $0x88] sm:$0xff]   ;;  %v3743_v34 = vld [vmem:[%s3903_s13 + $0x90] sm:$0xff]  }
  0x49   : > { %v3744_v35 = vld [vmem:[%s3910_s16 + $0x90] sm:$0xff]  }
  0x4f   : > { %3433 = vmatmul.mubr.msk.bf16.gmra.mrb[28].mxu0 %vm533_vm2, %v3681_v36  ;;  %3493 = vmatmul.mubr.msk.bf16.gmra.mrb[28].mxu1 %vm533_vm2, %v3682_v37  ;;  %v3745_v36 = vld [vmem:[%s3903_s13 + $0x98] sm:$0xff]  }
  0x50   : > { %3436 = vmatprep.mubr.msk.bf16.mxu0 %vm533_vm2, %v3683_v38  ;;  %3496 = vmatprep.mubr.msk.bf16.mxu1 %vm533_vm2, %v3684_v39  ;;  %v3746_v37 = vld [vmem:[%s3910_s16 + $0x98] sm:$0xff]   ;;  %v3747_v38 = vld [vmem:[%s3903_s13 + $0xa0] sm:$0xff]  }
  0x51   : > { %v3748_v39 = vld [vmem:[%s3910_s16 + $0xa0] sm:$0xff]  }
  0x57   : > { %3437 = vmatmul.mubr.msk.bf16.gmra.mrb[32].mxu0 %vm533_vm2, %v3685_v40  ;;  %3497 = vmatmul.mubr.msk.bf16.gmra.mrb[32].mxu1 %vm533_vm2, %v3686_v41  ;;  %v3749_v40 = vld [vmem:[%s3903_s13 + $0xa8] sm:$0xff]  }
  0x58   : > { %3440 = vmatprep.mubr.msk.bf16.mxu0 %vm533_vm2, %v3687_v42  ;;  %3500 = vmatprep.mubr.msk.bf16.mxu1 %vm533_vm2, %v3688_v43  ;;  %v3750_v41 = vld [vmem:[%s3910_s16 + $0xa8] sm:$0xff]   ;;  %v3751_v42 = vld [vmem:[%s3903_s13 + $0xb0] sm:$0xff]  }
  0x59   : > { %v3752_v43 = vld [vmem:[%s3910_s16 + $0xb0] sm:$0xff]  }
  0x5f   : > { %3441 = vmatmul.mubr.msk.bf16.gmra.mrb[36].mxu0 %vm533_vm2, %v3689_v44  ;;  %3501 = vmatmul.mubr.msk.bf16.gmra.mrb[36].mxu1 %vm533_vm2, %v3690_v45  ;;  %v3753_v44 = vld [vmem:[%s3903_s13 + $0xb8] sm:$0xff]  }
  0x60   : > { %3444 = vmatprep.mubr.msk.bf16.mxu0 %vm533_vm2, %v3691_v46  ;;  %3504 = vmatprep.mubr.msk.bf16.mxu1 %vm533_vm2, %v3692_v47  ;;  %v3754_v45 = vld [vmem:[%s3910_s16 + $0xb8] sm:$0xff]   ;;  %v3755_v46 = vld [vmem:[%s3903_s13 + $0xc0] sm:$0xff]  }
  0x61   : > { %v3756_v47 = vld [vmem:[%s3910_s16 + $0xc0] sm:$0xff]  }
  0x67   : > { %3445 = vmatmul.mubr.msk.bf16.gmra.mrb[40].mxu0 %vm533_vm2, %v3693_v48  ;;  %3505 = vmatmul.mubr.msk.bf16.gmra.mrb[40].mxu1 %vm533_vm2, %v3694_v49  ;;  %v3757_v48 = vld [vmem:[%s3903_s13 + $0xc8] sm:$0xff]  }
  0x68   : > { %3448 = vmatprep.mubr.msk.bf16.mxu0 %vm533_vm2, %v3695_v50  ;;  %3508 = vmatprep.mubr.msk.bf16.mxu1 %vm533_vm2, %v3696_v51  ;;  %v3758_v49 = vld [vmem:[%s3910_s16 + $0xc8] sm:$0xff]   ;;  %v3759_v50 = vld [vmem:[%s3903_s13 + $0xd0] sm:$0xff]  }
  0x69   : > { %v3760_v51 = vld [vmem:[%s3910_s16 + $0xd0] sm:$0xff]  }
  0x6f   : > { %3449 = vmatmul.mubr.msk.bf16.gmra.mrb[44].mxu0 %vm533_vm2, %v3697_v52  ;;  %3509 = vmatmul.mubr.msk.bf16.gmra.mrb[44].mxu1 %vm533_vm2, %v3698_v53 }
  0x70   : > { %3452 = vmatprep.mubr.msk.bf16.mxu0 %vm533_vm2, %v3699_v54  ;;  %3512 = vmatprep.mubr.msk.bf16.mxu1 %vm533_vm2, %v3700_v55  ;;  %v3761_v55 = vld [vmem:[%s3903_s13 + $0xd8] sm:$0xff]  }
  0x77   : > { %3453 = vmatmul.mubr.msk.bf16.gmra.mrb[48].mxu0 %vm533_vm2, %v3701_v56  ;;  %3513 = vmatmul.mubr.msk.bf16.gmra.mrb[48].mxu1 %vm533_vm2, %v3702_v57 }
  0x78   : > { %3456 = vmatprep.mubr.msk.bf16.mxu0 %vm533_vm2, %v3703_v58  ;;  %3516 = vmatprep.mubr.msk.bf16.mxu1 %vm533_vm2, %v3704_v59  ;;  %v3762_v59 = vld [vmem:[%s3910_s16 + $0xd8] sm:$0xff]  }
  0x7f   : > { %3457 = vmatmul.mubr.msk.bf16.gmra.mrb[52].mxu0 %vm533_vm2, %v3705_v60  ;;  %3517 = vmatmul.mubr.msk.bf16.gmra.mrb[52].mxu1 %vm533_vm2, %v3706_v61 }
  0x80   : > { %3524 = vmatprep.mubr.msk.bf16.mxu0 %vm533_vm2, %v3707_v62  ;;  %3584 = vmatprep.mubr.msk.bf16.mxu1 %vm533_vm2, %v3708_v63 }
  0x87   : > { %3525 = vmatmul.mubr.msk.bf16.vlgmr.msra.gmra.mrb[56].mxu0 %vm533_vm2, %v3709_v0  ;;  %3585 = vmatmul.mubr.msk.bf16.vlgmr.msra.gmra.mrb[56].mxu1 %vm533_vm2, %v3710_v1 }
  0x88   : > { %3528 = vmatprep.mubr.msk.bf16.mxu0 %vm533_vm2, %v3711_v2  ;;  %3588 = vmatprep.mubr.msk.bf16.mxu1 %vm533_vm2, %v3712_v3 }
  0x8f   : > { %3529 = vmatmul.mubr.msk.bf16.gmra.mrb[60].mxu0 %vm533_vm2, %v3713_v4  ;;  %3589 = vmatmul.mubr.msk.bf16.gmra.mrb[60].mxu1 %vm533_vm2, %v3714_v5 }
  0x90   : > { %3532 = vmatprep.mubr.msk.bf16.mxu0 %vm533_vm2, %v3715_v6  ;;  %3592 = vmatprep.mubr.msk.bf16.mxu1 %vm533_vm2, %v3716_v7 }
  0x97   : > { %3533 = vmatmul.mubr.msk.bf16.gmra.mrb[64].mxu0 %vm533_vm2, %v3717_v8  ;;  %3593 = vmatmul.mubr.msk.bf16.gmra.mrb[64].mxu1 %vm533_vm2, %v3718_v9 }
  0x98   : > { %3536 = vmatprep.mubr.msk.bf16.mxu0 %vm533_vm2, %v3719_v10  ;;  %3596 = vmatprep.mubr.msk.bf16.mxu1 %vm533_vm2, %v3720_v11 }
  0x9f   : > { %3537 = vmatmul.mubr.msk.bf16.gmra.mrb[68].mxu0 %vm533_vm2, %v3721_v12  ;;  %3597 = vmatmul.mubr.msk.bf16.gmra.mrb[68].mxu1 %vm533_vm2, %v3722_v13 }
  0xa0   : > { %3540 = vmatprep.mubr.msk.bf16.mxu0 %vm533_vm2, %v3723_v14  ;;  %3600 = vmatprep.mubr.msk.bf16.mxu1 %vm533_vm2, %v3724_v15 }
  0xa7   : > { %3541 = vmatmul.mubr.msk.bf16.gmra.mrb[72].mxu0 %vm533_vm2, %v3725_v16  ;;  %3601 = vmatmul.mubr.msk.bf16.gmra.mrb[72].mxu1 %vm533_vm2, %v3726_v17 }
  0xa8   : > { %3544 = vmatprep.mubr.msk.bf16.mxu0 %vm533_vm2, %v3727_v18  ;;  %3604 = vmatprep.mubr.msk.bf16.mxu1 %vm533_vm2, %v3728_v19 }
  0xaf   : > { %3545 = vmatmul.mubr.msk.bf16.gmra.mrb[76].mxu0 %vm533_vm2, %v3729_v20  ;;  %3605 = vmatmul.mubr.msk.bf16.gmra.mrb[76].mxu1 %vm533_vm2, %v3730_v21 }
  0xb0   : > { %3548 = vmatprep.mubr.msk.bf16.mxu0 %vm533_vm2, %v3731_v22  ;;  %3608 = vmatprep.mubr.msk.bf16.mxu1 %vm533_vm2, %v3732_v23 }
  0xb7   : > { %3549 = vmatmul.mubr.msk.bf16.gmra.mrb[80].mxu0 %vm533_vm2, %v3733_v24  ;;  %3609 = vmatmul.mubr.msk.bf16.gmra.mrb[80].mxu1 %vm533_vm2, %v3734_v25 }
  0xb8   : > { %3552 = vmatprep.mubr.msk.bf16.mxu0 %vm533_vm2, %v3735_v26  ;;  %3612 = vmatprep.mubr.msk.bf16.mxu1 %vm533_vm2, %v3736_v27 }
  0xbf   : > { %3553 = vmatmul.mubr.msk.bf16.gmra.mrb[84].mxu0 %vm533_vm2, %v3737_v28  ;;  %3613 = vmatmul.mubr.msk.bf16.gmra.mrb[84].mxu1 %vm533_vm2, %v3738_v29 }
  0xc0   : > { %3556 = vmatprep.mubr.msk.bf16.mxu0 %vm533_vm2, %v3739_v30  ;;  %3616 = vmatprep.mubr.msk.bf16.mxu1 %vm533_vm2, %v3740_v31 }
  0xc7   : > { %3557 = vmatmul.mubr.msk.bf16.gmra.mrb[88].mxu0 %vm533_vm2, %v3741_v32  ;;  %3617 = vmatmul.mubr.msk.bf16.gmra.mrb[88].mxu1 %vm533_vm2, %v3742_v33 }
  0xc8   : > { %3560 = vmatprep.mubr.msk.bf16.mxu0 %vm533_vm2, %v3743_v34  ;;  %3620 = vmatprep.mubr.msk.bf16.mxu1 %vm533_vm2, %v3744_v35 }
  0xcf   : > { %3561 = vmatmul.mubr.msk.bf16.gmra.mrb[92].mxu0 %vm533_vm2, %v3745_v36  ;;  %3621 = vmatmul.mubr.msk.bf16.gmra.mrb[92].mxu1 %vm533_vm2, %v3746_v37 }
  0xd0   : > { %3564 = vmatprep.mubr.msk.bf16.mxu0 %vm533_vm2, %v3747_v38  ;;  %3624 = vmatprep.mubr.msk.bf16.mxu1 %vm533_vm2, %v3748_v39 }
  0xd7   : > { %3565 = vmatmul.mubr.msk.bf16.gmra.mrb[96].mxu0 %vm533_vm2, %v3749_v40  ;;  %3625 = vmatmul.mubr.msk.bf16.gmra.mrb[96].mxu1 %vm533_vm2, %v3750_v41 }
  0xd8   : > { %3568 = vmatprep.mubr.msk.bf16.mxu0 %vm533_vm2, %v3751_v42  ;;  %3628 = vmatprep.mubr.msk.bf16.mxu1 %vm533_vm2, %v3752_v43 }
  0xdf   : > { %3569 = vmatmul.mubr.msk.bf16.gmra.mrb[100].mxu0 %vm533_vm2, %v3753_v44  ;;  %3629 = vmatmul.mubr.msk.bf16.gmra.mrb[100].mxu1 %vm533_vm2, %v3754_v45 }
  0xe0   : > { %3572 = vmatprep.mubr.msk.bf16.mxu0 %vm533_vm2, %v3755_v46  ;;  %3632 = vmatprep.mubr.msk.bf16.mxu1 %vm533_vm2, %v3756_v47 }
  0xe7   : > { %3573 = vmatmul.mubr.msk.bf16.gmra.mrb[104].mxu0 %vm533_vm2, %v3757_v48  ;;  %3633 = vmatmul.mubr.msk.bf16.gmra.mrb[104].mxu1 %vm533_vm2, %v3758_v49 }
  0xe8   : > { %3576 = vmatprep.mubr.msk.bf16.mxu0 %vm533_vm2, %v3759_v50  ;;  %3636 = vmatprep.mubr.msk.bf16.mxu1 %vm533_vm2, %v3760_v51 }
  0xea   : > { %v4070_v52 = vpop.f32.mrb[0].mxu0  ;;  %v4072_v53 = vpop.f32.mrb[0].mxu1 }
  0xeb   : > { %v4074_v54 = vpop.f32.mrb[1].mxu0  ;;  %v4079_v57 = vpop.f32.mrb[1].mxu1 }
  0xec   : > { %v4081_v58 = vpop.f32.mrb[2].mxu0  ;;  %v4086_v61 = vpop.f32.mrb[2].mxu1 }
  0xed   : > { %v4088_v62 = vpop.f32.mrb[3].mxu0  ;;  %v4092_v0 = vpop.f32.mrb[3].mxu1 }
  0xef   : > { %3577 = vmatmul.mubr.msk.bf16.gmra.mrb[108].mxu0 %vm533_vm2, %v3761_v55  ;;  %3637 = vmatmul.mubr.msk.bf16.gmra.mrb[108].mxu1 %vm533_vm2, %v3762_v59 }
  0xf2   : > { %v4098_v2 = vpop.f32.mrb[4].mxu0  ;;  %v4100_v3 = vpop.f32.mrb[4].mxu1 }
  0xf3   : > { %v4102_v4 = vpop.f32.mrb[5].mxu0  ;;  %v4106_v6 = vpop.f32.mrb[5].mxu1 }
  0xf4   : > { %v4108_v7 = vpop.f32.mrb[6].mxu0  ;;  %v4112_v9 = vpop.f32.mrb[6].mxu1 }
  0xf5   : > { %v4114_v10 = vpop.f32.mrb[7].mxu0  ;;  %v4118_v12 = vpop.f32.mrb[7].mxu1 }
  0xfa   : > { %v4122_v14 = vpop.f32.mrb[8].mxu0  ;;  %v4124_v15 = vpop.f32.mrb[8].mxu1 }
  0xfb   : > { %v4126_v16 = vpop.f32.mrb[9].mxu0  ;;  %v4130_v18 = vpop.f32.mrb[9].mxu1 }
  0xfc   : > { %v4132_v19 = vpop.f32.mrb[10].mxu0  ;;  %v4136_v21 = vpop.f32.mrb[10].mxu1 }
  0xfd   : > { %v4138_v22 = vpop.f32.mrb[11].mxu0  ;;  %v4142_v24 = vpop.f32.mrb[11].mxu1 }
 0x102   : > { %v4146_v26 = vpop.f32.mrb[12].mxu0  ;;  %v4148_v27 = vpop.f32.mrb[12].mxu1 }
 0x103   : > { %v4150_v28 = vpop.f32.mrb[13].mxu0  ;;  %v4154_v30 = vpop.f32.mrb[13].mxu1 }
 0x104   : > { %v4156_v31 = vpop.f32.mrb[14].mxu0  ;;  %v4160_v33 = vpop.f32.mrb[14].mxu1 }
 0x105   : > { %v4162_v34 = vpop.f32.mrb[15].mxu0  ;;  %v4166_v36 = vpop.f32.mrb[15].mxu1 }
 0x10a   : > { %v4170_v38 = vpop.f32.mrb[16].mxu0  ;;  %v4172_v39 = vpop.f32.mrb[16].mxu1 }
 0x10b   : > { %v4174_v40 = vpop.f32.mrb[17].mxu0  ;;  %v4178_v42 = vpop.f32.mrb[17].mxu1 }
 0x10c   : > { %v4180_v43 = vpop.f32.mrb[18].mxu0  ;;  %v4184_v45 = vpop.f32.mrb[18].mxu1 }
 0x10d   : > { %v4186_v46 = vpop.f32.mrb[19].mxu0  ;;  %v4190_v48 = vpop.f32.mrb[19].mxu1 }
 0x112   : > { %v4194_v50 = vpop.f32.mrb[20].mxu0  ;;  %v4196_v51 = vpop.f32.mrb[20].mxu1 }
 0x113   : > { %v4198_v55 = vpop.f32.mrb[21].mxu0  ;;  %v4202_v44 = vpop.f32.mrb[21].mxu1 }
 0x114   : > { %v4204_v41 = vpop.f32.mrb[22].mxu0  ;;  %v4208_v37 = vpop.f32.mrb[22].mxu1 }
 0x115   : > { %v4210_v35 = vpop.f32.mrb[23].mxu0  ;;  %v4214_v32 = vpop.f32.mrb[23].mxu1 }
 0x116   : > { %4832 = vst [vmem:[#allocation2_spill] sm:$0xff] %v4214_v32  ;;  %v4899_v32 = vmax.f32 %v4081_v58, %v4086_v61 }
 0x11a   : > { %v4218_v59 = vpop.f32.mrb[24].mxu0  ;;  %v4220_v25 = vpop.f32.mrb[24].mxu1 }
 0x11b   : > { %4833 = vst [vmem:[#allocation3_spill] sm:$0xff] %v4218_v59  ;;  %4834 = vst [vmem:[#allocation4_spill] sm:$0xff] %v4220_v25  ;;  %v4222_v23 = vpop.f32.mrb[25].mxu0  ;;  %v4226_v20 = vpop.f32.mrb[25].mxu1 }
 0x11c   : > { %4835 = vst [vmem:[#allocation5_spill] sm:$0xff] %v4222_v23  ;;  %4836 = vst [vmem:[#allocation6_spill] sm:$0xff] %v4226_v20  ;;  %v4228_v17 = vpop.f32.mrb[26].mxu0  ;;  %v4232_v13 = vpop.f32.mrb[26].mxu1 }
 0x11d   : > { %4837 = vst [vmem:[#allocation7_spill] sm:$0xff] %v4228_v17  ;;  %4838 = vst [vmem:[#allocation8_spill] sm:$0xff] %v4232_v13  ;;  %v4234_v11 = vpop.f32.mrb[27].mxu0  ;;  %v4238_v8 = vpop.f32.mrb[27].mxu1 }
 0x11e   : > { %4839 = vst [vmem:[#allocation9_spill] sm:$0xff] %v4234_v11  ;;  %4840 = vst [vmem:[#allocation10_spill] sm:$0xff] %v4238_v8 }
 0x122   : > { %v4242_v47 = vpop.f32.mrb[28].mxu0  ;;  %v4244_v1 = vpop.f32.mrb[28].mxu1 }
 0x123   : > { %4841 = vst [vmem:[#allocation11_spill] sm:$0xff] %v4242_v47  ;;  %4842 = vst [vmem:[#allocation12_spill] sm:$0xff] %v4244_v1  ;;  %v4246_v63 = vpop.f32.mrb[29].mxu0  ;;  %v4250_v60 = vpop.f32.mrb[29].mxu1 }
 0x124   : > { %4843 = vst [vmem:[#allocation13_spill] sm:$0xff] %v4246_v63  ;;  %4844 = vst [vmem:[#allocation14_spill] sm:$0xff] %v4250_v60  ;;  %v4252_v56 = vpop.f32.mrb[30].mxu0  ;;  %v4256_v13 = vpop.f32.mrb[30].mxu1 }
 0x125   : > { %4845 = vst [vmem:[#allocation15_spill] sm:$0xff] %v4252_v56  ;;  %4846 = vst [vmem:[#allocation16_spill] sm:$0xff] %v4256_v13  ;;  %v4258_v17 = vpop.f32.mrb[31].mxu0  ;;  %v4262_v8 = vpop.f32.mrb[31].mxu1 }
 0x126   : > { %4847 = vst [vmem:[#allocation17_spill] sm:$0xff] %v4258_v17  ;;  %4848 = vst [vmem:[#allocation18_spill] sm:$0xff] %v4262_v8 }
 0x12a   : > { %v4266_v49 = vpop.f32.mrb[32].mxu0  ;;  %v4268_v1 = vpop.f32.mrb[32].mxu1 }
 0x12b   : > { %4849 = vst [vmem:[#allocation19_spill] sm:$0xff] %v4266_v49  ;;  %4850 = vst [vmem:[#allocation20_spill] sm:$0xff] %v4268_v1  ;;  %v4270_v47 = vpop.f32.mrb[33].mxu0  ;;  %v4274_v60 = vpop.f32.mrb[33].mxu1 }
 0x12c   : > { %4851 = vst [vmem:[#allocation21_spill] sm:$0xff] %v4270_v47  ;;  %4852 = vst [vmem:[#allocation22_spill] sm:$0xff] %v4274_v60  ;;  %v4276_v63 = vpop.f32.mrb[34].mxu0  ;;  %v4280_v13 = vpop.f32.mrb[34].mxu1 }
 0x12d   : > { %4853 = vst [vmem:[#allocation23_spill] sm:$0xff] %v4276_v63  ;;  %4854 = vst [vmem:[#allocation24_spill] sm:$0xff] %v4280_v13  ;;  %v4282_v56 = vpop.f32.mrb[35].mxu0  ;;  %v4286_v8 = vpop.f32.mrb[35].mxu1 }
 0x12e   : > { %4855 = vst [vmem:[#allocation25_spill] sm:$0xff] %v4282_v56  ;;  %4856 = vst [vmem:[#allocation26_spill] sm:$0xff] %v4286_v8 }
 0x132   : > { %v4290_v29 = vpop.f32.mrb[36].mxu0  ;;  %v4292_v1 = vpop.f32.mrb[36].mxu1 }
 0x133   : > { %4857 = vst [vmem:[#allocation27_spill] sm:$0xff] %v4290_v29  ;;  %4858 = vst [vmem:[#allocation28_spill] sm:$0xff] %v4292_v1  ;;  %v4294_v49 = vpop.f32.mrb[37].mxu0  ;;  %v4298_v60 = vpop.f32.mrb[37].mxu1 }
 0x134   : > { %4859 = vst [vmem:[#allocation29_spill] sm:$0xff] %v4294_v49  ;;  %4860 = vst [vmem:[#allocation30_spill] sm:$0xff] %v4298_v60  ;;  %v4300_v47 = vpop.f32.mrb[38].mxu0  ;;  %v4304_v13 = vpop.f32.mrb[38].mxu1 }
 0x135   : > { %4861 = vst [vmem:[#allocation31_spill] sm:$0xff] %v4300_v47  ;;  %4862 = vst [vmem:[#allocation32_spill] sm:$0xff] %v4304_v13  ;;  %v4306_v63 = vpop.f32.mrb[39].mxu0  ;;  %v4310_v8 = vpop.f32.mrb[39].mxu1 }
 0x136   : > { %4863 = vst [vmem:[#allocation33_spill] sm:$0xff] %v4306_v63  ;;  %4864 = vst [vmem:[#allocation34_spill] sm:$0xff] %v4310_v8 }
 0x13a   : > { %v4314_v5 = vpop.f32.mrb[40].mxu0  ;;  %v4316_v1 = vpop.f32.mrb[40].mxu1 }
 0x13b   : > { %4865 = vst [vmem:[#allocation35_spill] sm:$0xff] %v4314_v5  ;;  %4866 = vst [vmem:[#allocation36_spill] sm:$0xff] %v4316_v1  ;;  %v4318_v29 = vpop.f32.mrb[41].mxu0  ;;  %v4322_v60 = vpop.f32.mrb[41].mxu1 }
 0x13c   : > { %4867 = vst [vmem:[#allocation37_spill] sm:$0xff] %v4318_v29  ;;  %4868 = vst [vmem:[#allocation38_spill] sm:$0xff] %v4322_v60  ;;  %v4324_v49 = vpop.f32.mrb[42].mxu0  ;;  %v4328_v13 = vpop.f32.mrb[42].mxu1 }
 0x13d   : > { %4869 = vst [vmem:[#allocation39_spill] sm:$0xff] %v4324_v49  ;;  %4870 = vst [vmem:[#allocation40_spill] sm:$0xff] %v4328_v13  ;;  %v4330_v47 = vpop.f32.mrb[43].mxu0  ;;  %v4334_v8 = vpop.f32.mrb[43].mxu1 }
 0x13e   : > { %4871 = vst [vmem:[#allocation41_spill] sm:$0xff] %v4330_v47  ;;  %4872 = vst [vmem:[#allocation42_spill] sm:$0xff] %v4334_v8  ;;  %v4413_v47 = vld [vmem:[%s4765_s5] ss:$0 sm:$0xff] }
 0x142   : > { %v4338_v11 = vpop.f32.mrb[44].mxu0  ;;  %v4340_v1 = vpop.f32.mrb[44].mxu1 }
 0x143   : > { %4873 = vst [vmem:[#allocation43_spill] sm:$0xff] %v4338_v11  ;;  %4874 = vst [vmem:[#allocation44_spill] sm:$0xff] %v4340_v1  ;;  %v4342_v5 = vpop.f32.mrb[45].mxu0  ;;  %v4346_v60 = vpop.f32.mrb[45].mxu1 }
 0x144   : > { %4875 = vst [vmem:[#allocation45_spill] sm:$0xff] %v4342_v5  ;;  %4876 = vst [vmem:[#allocation46_spill] sm:$0xff] %v4346_v60  ;;  %v4348_v29 = vpop.f32.mrb[46].mxu0  ;;  %v4352_v13 = vpop.f32.mrb[46].mxu1 }
 0x145   : > { %4877 = vst [vmem:[#allocation47_spill] sm:$0xff] %v4348_v29  ;;  %4878 = vst [vmem:[#allocation48_spill] sm:$0xff] %v4352_v13  ;;  %v4354_v49 = vpop.f32.mrb[47].mxu0  ;;  %v4358_v8 = vpop.f32.mrb[47].mxu1 }
 0x146   : > { %4879 = vst [vmem:[#allocation49_spill] sm:$0xff] %v4354_v49  ;;  %4880 = vst [vmem:[#allocation50_spill] sm:$0xff] %v4358_v8 }
 0x14a   : > { %v4362_v17 = vpop.f32.mrb[48].mxu0  ;;  %v4364_v1 = vpop.f32.mrb[48].mxu1 }
 0x14b   : > { %4881 = vst [vmem:[#allocation51_spill] sm:$0xff] %v4362_v17  ;;  %4882 = vst [vmem:[#allocation52_spill] sm:$0xff] %v4364_v1  ;;  %v4366_v11 = vpop.f32.mrb[49].mxu0  ;;  %v4370_v60 = vpop.f32.mrb[49].mxu1 }
 0x14c   : > { %4883 = vst [vmem:[#allocation53_spill] sm:$0xff] %v4366_v11  ;;  %4884 = vst [vmem:[#allocation54_spill] sm:$0xff] %v4370_v60  ;;  %v4372_v5 = vpop.f32.mrb[50].mxu0  ;;  %v4376_v13 = vpop.f32.mrb[50].mxu1 }
 0x14d   : > { %4885 = vst [vmem:[#allocation55_spill] sm:$0xff] %v4372_v5  ;;  %4886 = vst [vmem:[#allocation56_spill] sm:$0xff] %v4376_v13  ;;  %v4378_v29 = vpop.f32.mrb[51].mxu0  ;;  %v4382_v8 = vpop.f32.mrb[51].mxu1 }
 0x14e   : > { %4887 = vst [vmem:[#allocation57_spill] sm:$0xff] %v4378_v29  ;;  %4888 = vst [vmem:[#allocation58_spill] sm:$0xff] %v4382_v8 }
 0x152   : > { %v4386_v56 = vpop.f32.mrb[52].mxu0  ;;  %v4388_v1 = vpop.f32.mrb[52].mxu1 }
 0x153   : > { %4889 = vst [vmem:[#allocation59_spill] sm:$0xff] %v4386_v56  ;;  %4890 = vst [vmem:[#allocation60_spill] sm:$0xff] %v4388_v1  ;;  %v4390_v17 = vpop.f32.mrb[53].mxu0  ;;  %v4394_v60 = vpop.f32.mrb[53].mxu1 }
 0x154   : > { %4891 = vst [vmem:[#allocation61_spill] sm:$0xff] %v4390_v17  ;;  %4892 = vst [vmem:[#allocation62_spill] sm:$0xff] %v4394_v60  ;;  %v4396_v11 = vpop.f32.mrb[54].mxu0  ;;  %v4400_v13 = vpop.f32.mrb[54].mxu1 }
 0x155   : > { %4893 = vst [vmem:[#allocation63_spill] sm:$0xff] %v4396_v11  ;;  %4894 = vst [vmem:[#allocation64_spill] sm:$0xff] %v4400_v13  ;;  %v4402_v5 = vpop.f32.mrb[55].mxu0  ;;  %v4406_v8 = vpop.f32.mrb[55].mxu1  ;;  %v4897_v13 = vmax.f32 %v4070_v52, %v4072_v53  ;;  %v4900_v52 = vmax.f32 %v4088_v62, %v4092_v0 }
 0x156   : > { %4895 = vst [vmem:[#allocation65_spill] sm:$0xff] %v4402_v5  ;;  %4896 = vst [vmem:[#allocation66_spill] sm:$0xff] %v4406_v8 }
 0x15a   : > { %v3526_v1 = vpop.f32.mrb[56].mxu0  ;;  %v3586_v56 = vpop.f32.mrb[56].mxu1 }
 0x15b   : > { %v1789_v29 = vpop.f32.mrb[57].mxu0  ;;  %v2551_v20 = vmax.f32 %v3526_v1, %v3586_v56  ;;  %v2326_v23 = vpop.f32.mrb[57].mxu1  ;;  %v4898_v56 = vmax.f32 %v4074_v54, %v4079_v57 }
 0x15c   : > { %v3527_v25 = vpop.f32.mrb[58].mxu0  ;;  %v2549_v60 = vmax.f32 %v1789_v29, %v2326_v23  ;;  %v3587_v17 = vpop.f32.mrb[58].mxu1 }
 0x15d   : > { %v1792_v49 = vpop.f32.mrb[59].mxu0  ;;  %v2607_v11 = vmax.f32 %v4897_v13, %v2551_v20  ;;  %v2552_v59 = vmax.f32 %v3527_v25, %v3587_v17  ;;  %v2329_v63 = vpop.f32.mrb[59].mxu1 }
 0x15e   : > { %v2605_v1 = vmax.f32 %v4898_v56, %v2549_v60  ;;  %v2550_v8 = vmax.f32 %v1792_v49, %v2329_v63 }
 0x15f   : > { %v2670_v5 = vadd.f32 %v4413_v47, %v2607_v11  ;;  %v2608_v23 = vmax.f32 %v4899_v32, %v2552_v59 }
 0x160   : > { %v2668_v29 = vadd.f32 %v4413_v47, %v2605_v1  ;;  %v2606_v53 = vmax.f32 %v4900_v52, %v2550_v8 }
 0x161   : > { %vm2726_vm3 = vcmp.ge.f32.partialorder %v2670_v5, 0.0  ;;  %v2782_v54 = vmul.f32 0.01, %v2670_v5  ;;  %v2671_v57 = vadd.f32 %v4413_v47, %v2608_v23 }
 0x162   : > { %v3530_v60 = vpop.f32.mrb[60].mxu0  ;;  %vm2724_vm5 = vcmp.ge.f32.partialorder %v2668_v29, 0.0  ;;  %v2780_v58 = vmul.f32 0.01, %v2668_v29  ;;  %v2669_v61 = vadd.f32 %v4413_v47, %v2606_v53  ;;  %v3590_v63 = vpop.f32.mrb[60].mxu1 }
 0x163   : > { %v1805_v62 = vpop.f32.mrb[61].mxu0  ;;  %v2838_v0 = vsel %vm2726_vm3, %v2670_v5, %v2782_v54  ;;  %vm2727_vm6 = vcmp.ge.f32.partialorder %v2671_v57, 0.0  ;;  %v2783_v8 = vmul.f32 0.01, %v2671_v57  ;;  %v2555_v11 = vmax.f32 %v3530_v60, %v3590_v63  ;;  %v2342_v13 = vpop.f32.mrb[61].mxu1 }
 0x164   : > { %v3531_v17 = vpop.f32.mrb[62].mxu0  ;;  %2895 = vst.msk [vmem:[%s4433_s23 + $0x10] sm:$0xff] %vm2892_vm4, %v2838_v0  ;;  %v2836_v20 = vsel %vm2724_vm5, %v2668_v29, %v2780_v58  ;;  %vm2725_vm7 = vcmp.ge.f32.partialorder %v2669_v61, 0.0  ;;  %v2781_v25 = vmul.f32 0.01, %v2669_v61  ;;  %v2553_v32 = vmax.f32 %v1805_v62, %v2342_v13  ;;  %v3591_v49 = vpop.f32.mrb[62].mxu1 }
 0x165   : > { %v1808_v59 = vpop.f32.mrb[63].mxu0  ;;  %2893 = vst.msk [vmem:[%s4433_s23] sm:$0xff] %vm2892_vm4, %v2836_v20  ;;  %v2839_v56 = vsel %vm2727_vm6, %v2671_v57, %v2783_v8  ;;  %v4901_v5 = vmax.f32 %v4098_v2, %v4100_v3  ;;  %v2556_v23 = vmax.f32 %v3531_v17, %v3591_v49  ;;  %v2345_v52 = vpop.f32.mrb[63].mxu1  ;;  %v4902_v29 = vmax.f32 %v4102_v4, %v4106_v6 }
 0x166   : > { %2896 = vst.msk [vmem:[%s4433_s23 + $0x18] sm:$0xff] %vm2892_vm4, %v2839_v56  ;;  %v2837_v53 = vsel %vm2725_vm7, %v2669_v61, %v2781_v25  ;;  %v2554_v60 = vmax.f32 %v1808_v59, %v2345_v52  ;;  %v4903_v57 = vmax.f32 %v4108_v7, %v4112_v9  ;;  %v4904_v3 = vmax.f32 %v4114_v10, %v4118_v12 }
 0x167   : > { %v2611_v1 = vmax.f32 %v4901_v5, %v2555_v11  ;;  %v2609_v54 = vmax.f32 %v4902_v29, %v2553_v32  ;;  %2894 = vst.msk [vmem:[%s4433_s23 + $0x8] sm:$0xff] %vm2892_vm4, %v2837_v53  ;;  %v4905_v5 = vmax.f32 %v4122_v14, %v4124_v15  ;;  %v4906_v29 = vmax.f32 %v4126_v16, %v4130_v18 }
 0x168   : > { %v2612_v63 = vmax.f32 %v4903_v57, %v2556_v23  ;;  %v2610_v62 = vmax.f32 %v4904_v3, %v2554_v60  ;;  %v4907_v57 = vmax.f32 %v4132_v19, %v4136_v21  ;;  %v4908_v15 = vmax.f32 %v4138_v22, %v4142_v24 }
 0x169   : > { %v2674_v58 = vadd.f32 %v4413_v47, %v2611_v1  ;;  %v2672_v2 = vadd.f32 %v4413_v47, %v2609_v54 }
 0x16a   : > { %v2675_v4 = vadd.f32 %v4413_v47, %v2612_v63  ;;  %v3534_v6 = vpop.f32.mrb[64].mxu0  ;;  %v2673_v8 = vadd.f32 %v4413_v47, %v2610_v62  ;;  %v3594_v11 = vpop.f32.mrb[64].mxu1 }
 0x16b   : > { %vm2730_vm8 = vcmp.ge.f32.partialorder %v2674_v58, 0.0  ;;  %v2786_v61 = vmul.f32 0.01, %v2674_v58  ;;  %vm2728_vm9 = vcmp.ge.f32.partialorder %v2672_v2, 0.0  ;;  %v2784_v0 = vmul.f32 0.01, %v2672_v2 }
 0x16c   : > { %v1821_v7 = vpop.f32.mrb[65].mxu0  ;;  %vm2731_vm10 = vcmp.ge.f32.partialorder %v2675_v4, 0.0  ;;  %v2787_v13 = vmul.f32 0.01, %v2675_v4  ;;  %v2559_v17 = vmax.f32 %v3534_v6, %v3594_v11  ;;  %v2358_v10 = vpop.f32.mrb[65].mxu1  ;;  %vm2729_vm11 = vcmp.ge.f32.partialorder %v2673_v8, 0.0 }
 0x16d   : > { %v2842_v9 = vsel %vm2730_vm8, %v2674_v58, %v2786_v61  ;;  %v3535_v12 = vpop.f32.mrb[66].mxu0  ;;  %v2840_v20 = vsel %vm2728_vm9, %v2672_v2, %v2784_v0  ;;  %v2785_v25 = vmul.f32 0.01, %v2673_v8  ;;  %v2557_v32 = vmax.f32 %v1821_v7, %v2358_v10  ;;  %v3595_v49 = vpop.f32.mrb[66].mxu1 }
 0x16e   : > { %2899 = vst.msk [vmem:[%s4433_s23 + $0x30] sm:$0xff] %vm2892_vm4, %v2842_v9  ;;  %v1824_v59 = vpop.f32.mrb[67].mxu0  ;;  %2897 = vst.msk [vmem:[%s4433_s23 + $0x20] sm:$0xff] %vm2892_vm4, %v2840_v20  ;;  %v2843_v56 = vsel %vm2731_vm10, %v2675_v4, %v2787_v13  ;;  %v2615_v1 = vmax.f32 %v4905_v5, %v2559_v17  ;;  %v2560_v23 = vmax.f32 %v3535_v12, %v3595_v49  ;;  %v2361_v52 = vpop.f32.mrb[67].mxu1 }
 0x16f   : > { %2900 = vst.msk [vmem:[%s4433_s23 + $0x38] sm:$0xff] %vm2892_vm4, %v2843_v56  ;;  %v2841_v53 = vsel %vm2729_vm11, %v2673_v8, %v2785_v25  ;;  %v2613_v54 = vmax.f32 %v4906_v29, %v2557_v32  ;;  %v2558_v60 = vmax.f32 %v1824_v59, %v2361_v52  ;;  %v4909_v10 = vmax.f32 %v4146_v26, %v4148_v27 }
 0x170   : > { %2898 = vst.msk [vmem:[%s4433_s23 + $0x28] sm:$0xff] %vm2892_vm4, %v2841_v53  ;;  %v2678_v58 = vadd.f32 %v4413_v47, %v2615_v1  ;;  %v2616_v63 = vmax.f32 %v4907_v57, %v2560_v23  ;;  %v4910_v49 = vmax.f32 %v4150_v28, %v4154_v30  ;;  %v4911_v1 = vmax.f32 %v4156_v31, %v4160_v33 }
 0x171   : > { %v2676_v14 = vadd.f32 %v4413_v47, %v2613_v54  ;;  %v2614_v2 = vmax.f32 %v4908_v15, %v2558_v60  ;;  %v4912_v27 = vmax.f32 %v4162_v34, %v4166_v36 }
 0x172   : > { %vm2734_vm12 = vcmp.ge.f32.partialorder %v2678_v58, 0.0  ;;  %v2790_v3 = vmul.f32 0.01, %v2678_v58  ;;  %v2679_v16 = vadd.f32 %v4413_v47, %v2616_v63  ;;  %v3538_v18 = vpop.f32.mrb[68].mxu0  ;;  %v3598_v4 = vpop.f32.mrb[68].mxu1 }
 0x173   : > { %vm2732_vm13 = vcmp.ge.f32.partialorder %v2676_v14, 0.0  ;;  %v2788_v62 = vmul.f32 0.01, %v2676_v14  ;;  %v2677_v61 = vadd.f32 %v4413_v47, %v2614_v2  ;;  %v1837_v19 = vpop.f32.mrb[69].mxu0  ;;  %v2563_v0 = vmax.f32 %v3538_v18, %v3598_v4  ;;  %v2374_v22 = vpop.f32.mrb[69].mxu1 }
 0x174   : > { %v2846_v21 = vsel %vm2734_vm12, %v2678_v58, %v2790_v3  ;;  %vm2735_vm14 = vcmp.ge.f32.partialorder %v2679_v16, 0.0  ;;  %v2791_v6 = vmul.f32 0.01, %v2679_v16  ;;  %v3539_v24 = vpop.f32.mrb[70].mxu0  ;;  %v2561_v7 = vmax.f32 %v1837_v19, %v2374_v22  ;;  %v3599_v9 = vpop.f32.mrb[70].mxu1 }
 0x175   : > { %2903 = vst.msk [vmem:[%s4433_s23 + $0x50] sm:$0xff] %vm2892_vm4, %v2846_v21  ;;  %v2844_v8 = vsel %vm2732_vm13, %v2676_v14, %v2788_v62  ;;  %vm2733_vm15 = vcmp.ge.f32.partialorder %v2677_v61, 0.0  ;;  %v2789_v11 = vmul.f32 0.01, %v2677_v61  ;;  %v1840_v13 = vpop.f32.mrb[71].mxu0  ;;  %v2619_v12 = vmax.f32 %v4909_v10, %v2563_v0  ;;  %v2377_v25 = vpop.f32.mrb[71].mxu1 }
 0x176   : > { %2901 = vst.msk [vmem:[%s4433_s23 + $0x40] sm:$0xff] %vm2892_vm4, %v2844_v8  ;;  %v2847_v17 = vsel %vm2735_vm14, %v2679_v16, %v2791_v6  ;;  %v2564_v20 = vmax.f32 %v3539_v24, %v3599_v9  ;;  %v2617_v59 = vmax.f32 %v4910_v49, %v2561_v7  ;;  %v2562_v56 = vmax.f32 %v1840_v13, %v2377_v25 }
 0x177   : > { %2904 = vst.msk [vmem:[%s4433_s23 + $0x58] sm:$0xff] %vm2892_vm4, %v2847_v17  ;;  %v2845_v32 = vsel %vm2733_vm15, %v2677_v61, %v2789_v11  ;;  %v2682_v5 = vadd.f32 %v4413_v47, %v2619_v12  ;;  %v4913_v18 = vmax.f32 %v4170_v38, %v4172_v39  ;;  %v4914_v21 = vmax.f32 %v4174_v40, %v4178_v42 }
 0x178   : > { %2902 = vst.msk [vmem:[%s4433_s23 + $0x48] sm:$0xff] %vm2892_vm4, %v2845_v32  ;;  %v2620_v23 = vmax.f32 %v4911_v1, %v2564_v20  ;;  %v2680_v26 = vadd.f32 %v4413_v47, %v2617_v59  ;;  %v2618_v52 = vmax.f32 %v4912_v27, %v2562_v56  ;;  %v4915_v24 = vmax.f32 %v4180_v43, %v4184_v45 }
 0x179   : > { %vm2738_vm0 = vcmp.ge.f32.partialorder %v2682_v5, 0.0  ;;  %v2794_v53 = vmul.f32 0.01, %v2682_v5  ;;  %v4916_v39 = vmax.f32 %v4186_v46, %v4190_v48 }
 0x17a   : > { %v2683_v28 = vadd.f32 %v4413_v47, %v2620_v23  ;;  %v3542_v30 = vpop.f32.mrb[72].mxu0  ;;  %vm2736_vm1 = vcmp.ge.f32.partialorder %v2680_v26, 0.0  ;;  %v2792_v29 = vmul.f32 0.01, %v2680_v26  ;;  %v2681_v54 = vadd.f32 %v4413_v47, %v2618_v52  ;;  %v3602_v60 = vpop.f32.mrb[72].mxu1 }
 0x17b   : > { %v1853_v31 = vpop.f32.mrb[73].mxu0  ;;  %v2850_v33 = vsel %vm2738_vm0, %v2682_v5, %v2794_v53  ;;  %v2567_v57 = vmax.f32 %v3542_v30, %v3602_v60  ;;  %v2390_v34 = vpop.f32.mrb[73].mxu1  ;;  %v4917_v5 = vmax.f32 %v4194_v50, %v4196_v51  ;;  %v4918_v52 = vmax.f32 %v4198_v55, %v4202_v44  ;;  %v4920_v51 = vld [vmem:[#allocation2_spill] sm:$0xff] }
 0x17c   : > { %vm2739_vm2 = vcmp.ge.f32.partialorder %v2683_v28, 0.0  ;;  %v2795_v58 = vmul.f32 0.01, %v2683_v28  ;;  %v3543_v36 = vpop.f32.mrb[74].mxu0  ;;  %2907 = vst.msk [vmem:[%s4433_s23 + $0x70] sm:$0xff] %vm2892_vm4, %v2850_v33  ;;  %v2848_v63 = vsel %vm2736_vm1, %v2680_v26, %v2792_v29  ;;  %vm2737_vm3 = vcmp.ge.f32.partialorder %v2681_v54, 0.0 }
 0x17d   : > { %v2793_v14 = vmul.f32 0.01, %v2681_v54  ;;  %v2565_v15 = vmax.f32 %v1853_v31, %v2390_v34  ;;  %v3603_v2 = vpop.f32.mrb[74].mxu1  ;;  %v1856_v3 = vpop.f32.mrb[75].mxu0  ;;  %2905 = vst.msk [vmem:[%s4433_s23 + $0x60] sm:$0xff] %vm2892_vm4, %v2848_v63  ;;  %v2623_v62 = vmax.f32 %v4913_v18, %v2567_v57  ;;  %v4919_v29 = vmax.f32 %v4204_v41, %v4208_v37 }
 0x17e   : > { %v2851_v16 = vsel %vm2739_vm2, %v2683_v28, %v2795_v58  ;;  %v2568_v61 = vmax.f32 %v3543_v36, %v3603_v2  ;;  %v2393_v4 = vpop.f32.mrb[75].mxu1  ;;  %v4921_v60 = vmax.f32 %v4210_v35, %v4920_v51 }
 0x17f   : > { %2908 = vst.msk [vmem:[%s4433_s23 + $0x78] sm:$0xff] %vm2892_vm4, %v2851_v16  ;;  %v2849_v19 = vsel %vm2737_vm3, %v2681_v54, %v2793_v14  ;;  %v2621_v6 = vmax.f32 %v4914_v21, %v2565_v15  ;;  %v2566_v0 = vmax.f32 %v1856_v3, %v2393_v4  ;;  %v2686_v22 = vadd.f32 %v4413_v47, %v2623_v62  ;;  %v4923_v4 = vld [vmem:[#allocation4_spill] sm:$0xff] }
 0x180   : > { %2906 = vst.msk [vmem:[%s4433_s23 + $0x68] sm:$0xff] %vm2892_vm4, %v2849_v19  ;;  %v2624_v8 = vmax.f32 %v4915_v24, %v2568_v61  ;;  %v4922_v61 = vld [vmem:[#allocation3_spill] sm:$0xff]  ;;  %v4925_v24 = vld [vmem:[#allocation5_spill] sm:$0xff] }
 0x181   : > { %v2684_v38 = vadd.f32 %v4413_v47, %v2621_v6  ;;  %v2622_v11 = vmax.f32 %v4916_v39, %v2566_v0  ;;  %vm2742_vm5 = vcmp.ge.f32.partialorder %v2686_v22, 0.0  ;;  %v2798_v7 = vmul.f32 0.01, %v2686_v22 }
 0x182   : > { %v2687_v40 = vadd.f32 %v4413_v47, %v2624_v8  ;;  %v3546_v42 = vpop.f32.mrb[76].mxu0  ;;  %v3606_v17 = vpop.f32.mrb[76].mxu1  ;;  %v4924_v19 = vmax.f32 %v4922_v61, %v4923_v4  ;;  %v4926_v8 = vld [vmem:[#allocation6_spill] sm:$0xff] }
 0x183   : > { %vm2740_vm6 = vcmp.ge.f32.partialorder %v2684_v38, 0.0  ;;  %v2796_v9 = vmul.f32 0.01, %v2684_v38  ;;  %v2685_v13 = vadd.f32 %v4413_v47, %v2622_v11  ;;  %v1869_v43 = vpop.f32.mrb[77].mxu0  ;;  %v2854_v45 = vsel %vm2742_vm5, %v2686_v22, %v2798_v7  ;;  %v2406_v46 = vpop.f32.mrb[77].mxu1 }
 0x184   : > { %vm2743_vm7 = vcmp.ge.f32.partialorder %v2687_v40, 0.0  ;;  %v2799_v10 = vmul.f32 0.01, %v2687_v40  ;;  %v2571_v12 = vmax.f32 %v3546_v42, %v3606_v17  ;;  %v3547_v48 = vpop.f32.mrb[78].mxu0  ;;  %2911 = vst.msk [vmem:[%s4433_s23 + $0x90] sm:$0xff] %vm2892_vm4, %v2854_v45  ;;  %v2569_v32 = vmax.f32 %v1869_v43, %v2406_v46  ;;  %v3607_v49 = vpop.f32.mrb[78].mxu1 }
 0x185   : > { %v2852_v20 = vsel %vm2740_vm6, %v2684_v38, %v2796_v9  ;;  %vm2741_vm8 = vcmp.ge.f32.partialorder %v2685_v13, 0.0  ;;  %v2797_v25 = vmul.f32 0.01, %v2685_v13  ;;  %v1872_v59 = vpop.f32.mrb[79].mxu0  ;;  %v2572_v23 = vmax.f32 %v3547_v48, %v3607_v49  ;;  %v2409_v26 = vpop.f32.mrb[79].mxu1  ;;  %v4929_v42 = vld [vmem:[#allocation8_spill] sm:$0xff] }
 0x186   : > { %2909 = vst.msk [vmem:[%s4433_s23 + $0x80] sm:$0xff] %vm2892_vm4, %v2852_v20  ;;  %v2855_v56 = vsel %vm2743_vm7, %v2687_v40, %v2799_v10  ;;  %v2627_v1 = vmax.f32 %v4917_v5, %v2571_v12  ;;  %v2625_v53 = vmax.f32 %v4918_v52, %v2569_v32  ;;  %v2570_v28 = vmax.f32 %v1872_v59, %v2409_v26  ;;  %v4928_v40 = vld [vmem:[#allocation7_spill] sm:$0xff]  ;;  %v4931_v43 = vld [vmem:[#allocation9_spill] sm:$0xff]  ;;  %v4932_v45 = vld [vmem:[#allocation10_spill] sm:$0xff] }
 0x187   : > { %2912 = vst.msk [vmem:[%s4433_s23 + $0x98] sm:$0xff] %vm2892_vm4, %v2855_v56  ;;  %v2853_v27 = vsel %vm2741_vm8, %v2685_v13, %v2797_v25  ;;  %v2628_v54 = vmax.f32 %v4919_v29, %v2572_v23  ;;  %v4927_v38 = vmax.f32 %v4925_v24, %v4926_v8  ;;  %v4930_v9 = vmax.f32 %v4928_v40, %v4929_v42 }
 0x188   : > { %2910 = vst.msk [vmem:[%s4433_s23 + $0x88] sm:$0xff] %vm2892_vm4, %v2853_v27  ;;  %v2690_v30 = vadd.f32 %v4413_v47, %v2627_v1  ;;  %v2688_v50 = vadd.f32 %v4413_v47, %v2625_v53  ;;  %v2626_v31 = vmax.f32 %v4921_v60, %v2570_v28  ;;  %v4933_v10 = vmax.f32 %v4931_v43, %v4932_v45  ;;  %v4947_v43 = vld [vmem:[#allocation20_spill] sm:$0xff] }
 0x189   : > { %v2691_v44 = vadd.f32 %v4413_v47, %v2628_v54  ;;  %v4934_v54 = vld [vmem:[#allocation11_spill] sm:$0xff] }
 0x18a   : > { %vm2746_vm9 = vcmp.ge.f32.partialorder %v2690_v30, 0.0  ;;  %v2802_v33 = vmul.f32 0.01, %v2690_v30  ;;  %v3550_v55 = vpop.f32.mrb[80].mxu0  ;;  %vm2744_vm10 = vcmp.ge.f32.partialorder %v2688_v50, 0.0  ;;  %v2689_v57 = vadd.f32 %v4413_v47, %v2626_v31  ;;  %v3610_v34 = vpop.f32.mrb[80].mxu1 }
 0x18b   : > { %v2800_v58 = vmul.f32 0.01, %v2688_v50  ;;  %v1885_v37 = vpop.f32.mrb[81].mxu0  ;;  %vm2747_vm11 = vcmp.ge.f32.partialorder %v2691_v44, 0.0  ;;  %v2803_v36 = vmul.f32 0.01, %v2691_v44  ;;  %v2575_v63 = vmax.f32 %v3550_v55, %v3610_v34 }
 0x18c   : > { %v2858_v41 = vsel %vm2746_vm9, %v2690_v30, %v2802_v33  ;;  %v2422_v35 = vpop.f32.mrb[81].mxu1  ;;  %v3551_v14 = vpop.f32.mrb[82].mxu0  ;;  %vm2745_vm12 = vcmp.ge.f32.partialorder %v2689_v57, 0.0  ;;  %v2801_v2 = vmul.f32 0.01, %v2689_v57  ;;  %v4937_v55 = vld [vmem:[#allocation13_spill] sm:$0xff] }
 0x18d   : > { %2915 = vst.msk [vmem:[%s4433_s23 + $0xb0] sm:$0xff] %vm2892_vm4, %v2858_v41  ;;  %v2856_v15 = vsel %vm2744_vm10, %v2688_v50, %v2800_v58  ;;  %v2573_v3 = vmax.f32 %v1885_v37, %v2422_v35  ;;  %v3611_v16 = vpop.f32.mrb[82].mxu1  ;;  %v1888_v18 = vpop.f32.mrb[83].mxu0  ;;  %v2859_v62 = vsel %vm2747_vm11, %v2691_v44, %v2803_v36  ;;  %v2631_v21 = vmax.f32 %v4924_v19, %v2575_v63  ;;  %v4935_v50 = vld [vmem:[#allocation12_spill] sm:$0xff]  ;;  %v4938_v58 = vld [vmem:[#allocation14_spill] sm:$0xff]  ;;  %v4940_v36 = vld [vmem:[#allocation15_spill] sm:$0xff] }
 0x18e   : > { %2913 = vst.msk [vmem:[%s4433_s23 + $0xa0] sm:$0xff] %vm2892_vm4, %v2856_v15  ;;  %v2576_v6 = vmax.f32 %v3551_v14, %v3611_v16  ;;  %v2425_v0 = vpop.f32.mrb[83].mxu1  ;;  %2916 = vst.msk [vmem:[%s4433_s23 + $0xb8] sm:$0xff] %vm2892_vm4, %v2859_v62  ;;  %v2857_v22 = vsel %vm2745_vm12, %v2689_v57, %v2801_v2  ;;  %v4936_v51 = vmax.f32 %v4934_v54, %v4935_v50  ;;  %v4941_v63 = vld [vmem:[#allocation16_spill] sm:$0xff]  ;;  %v4943_v2 = vld [vmem:[#allocation17_spill] sm:$0xff] }
 0x18f   : > { %v2629_v39 = vmax.f32 %v4927_v38, %v2573_v3  ;;  %v2574_v11 = vmax.f32 %v1888_v18, %v2425_v0  ;;  %2914 = vst.msk [vmem:[%s4433_s23 + $0xa8] sm:$0xff] %vm2892_vm4, %v2857_v22  ;;  %v2694_v7 = vadd.f32 %v4413_v47, %v2631_v21  ;;  %v4939_v57 = vmax.f32 %v4937_v55, %v4938_v58  ;;  %v4944_v3 = vld [vmem:[#allocation18_spill] sm:$0xff] }
 0x190   : > { %v2632_v13 = vmax.f32 %v4930_v9, %v2576_v6  ;;  %v4942_v35 = vmax.f32 %v4940_v36, %v4941_v63  ;;  %v4945_v16 = vmax.f32 %v4943_v2, %v4944_v3  ;;  %v4959_v2 = vld [vmem:[#allocation28_spill] sm:$0xff] }
 0x191   : > { %v2692_v17 = vadd.f32 %v4413_v47, %v2629_v39  ;;  %v2630_v12 = vmax.f32 %v4933_v10, %v2574_v11  ;;  %vm2750_vm13 = vcmp.ge.f32.partialorder %v2694_v7, 0.0  ;;  %v2806_v46 = vmul.f32 0.01, %v2694_v7 }
 0x192   : > { %v2695_v48 = vadd.f32 %v4413_v47, %v2632_v13  ;;  %v3554_v20 = vpop.f32.mrb[84].mxu0  ;;  %v3614_v49 = vpop.f32.mrb[84].mxu1 }
 0x193   : > { %vm2748_vm14 = vcmp.ge.f32.partialorder %v2692_v17, 0.0  ;;  %v2804_v25 = vmul.f32 0.01, %v2692_v17  ;;  %v2693_v32 = vadd.f32 %v4413_v47, %v2630_v12  ;;  %v1901_v59 = vpop.f32.mrb[85].mxu0  ;;  %v2862_v56 = vsel %vm2750_vm13, %v2694_v7, %v2806_v46  ;;  %v2438_v23 = vpop.f32.mrb[85].mxu1 }
 0x194   : > { %vm2751_vm15 = vcmp.ge.f32.partialorder %v2695_v48, 0.0  ;;  %v2807_v5 = vmul.f32 0.01, %v2695_v48  ;;  %v2579_v1 = vmax.f32 %v3554_v20, %v3614_v49  ;;  %v3555_v26 = vpop.f32.mrb[86].mxu0  ;;  %2919 = vst.msk [vmem:[%s4433_s23 + $0xd0] sm:$0xff] %vm2892_vm4, %v2862_v56  ;;  %v2577_v53 = vmax.f32 %v1901_v59, %v2438_v23  ;;  %v3615_v28 = vpop.f32.mrb[86].mxu1 }
 0x195   : > { %v2860_v27 = vsel %vm2748_vm14, %v2692_v17, %v2804_v25  ;;  %vm2749_vm0 = vcmp.ge.f32.partialorder %v2693_v32, 0.0  ;;  %v2805_v52 = vmul.f32 0.01, %v2693_v32  ;;  %v1904_v30 = vpop.f32.mrb[87].mxu0  ;;  %v2580_v31 = vmax.f32 %v3555_v26, %v3615_v28  ;;  %v2441_v33 = vpop.f32.mrb[87].mxu1  ;;  %v4946_v17 = vld [vmem:[#allocation19_spill] sm:$0xff] }
 0x196   : > { %2917 = vst.msk [vmem:[%s4433_s23 + $0xc0] sm:$0xff] %vm2892_vm4, %v2860_v27  ;;  %v2863_v29 = vsel %vm2751_vm15, %v2695_v48, %v2807_v5  ;;  %v2635_v60 = vmax.f32 %v4936_v51, %v2579_v1  ;;  %v2633_v34 = vmax.f32 %v4939_v57, %v2577_v53  ;;  %v2578_v37 = vmax.f32 %v1904_v30, %v2441_v33  ;;  %v4949_v20 = vld [vmem:[#allocation21_spill] sm:$0xff]  ;;  %v4950_v25 = vld [vmem:[#allocation22_spill] sm:$0xff]  ;;  %v4952_v5 = vld [vmem:[#allocation23_spill] sm:$0xff] }
 0x197   : > { %2920 = vst.msk [vmem:[%s4433_s23 + $0xd8] sm:$0xff] %vm2892_vm4, %v2863_v29  ;;  %v2861_v44 = vsel %vm2749_vm0, %v2693_v32, %v2805_v52  ;;  %v2636_v14 = vmax.f32 %v4942_v35, %v2580_v31  ;;  %v4948_v45 = vmax.f32 %v4946_v17, %v4947_v43  ;;  %v4951_v32 = vmax.f32 %v4949_v20, %v4950_v25  ;;  %v4953_v1 = vld [vmem:[#allocation24_spill] sm:$0xff]  ;;  %v4955_v52 = vld [vmem:[#allocation25_spill] sm:$0xff]  ;;  %v4956_v53 = vld [vmem:[#allocation26_spill] sm:$0xff] }
 0x198   : > { %2918 = vst.msk [vmem:[%s4433_s23 + $0xc8] sm:$0xff] %vm2892_vm4, %v2861_v44  ;;  %v2698_v41 = vadd.f32 %v4413_v47, %v2635_v60  ;;  %v2696_v15 = vadd.f32 %v4413_v47, %v2633_v34  ;;  %v2634_v18 = vmax.f32 %v4945_v16, %v2578_v37  ;;  %v4954_v23 = vmax.f32 %v4952_v5, %v4953_v1 }
 0x199   : > { %v2699_v61 = vadd.f32 %v4413_v47, %v2636_v14  ;;  %v4957_v28 = vmax.f32 %v4955_v52, %v4956_v53  ;;  %v4971_v52 = vld [vmem:[#allocation36_spill] sm:$0xff] }
 0x19a   : > { %vm2754_vm1 = vcmp.ge.f32.partialorder %v2698_v41, 0.0  ;;  %v2810_v62 = vmul.f32 0.01, %v2698_v41  ;;  %v3558_v4 = vpop.f32.mrb[88].mxu0  ;;  %vm2752_vm2 = vcmp.ge.f32.partialorder %v2696_v15, 0.0  ;;  %v2697_v21 = vadd.f32 %v4413_v47, %v2634_v18  ;;  %v3618_v6 = vpop.f32.mrb[88].mxu1 }
 0x19b   : > { %v2808_v19 = vmul.f32 0.01, %v2696_v15  ;;  %v1917_v0 = vpop.f32.mrb[89].mxu0  ;;  %vm2755_vm3 = vcmp.ge.f32.partialorder %v2699_v61, 0.0  ;;  %v2811_v24 = vmul.f32 0.01, %v2699_v61  ;;  %v2583_v8 = vmax.f32 %v3558_v4, %v3618_v6 }
 0x19c   : > { %v2866_v22 = vsel %vm2754_vm1, %v2698_v41, %v2810_v62  ;;  %v2454_v38 = vpop.f32.mrb[89].mxu1  ;;  %v3559_v39 = vpop.f32.mrb[90].mxu0  ;;  %vm2753_vm5 = vcmp.ge.f32.partialorder %v2697_v21, 0.0  ;;  %v2809_v7 = vmul.f32 0.01, %v2697_v21  ;;  %v4961_v4 = vld [vmem:[#allocation29_spill] sm:$0xff] }
 0x19d   : > { %2923 = vst.msk [vmem:[%s4433_s23 + $0xf0] sm:$0xff] %vm2892_vm4, %v2866_v22  ;;  %v2864_v11 = vsel %vm2752_vm2, %v2696_v15, %v2808_v19  ;;  %v2581_v40 = vmax.f32 %v1917_v0, %v2454_v38  ;;  %v3619_v42 = vpop.f32.mrb[90].mxu1  ;;  %v1920_v9 = vpop.f32.mrb[91].mxu0  ;;  %v2867_v13 = vsel %vm2755_vm3, %v2699_v61, %v2811_v24  ;;  %v2639_v10 = vmax.f32 %v4948_v45, %v2583_v8  ;;  %v4958_v15 = vld [vmem:[#allocation27_spill] sm:$0xff]  ;;  %v4962_v19 = vld [vmem:[#allocation30_spill] sm:$0xff]  ;;  %v4965_v8 = vld [vmem:[#allocation32_spill] sm:$0xff] }
 0x19e   : > { %2921 = vst.msk [vmem:[%s4433_s23 + $0xe0] sm:$0xff] %vm2892_vm4, %v2864_v11  ;;  %v2584_v12 = vmax.f32 %v3559_v39, %v3619_v42  ;;  %v2457_v46 = vpop.f32.mrb[91].mxu1  ;;  %2924 = vst.msk [vmem:[%s4433_s23 + $0xf8] sm:$0xff] %vm2892_vm4, %v2867_v13  ;;  %v2865_v48 = vsel %vm2753_vm5, %v2697_v21, %v2809_v7  ;;  %v4960_v3 = vmax.f32 %v4958_v15, %v4959_v2  ;;  %v4964_v24 = vld [vmem:[#allocation31_spill] sm:$0xff]  ;;  %v4967_v7 = vld [vmem:[#allocation33_spill] sm:$0xff] }
 0x19f   : > { %v2637_v49 = vmax.f32 %v4951_v32, %v2581_v40  ;;  %v2582_v59 = vmax.f32 %v1920_v9, %v2457_v46  ;;  %2922 = vst.msk [vmem:[%s4433_s23 + $0xe8] sm:$0xff] %vm2892_vm4, %v2865_v48  ;;  %v2702_v56 = vadd.f32 %v4413_v47, %v2639_v10  ;;  %v4963_v21 = vmax.f32 %v4961_v4, %v4962_v19  ;;  %v4968_v40 = vld [vmem:[#allocation34_spill] sm:$0xff] }
 0x1a0   : > { %v2640_v26 = vmax.f32 %v4954_v23, %v2584_v12  ;;  %v4966_v38 = vmax.f32 %v4964_v24, %v4965_v8  ;;  %v4969_v42 = vmax.f32 %v4967_v7, %v4968_v40  ;;  %v4983_v7 = vld [vmem:[#allocation44_spill] sm:$0xff] }
 0x1a1   : > { %v2700_v27 = vadd.f32 %v4413_v47, %v2637_v49  ;;  %v2638_v30 = vmax.f32 %v4957_v28, %v2582_v59  ;;  %vm2758_vm6 = vcmp.ge.f32.partialorder %v2702_v56, 0.0  ;;  %v2814_v29 = vmul.f32 0.01, %v2702_v56 }
 0x1a2   : > { %v2703_v54 = vadd.f32 %v4413_v47, %v2640_v26  ;;  %v3562_v50 = vpop.f32.mrb[92].mxu0  ;;  %v3622_v31 = vpop.f32.mrb[92].mxu1 }
 0x1a3   : > { %vm2756_vm7 = vcmp.ge.f32.partialorder %v2700_v27, 0.0  ;;  %v2812_v51 = vmul.f32 0.01, %v2700_v27  ;;  %v2701_v60 = vadd.f32 %v4413_v47, %v2638_v30  ;;  %v1933_v33 = vpop.f32.mrb[93].mxu0  ;;  %v2870_v44 = vsel %vm2758_vm6, %v2702_v56, %v2814_v29  ;;  %v2470_v57 = vpop.f32.mrb[93].mxu1 }
 0x1a4   : > { %vm2759_vm8 = vcmp.ge.f32.partialorder %v2703_v54, 0.0  ;;  %v2815_v55 = vmul.f32 0.01, %v2703_v54  ;;  %v2587_v58 = vmax.f32 %v3562_v50, %v3622_v31  ;;  %v3563_v34 = vpop.f32.mrb[94].mxu0  ;;  %2927 = vst.msk [vmem:[%s4433_s23 + $0x110] sm:$0xff] %vm2892_vm4, %v2870_v44  ;;  %v2585_v36 = vmax.f32 %v1933_v33, %v2470_v57  ;;  %v3623_v63 = vpop.f32.mrb[94].mxu1 }
 0x1a5   : > { %v2868_v37 = vsel %vm2756_vm7, %v2700_v27, %v2812_v51  ;;  %vm2757_vm9 = vcmp.ge.f32.partialorder %v2701_v60, 0.0  ;;  %v2813_v41 = vmul.f32 0.01, %v2701_v60  ;;  %v1936_v35 = vpop.f32.mrb[95].mxu0  ;;  %v2588_v18 = vmax.f32 %v3563_v34, %v3623_v63  ;;  %v2473_v62 = vpop.f32.mrb[95].mxu1  ;;  %v4970_v27 = vld [vmem:[#allocation35_spill] sm:$0xff] }
 0x1a6   : > { %2925 = vst.msk [vmem:[%s4433_s23 + $0x100] sm:$0xff] %vm2892_vm4, %v2868_v37  ;;  %v2871_v14 = vsel %vm2759_vm8, %v2703_v54, %v2815_v55  ;;  %v2643_v16 = vmax.f32 %v4960_v3, %v2587_v58  ;;  %v2641_v6 = vmax.f32 %v4963_v21, %v2585_v36  ;;  %v2586_v0 = vmax.f32 %v1936_v35, %v2473_v62  ;;  %v4973_v50 = vld [vmem:[#allocation37_spill] sm:$0xff]  ;;  %v4974_v51 = vld [vmem:[#allocation38_spill] sm:$0xff]  ;;  %v4976_v55 = vld [vmem:[#allocation39_spill] sm:$0xff] }
 0x1a7   : > { %2928 = vst.msk [vmem:[%s4433_s23 + $0x118] sm:$0xff] %vm2892_vm4, %v2871_v14  ;;  %v2869_v61 = vsel %vm2757_vm9, %v2701_v60, %v2813_v41  ;;  %v2644_v39 = vmax.f32 %v4966_v38, %v2588_v18  ;;  %v4972_v53 = vmax.f32 %v4970_v27, %v4971_v52  ;;  %v4975_v60 = vmax.f32 %v4973_v50, %v4974_v51  ;;  %v4977_v58 = vld [vmem:[#allocation40_spill] sm:$0xff]  ;;  %v4979_v41 = vld [vmem:[#allocation41_spill] sm:$0xff]  ;;  %v4980_v36 = vld [vmem:[#allocation42_spill] sm:$0xff] }
 0x1a8   : > { %2926 = vst.msk [vmem:[%s4433_s23 + $0x108] sm:$0xff] %vm2892_vm4, %v2869_v61  ;;  %v2706_v22 = vadd.f32 %v4413_v47, %v2643_v16  ;;  %v2704_v11 = vadd.f32 %v4413_v47, %v2641_v6  ;;  %v2642_v9 = vmax.f32 %v4969_v42, %v2586_v0  ;;  %v4978_v57 = vmax.f32 %v4976_v55, %v4977_v58 }
 0x1a9   : > { %v2707_v17 = vadd.f32 %v4413_v47, %v2644_v39  ;;  %v4981_v63 = vmax.f32 %v4979_v41, %v4980_v36  ;;  %v4995_v41 = vld [vmem:[#allocation52_spill] sm:$0xff] }
 0x1aa   : > { %vm2762_vm10 = vcmp.ge.f32.partialorder %v2706_v22, 0.0  ;;  %v2818_v13 = vmul.f32 0.01, %v2706_v22  ;;  %v3566_v43 = vpop.f32.mrb[96].mxu0  ;;  %vm2760_vm11 = vcmp.ge.f32.partialorder %v2704_v11, 0.0  ;;  %v2705_v10 = vadd.f32 %v4413_v47, %v2642_v9  ;;  %v3626_v12 = vpop.f32.mrb[96].mxu1 }
 0x1ab   : > { %v2816_v45 = vmul.f32 0.01, %v2704_v11  ;;  %v1949_v46 = vpop.f32.mrb[97].mxu0  ;;  %vm2763_vm12 = vcmp.ge.f32.partialorder %v2707_v17, 0.0  ;;  %v2819_v20 = vmul.f32 0.01, %v2707_v17  ;;  %v2591_v25 = vmax.f32 %v3566_v43, %v3626_v12 }
 0x1ac   : > { %v2874_v48 = vsel %vm2762_vm10, %v2706_v22, %v2818_v13  ;;  %v2486_v32 = vpop.f32.mrb[97].mxu1  ;;  %v3567_v49 = vpop.f32.mrb[98].mxu0  ;;  %vm2761_vm13 = vcmp.ge.f32.partialorder %v2705_v10, 0.0  ;;  %v2817_v56 = vmul.f32 0.01, %v2705_v10  ;;  %v4985_v43 = vld [vmem:[#allocation45_spill] sm:$0xff] }
 0x1ad   : > { %2931 = vst.msk [vmem:[%s4433_s23 + $0x130] sm:$0xff] %vm2892_vm4, %v2874_v48  ;;  %v2872_v59 = vsel %vm2760_vm11, %v2704_v11, %v2816_v45  ;;  %v2589_v5 = vmax.f32 %v1949_v46, %v2486_v32  ;;  %v3627_v1 = vpop.f32.mrb[98].mxu1  ;;  %v1952_v23 = vpop.f32.mrb[99].mxu0  ;;  %v2875_v26 = vsel %vm2763_vm12, %v2707_v17, %v2819_v20  ;;  %v2647_v28 = vmax.f32 %v4972_v53, %v2591_v25  ;;  %v4982_v11 = vld [vmem:[#allocation43_spill] sm:$0xff]  ;;  %v4986_v45 = vld [vmem:[#allocation46_spill] sm:$0xff]  ;;  %v4989_v25 = vld [vmem:[#allocation48_spill] sm:$0xff] }
 0x1ae   : > { %2929 = vst.msk [vmem:[%s4433_s23 + $0x120] sm:$0xff] %vm2892_vm4, %v2872_v59  ;;  %v2592_v30 = vmax.f32 %v3567_v49, %v3627_v1  ;;  %v2489_v29 = vpop.f32.mrb[99].mxu1  ;;  %2932 = vst.msk [vmem:[%s4433_s23 + $0x138] sm:$0xff] %vm2892_vm4, %v2875_v26  ;;  %v2873_v54 = vsel %vm2761_vm13, %v2705_v10, %v2817_v56  ;;  %v4984_v40 = vmax.f32 %v4982_v11, %v4983_v7  ;;  %v4988_v20 = vld [vmem:[#allocation47_spill] sm:$0xff]  ;;  %v4991_v56 = vld [vmem:[#allocation49_spill] sm:$0xff] }
 0x1af   : > { %v2645_v31 = vmax.f32 %v4975_v60, %v2589_v5  ;;  %v2590_v33 = vmax.f32 %v1952_v23, %v2489_v29  ;;  %2930 = vst.msk [vmem:[%s4433_s23 + $0x128] sm:$0xff] %vm2892_vm4, %v2873_v54  ;;  %v2710_v44 = vadd.f32 %v4413_v47, %v2647_v28  ;;  %v4987_v10 = vmax.f32 %v4985_v43, %v4986_v45  ;;  %v4992_v5 = vld [vmem:[#allocation50_spill] sm:$0xff] }
 0x1b0   : > { %v2648_v34 = vmax.f32 %v4978_v57, %v2592_v30  ;;  %v4990_v32 = vmax.f32 %v4988_v20, %v4989_v25  ;;  %v4993_v1 = vmax.f32 %v4991_v56, %v4992_v5  ;;  %v5007_v56 = vld [vmem:[#allocation60_spill] sm:$0xff] }
 0x1b1   : > { %v2708_v37 = vadd.f32 %v4413_v47, %v2645_v31  ;;  %v2646_v35 = vmax.f32 %v4981_v63, %v2590_v33  ;;  %vm2766_vm14 = vcmp.ge.f32.partialorder %v2710_v44, 0.0  ;;  %v2822_v14 = vmul.f32 0.01, %v2710_v44 }
 0x1b2   : > { %v2711_v15 = vadd.f32 %v4413_v47, %v2648_v34  ;;  %v3570_v2 = vpop.f32.mrb[100].mxu0  ;;  %v3630_v18 = vpop.f32.mrb[100].mxu1 }
 0x1b3   : > { %vm2764_vm15 = vcmp.ge.f32.partialorder %v2708_v37, 0.0  ;;  %v2820_v3 = vmul.f32 0.01, %v2708_v37  ;;  %v2709_v16 = vadd.f32 %v4413_v47, %v2646_v35  ;;  %v1965_v62 = vpop.f32.mrb[101].mxu0  ;;  %v2878_v61 = vsel %vm2766_vm14, %v2710_v44, %v2822_v14  ;;  %v2502_v21 = vpop.f32.mrb[101].mxu1 }
 0x1b4   : > { %vm2767_vm0 = vcmp.ge.f32.partialorder %v2711_v15, 0.0  ;;  %v2823_v4 = vmul.f32 0.01, %v2711_v15  ;;  %v2595_v19 = vmax.f32 %v3570_v2, %v3630_v18  ;;  %v3571_v6 = vpop.f32.mrb[102].mxu0  ;;  %2935 = vst.msk [vmem:[%s4433_s23 + $0x150] sm:$0xff] %vm2892_vm4, %v2878_v61  ;;  %v2593_v24 = vmax.f32 %v1965_v62, %v2502_v21  ;;  %v3631_v8 = vpop.f32.mrb[102].mxu1 }
 0x1b5   : > { %v2876_v0 = vsel %vm2764_vm15, %v2708_v37, %v2820_v3  ;;  %vm2765_vm1 = vcmp.ge.f32.partialorder %v2709_v16, 0.0  ;;  %v2821_v22 = vmul.f32 0.01, %v2709_v16  ;;  %v1968_v38 = vpop.f32.mrb[103].mxu0  ;;  %v2596_v9 = vmax.f32 %v3571_v6, %v3631_v8  ;;  %v2505_v13 = vpop.f32.mrb[103].mxu1  ;;  %v4994_v37 = vld [vmem:[#allocation51_spill] sm:$0xff] }
 0x1b6   : > { %2933 = vst.msk [vmem:[%s4433_s23 + $0x140] sm:$0xff] %vm2892_vm4, %v2876_v0  ;;  %v2879_v39 = vsel %vm2767_vm0, %v2711_v15, %v2823_v4  ;;  %v2651_v42 = vmax.f32 %v4984_v40, %v2595_v19  ;;  %v2649_v12 = vmax.f32 %v4987_v10, %v2593_v24  ;;  %v2594_v46 = vmax.f32 %v1968_v38, %v2505_v13  ;;  %v4997_v2 = vld [vmem:[#allocation53_spill] sm:$0xff]  ;;  %v4998_v3 = vld [vmem:[#allocation54_spill] sm:$0xff]  ;;  %v5000_v4 = vld [vmem:[#allocation55_spill] sm:$0xff] }
 0x1b7   : > { %2936 = vst.msk [vmem:[%s4433_s23 + $0x158] sm:$0xff] %vm2892_vm4, %v2879_v39  ;;  %v2877_v17 = vsel %vm2765_vm1, %v2709_v16, %v2821_v22  ;;  %v2652_v49 = vmax.f32 %v4990_v32, %v2596_v9  ;;  %v4996_v36 = vmax.f32 %v4994_v37, %v4995_v41  ;;  %v4999_v16 = vmax.f32 %v4997_v2, %v4998_v3  ;;  %v5001_v19 = vld [vmem:[#allocation56_spill] sm:$0xff]  ;;  %v5003_v22 = vld [vmem:[#allocation57_spill] sm:$0xff]  ;;  %v5004_v24 = vld [vmem:[#allocation58_spill] sm:$0xff] }
 0x1b8   : > { %2934 = vst.msk [vmem:[%s4433_s23 + $0x148] sm:$0xff] %vm2892_vm4, %v2877_v17  ;;  %v2714_v48 = vadd.f32 %v4413_v47, %v2651_v42  ;;  %v2712_v59 = vadd.f32 %v4413_v47, %v2649_v12  ;;  %v2650_v23 = vmax.f32 %v4993_v1, %v2594_v46  ;;  %v5002_v21 = vmax.f32 %v5000_v4, %v5001_v19 }
 0x1b9   : > { %v2715_v27 = vadd.f32 %v4413_v47, %v2652_v49  ;;  %v5005_v8 = vmax.f32 %v5003_v22, %v5004_v24 }
 0x1ba   : > { %vm2770_vm2 = vcmp.ge.f32.partialorder %v2714_v48, 0.0  ;;  %v2826_v26 = vmul.f32 0.01, %v2714_v48  ;;  %v3574_v52 = vpop.f32.mrb[104].mxu0  ;;  %vm2768_vm3 = vcmp.ge.f32.partialorder %v2712_v59, 0.0  ;;  %v2713_v28 = vadd.f32 %v4413_v47, %v2650_v23  ;;  %v3634_v30 = vpop.f32.mrb[104].mxu1 }
 0x1bb   : > { %v2824_v53 = vmul.f32 0.01, %v2712_v59  ;;  %v1981_v29 = vpop.f32.mrb[105].mxu0  ;;  %vm2771_vm5 = vcmp.ge.f32.partialorder %v2715_v27, 0.0  ;;  %v2827_v50 = vmul.f32 0.01, %v2715_v27  ;;  %v2599_v51 = vmax.f32 %v3574_v52, %v3634_v30 }
 0x1bc   : > { %v2882_v54 = vsel %vm2770_vm2, %v2714_v48, %v2826_v26  ;;  %v2518_v60 = vpop.f32.mrb[105].mxu1  ;;  %v3575_v31 = vpop.f32.mrb[106].mxu0  ;;  %vm2769_vm6 = vcmp.ge.f32.partialorder %v2713_v28, 0.0  ;;  %v2825_v44 = vmul.f32 0.01, %v2713_v28  ;;  %v5009_v52 = vld [vmem:[#allocation61_spill] sm:$0xff] }
 0x1bd   : > { %2939 = vst.msk [vmem:[%s4433_s23 + $0x170] sm:$0xff] %vm2892_vm4, %v2882_v54  ;;  %v2880_v33 = vsel %vm2768_vm3, %v2712_v59, %v2824_v53  ;;  %v2597_v55 = vmax.f32 %v1981_v29, %v2518_v60  ;;  %v3635_v58 = vpop.f32.mrb[106].mxu1  ;;  %v1984_v57 = vpop.f32.mrb[107].mxu0  ;;  %v2883_v34 = vsel %vm2771_vm5, %v2715_v27, %v2827_v50  ;;  %v2655_v63 = vmax.f32 %v4996_v36, %v2599_v51  ;;  %v5006_v59 = vld [vmem:[#allocation59_spill] sm:$0xff]  ;;  %v5010_v53 = vld [vmem:[#allocation62_spill] sm:$0xff]  ;;  %v5013_v51 = vld [vmem:[#allocation64_spill] sm:$0xff] }
 0x1be   : > { %2937 = vst.msk [vmem:[%s4433_s23 + $0x160] sm:$0xff] %vm2892_vm4, %v2880_v33  ;;  %v2600_v35 = vmax.f32 %v3575_v31, %v3635_v58  ;;  %v2521_v14 = vpop.f32.mrb[107].mxu1  ;;  %2940 = vst.msk [vmem:[%s4433_s23 + $0x178] sm:$0xff] %vm2892_vm4, %v2883_v34  ;;  %v2881_v15 = vsel %vm2769_vm6, %v2713_v28, %v2825_v44  ;;  %v5008_v5 = vmax.f32 %v5006_v59, %v5007_v56  ;;  %v5012_v50 = vld [vmem:[#allocation63_spill] sm:$0xff]  ;;  %v5015_v44 = vld [vmem:[#allocation65_spill] sm:$0xff] }
 0x1bf   : > { %v2653_v18 = vmax.f32 %v4999_v16, %v2597_v55  ;;  %v2598_v62 = vmax.f32 %v1984_v57, %v2521_v14  ;;  %2938 = vst.msk [vmem:[%s4433_s23 + $0x168] sm:$0xff] %vm2892_vm4, %v2881_v15  ;;  %v2718_v61 = vadd.f32 %v4413_v47, %v2655_v63  ;;  %v5011_v28 = vmax.f32 %v5009_v52, %v5010_v53  ;;  %v5016_v55 = vld [vmem:[#allocation66_spill] sm:$0xff] }
 0x1c0   : > { %v2656_v6 = vmax.f32 %v5002_v21, %v2600_v35  ;;  %v5014_v60 = vmax.f32 %v5012_v50, %v5013_v51  ;;  %v5017_v58 = vmax.f32 %v5015_v44, %v5016_v55 }
 0x1c1   : > { %v2716_v0 = vadd.f32 %v4413_v47, %v2653_v18  ;;  %v2654_v38 = vmax.f32 %v5005_v8, %v2598_v62  ;;  %vm2774_vm7 = vcmp.ge.f32.partialorder %v2718_v61, 0.0  ;;  %v2830_v39 = vmul.f32 0.01, %v2718_v61 }
 0x1c2   : > { %v2719_v11 = vadd.f32 %v4413_v47, %v2656_v6  ;;  %v3578_v7 = vpop.f32.mrb[108].mxu0  ;;  %v3638_v9 = vpop.f32.mrb[108].mxu1 }
 0x1c3   : > { %vm2772_vm8 = vcmp.ge.f32.partialorder %v2716_v0, 0.0  ;;  %v2828_v40 = vmul.f32 0.01, %v2716_v0  ;;  %v2717_v42 = vadd.f32 %v4413_v47, %v2654_v38  ;;  %v1997_v13 = vpop.f32.mrb[109].mxu0  ;;  %v2886_v17 = vsel %vm2774_vm7, %v2718_v61, %v2830_v39  ;;  %v2534_v10 = vpop.f32.mrb[109].mxu1 }
 0x1c4   : > { %vm2775_vm9 = vcmp.ge.f32.partialorder %v2719_v11, 0.0  ;;  %v2831_v43 = vmul.f32 0.01, %v2719_v11  ;;  %v2603_v45 = vmax.f32 %v3578_v7, %v3638_v9  ;;  %v3579_v12 = vpop.f32.mrb[110].mxu0  ;;  %2943 = vst.msk [vmem:[%s4433_s23 + $0x190] sm:$0xff] %vm2892_vm4, %v2886_v17  ;;  %v2601_v20 = vmax.f32 %v1997_v13, %v2534_v10  ;;  %v3639_v25 = vpop.f32.mrb[110].mxu1 }
 0x1c5   : > { %v2884_v46 = vsel %vm2772_vm8, %v2716_v0, %v2828_v40  ;;  %vm2773_vm10 = vcmp.ge.f32.partialorder %v2717_v42, 0.0  ;;  %v2829_v48 = vmul.f32 0.01, %v2717_v42  ;;  %v2000_v32 = vpop.f32.mrb[111].mxu0  ;;  %v2604_v23 = vmax.f32 %v3579_v12, %v3639_v25  ;;  %v2537_v26 = vpop.f32.mrb[111].mxu1 }
 0x1c6   : > { %2941 = vst.msk [vmem:[%s4433_s23 + $0x180] sm:$0xff] %vm2892_vm4, %v2884_v46  ;;  %v2887_v49 = vsel %vm2775_vm9, %v2719_v11, %v2831_v43  ;;  %v2659_v1 = vmax.f32 %v5008_v5, %v2603_v45  ;;  %v2657_v30 = vmax.f32 %v5011_v28, %v2601_v20  ;;  %v2602_v29 = vmax.f32 %v2000_v32, %v2537_v26 }
 0x1c7   : > { %2944 = vst.msk [vmem:[%s4433_s23 + $0x198] sm:$0xff] %vm2892_vm4, %v2887_v49  ;;  %v2885_v27 = vsel %vm2773_vm10, %v2717_v42, %v2829_v48  ;;  %v2660_v31 = vmax.f32 %v5014_v60, %v2604_v23 }
 0x1c8   : > { %2942 = vst.msk [vmem:[%s4433_s23 + $0x188] sm:$0xff] %vm2892_vm4, %v2885_v27  ;;  %v2722_v54 = vadd.f32 %v4413_v47, %v2659_v1  ;;  %v2720_v33 = vadd.f32 %v4413_v47, %v2657_v30  ;;  %v2658_v57 = vmax.f32 %v5017_v58, %v2602_v29 }
 0x1c9   : > { %v2723_v37 = vadd.f32 %v4413_v47, %v2660_v31 }
 0x1ca   : > { %vm2778_vm11 = vcmp.ge.f32.partialorder %v2722_v54, 0.0  ;;  %v2834_v34 = vmul.f32 0.01, %v2722_v54  ;;  %vm2776_vm12 = vcmp.ge.f32.partialorder %v2720_v33, 0.0  ;;  %v2832_v41 = vmul.f32 0.01, %v2720_v33 }
 0x1cb   : > { %v2721_v36 = vadd.f32 %v4413_v47, %v2658_v57  ;;  %vm2779_vm13 = vcmp.ge.f32.partialorder %v2723_v37, 0.0  ;;  %v2835_v35 = vmul.f32 0.01, %v2723_v37 }
 0x1cc   : > { %v2890_v63 = vsel %vm2778_vm11, %v2722_v54, %v2834_v34  ;;  %v2888_v14 = vsel %vm2776_vm12, %v2720_v33, %v2832_v41 }
 0x1cd   : > { %2947 = vst.msk [vmem:[%s4433_s23 + $0x1b0] sm:$0xff] %vm2892_vm4, %v2890_v63  ;;  %vm2777_vm14 = vcmp.ge.f32.partialorder %v2721_v36, 0.0  ;;  %v2833_v15 = vmul.f32 0.01, %v2721_v36  ;;  %2945 = vst.msk [vmem:[%s4433_s23 + $0x1a0] sm:$0xff] %vm2892_vm4, %v2888_v14  ;;  %v2891_v2 = vsel %vm2779_vm13, %v2723_v37, %v2835_v35 }
 0x1ce   : > { %2948 = vst.msk [vmem:[%s4433_s23 + $0x1b8] sm:$0xff] %vm2892_vm4, %v2891_v2 }
 0x1cf   : > { %v2889_v3 = vsel %vm2777_vm14, %v2721_v36, %v2833_v15 }
 0x1d0   : > { %2946 = vst.msk [vmem:[%s4433_s23 + $0x1a8] sm:$0xff] %vm2892_vm4, %v2889_v3 }
 0x1d1 PF: > { %s16_s21 = sadd.s32 1, %s3769_s21  }
 0x1d2   : > { %p13_p4 = scmp.ge.s32.totalorder %s16_s21, 4  }
 0x1d4   :  { %15 = sbr.rel (!%p13_p4) target bundleno = 1 (0x1), region = 83 }

// kernel: cnn_forward.3
= control target key start
LH: loop header
LB: loop body
LE: loop exit
PB: predicated region body
PF: predicated region fallthrough
CT: control target
= control target key end

     0   :  { %s4610_s24 = smov 0   ;;  %s5628_s0 = inlined_call_operand.vmem [shape: bf16[2,64,1600], index: 0, kind: input, shape index: {}]   ;;  %s5629_s1 = inlined_call_operand.vmem [shape: bf16[1600,128], index: 1, kind: input, shape index: {}]   ;;  %s5630_s2 = inlined_call_operand.vmem [shape: f32[1,128], index: 2, kind: input, shape index: {}]   ;;  %s5631_s3 = inlined_call_operand.vmem [shape: bf16[1152,256], index: 3, kind: input, shape index: {}]   ;;  %s5632_s4 = inlined_call_operand.vmem [shape: f32[1,256], index: 4, kind: input, shape index: {}]   ;;  %s5633_s5 = inlined_call_operand.vmem [shape: bf16[256,256], index: 5, kind: input, shape index: {}]   ;;  %s5634_s6 = inlined_call_operand.vmem [shape: f32[1,256], index: 6, kind: input, shape index: {}]   ;;  %s5635_s7 = inlined_call_operand.vmem [shape: f32[2,1,256], index: 7, kind: output, shape index: {}]  }
   0x1 LB: > { %s3419_s25 = sadd.s32 4294967295, %s4563_s24   ;;  %p3423_p0 = scmp.ge.s32.totalorder %s4563_s24, 1  ;;  %s4563_s24 = sphi %s4610_s24, %s17_s24  }
   0x2   : > { %p237_p1 = scmp.lt.s32.totalorder %s4563_s24, 3 }
   0x4   : > { %p238_p2 = pnand %p3423_p0, %p237_p1 }
   0x5   : > { %v4117_v0 = vld [vmem:[%s5629_s1 + $0x40] sm:$0xff] (!%p238_p2)   ;;  %v4119_v2 = vld [vmem:[%s5629_s1 + $0x48] sm:$0xff] (!%p238_p2)   ;;  %p268_p3 = scmp.lt.s32.totalorder (!%p238_p2), %s3419_s25, 1  ;;  %v4121_v4 = vld [vmem:[%s5629_s1 + $0x50] sm:$0xff] (!%p238_p2)   ;;  %vm1394_vm0 = vcmask (!%p238_p2), 523264   ;;  %vm1909_vm2 = vcmask (!%p238_p2), 1040384  }
   0x6   : > { %241 = sbr.rel (%p238_p2) target bundleno = 1025 (0x401), region = 48  ;;  %v4118_v1 = vld [vmem:[%s5629_s1] sm:$0xff] (!%p238_p2)   ;;  %3807 = vmatprep.subr.bf16.mxu0 (!%p238_p2), %v4117_v0  ;;  %v4120_v3 = vld [vmem:[%s5629_s1 + $0x8] sm:$0xff] (!%p238_p2)   ;;  %v4122_v5 = vld [vmem:[%s5629_s1 + $0x10] sm:$0xff] (!%p238_p2)   ;;  %vm4566_vm4 = vmmov (!%p238_p2), 1  }
   0x7   : > { %3808 = vmatpush3.bf16.msra.mxu0 (!%p238_p2), %v4118_v1  ;;  %v4123_v6 = vld [vmem:[%s5629_s1 + $0x58] sm:$0xff] (!%p238_p2)   ;;  %v4125_v8 = vld [vmem:[%s5629_s1 + $0x60] sm:$0xff] (!%p238_p2)   ;;  %v4127_v10 = vld [vmem:[%s5629_s1 + $0x68] sm:$0xff] (!%p238_p2)  }
   0x8   : > { %3809 = vmatprep.subr.bf16.mxu0 (!%p238_p2), %v4119_v2  ;;  %v4124_v7 = vld [vmem:[%s5629_s1 + $0x18] sm:$0xff] (!%p238_p2)   ;;  %v4126_v9 = vld [vmem:[%s5629_s1 + $0x20] sm:$0xff] (!%p238_p2)   ;;  %v4128_v12 = vld [vmem:[%s5629_s1 + $0x28] sm:$0xff] (!%p238_p2)  }
   0x9   : > { %v4129_v13 = vld [vmem:[%s5629_s1 + $0x70] sm:$0xff] (!%p238_p2)   ;;  %v4131_v15 = vld [vmem:[%s5629_s1 + $0x78] sm:$0xff] (!%p238_p2)   ;;  %v4136_v17 = vld [vmem:[%s5629_s1 + $0xc0] sm:$0xff] (!%p238_p2)  }
   0xa   : > { %v4130_v14 = vld [vmem:[%s5629_s1 + $0x30] sm:$0xff] (!%p238_p2)   ;;  %v4132_v16 = vld [vmem:[%s5629_s1 + $0x38] sm:$0xff] (!%p238_p2)   ;;  %v4137_v19 = vld [vmem:[%s5629_s1 + $0x80] sm:$0xff] (!%p238_p2)  }
   0xb   : > { %3810 = vmatpush3.bf16.msra.mxu0 (!%p238_p2), %v4120_v3  ;;  %v4138_v21 = vld [vmem:[%s5629_s1 + $0xc8] sm:$0xff] (!%p238_p2)   ;;  %v4143_v23 = vld [vmem:[%s5629_s1 + $0xd0] sm:$0xff] (!%p238_p2)   ;;  %v4145_v27 = vld [vmem:[%s5629_s1 + $0xd8] sm:$0xff] (!%p238_p2)  }
   0xc   : > { %3811 = vmatprep.subr.bf16.mxu0 (!%p238_p2), %v4121_v4  ;;  %v4139_v22 = vld [vmem:[%s5629_s1 + $0x88] sm:$0xff] (!%p238_p2)   ;;  %v4144_v25 = vld [vmem:[%s5629_s1 + $0x90] sm:$0xff] (!%p238_p2)   ;;  %v4166_v28 = vld [vmem:[%s5629_s1 + $0x1c0] sm:$0xff] (!%p238_p2)  }
   0xd   : > { %s5643_s25 = smov (!%p268_p3, %s3419_s25), 1  ;;  %v4167_v29 = vld [vmem:[%s5629_s1 + $0x180] sm:$0xff]   ;;  %v4146_v30 = vld [vmem:[%s5629_s1 + $0x98] sm:$0xff]   ;;  %3927 = vmatprep.subr.bf16.mxu1 %v4166_v28  ;;  %v4170_v33 = vld [vmem:[%s5629_s1 + $0x1c8] sm:$0xff]  }
   0xe   : > { %s4103_s17 = smul.u32 416, %s5643_s25  ;;  %v4150_v32 = vld [vmem:[%s5629_s1 + $0xe0] sm:$0xff]   ;;  %3928 = vmatpush3.bf16.msra.mxu1 %v4167_v29  ;;  %v4173_v36 = vld [vmem:[%s5629_s1 + $0x188] sm:$0xff]   ;;  %v4177_v39 = vld [vmem:[%s5629_s1 + $0x1d0] sm:$0xff]   ;;  %s3425_s30 = sshll.u32 %s5643_s25, 1 }
   0xf   : > { %3812 = vmatpush3.bf16.msra.mxu0 %v4122_v5  ;;  %v4151_v34 = vld [vmem:[%s5629_s1 + $0xa0] sm:$0xff]   ;;  %3929 = vmatprep.subr.bf16.mxu1 %v4170_v33  ;;  %v4152_v37 = vld [vmem:[%s5629_s1 + $0xe8] sm:$0xff]   ;;  %v4178_v40 = vld [vmem:[%s5629_s1 + $0x190] sm:$0xff]   ;;  %s276_s10 = scalar_lea.vmem %s5635_s7, %s3425_s30 }
  0x10   : > { %3813 = vmatprep.subr.bf16.mxu0 %v4123_v6  ;;  %s4651_s26 = scalar_lea.vmem %s5628_s0, %s4103_s17  ;;  %v4153_v38 = vld [vmem:[%s5629_s1 + $0xa8] sm:$0xff]   ;;  %v4157_v42 = vld [vmem:[%s5629_s1 + $0xf0] sm:$0xff]   ;;  %v4159_v44 = vld [vmem:[%s5629_s1 + $0xf8] sm:$0xff]  }
  0x11   : > { %v4135_v11 = vld [vmem:[%s4651_s26 + $0x4] ss:$52 sps:$4 sm:$0xff]   ;;  %v4133_v18 = vld [vmem:[%s4651_s26] ss:$52 sps:$4 sm:$0xff]   ;;  %v4142_v24 = vld [vmem:[%s4651_s26 + $0x68] ss:$52 sps:$4 sm:$0xff]  }
  0x12   : > { %1439 = vmatprep.mubr.bf16.mxu0 %v4135_v11  ;;  %v4140_v20 = vld [vmem:[%s4651_s26 + $0x6c] ss:$52 sps:$4 sm:$0xff]   ;;  %v4147_v26 = vld [vmem:[%s4651_s26 + $0xd4] ss:$52 sps:$4 sm:$0xff]   ;;  %v4149_v31 = vld [vmem:[%s4651_s26 + $0xd0] ss:$52 sps:$4 sm:$0xff]   ;;  %3930 = vmatpush3.bf16.msra.mxu1 %v4173_v36 }
  0x13   : > { %3814 = vmatpush3.bf16.msra.mxu0 %v4124_v7  ;;  %v4154_v35 = vld [vmem:[%s4651_s26 + $0x13c] ss:$52 sps:$4 sm:$0xff]   ;;  %v4156_v41 = vld [vmem:[%s4651_s26 + $0x138] ss:$52 sps:$4 sm:$0xff]   ;;  %3931 = vmatprep.subr.bf16.mxu1 %v4177_v39  ;;  %v4164_v49 = vld [vmem:[%s5629_s1 + $0x140] sm:$0xff]  }
  0x14   : > { %3815 = vmatprep.subr.bf16.mxu0 %v4125_v8  ;;  %v4158_v43 = vld [vmem:[%s5629_s1 + $0xb0] sm:$0xff]   ;;  %v4181_v45 = vld [vmem:[%s5629_s1 + $0x1d8] sm:$0xff]   ;;  %v4163_v46 = vld [vmem:[%s4651_s26 + $0xc] ss:$52 sps:$4 sm:$0xff]  }
  0x15   : > { %v4184_v47 = vld [vmem:[%s5629_s1 + $0x198] sm:$0xff]   ;;  %v4188_v51 = vld [vmem:[%s5629_s1 + $0x1e0] sm:$0xff]   ;;  %v4168_v54 = vld [vmem:[%s5629_s1 + $0x148] sm:$0xff]  }
  0x16   : > { %3932 = vmatpush3.bf16.msra.mxu1 %v4178_v40  ;;  %v4160_v48 = vld [vmem:[%s5629_s1 + $0xb8] sm:$0xff]   ;;  %v4165_v52 = vld [vmem:[%s5629_s1 + $0x100] sm:$0xff]   ;;  %v4171_v55 = vld [vmem:[%s4651_s26 + $0x74] ss:$52 sps:$4 sm:$0xff]  }
  0x17   : > { %3816 = vmatpush3.bf16.msra.mxu0 %v4126_v9  ;;  %3933 = vmatprep.subr.bf16.mxu1 %v4181_v45  ;;  %v4161_v50 = vld [vmem:[%s4651_s26 + $0x8] ss:$52 sps:$4 sm:$0xff]   ;;  %v4189_v53 = vld [vmem:[%s5629_s1 + $0x1a0] sm:$0xff]   ;;  %v4175_v60 = vld [vmem:[%s5629_s1 + $0x150] sm:$0xff]  }
  0x18   : > { %3817 = vmatprep.subr.bf16.mxu0 %v4127_v10  ;;  %v4192_v56 = vld [vmem:[%s5629_s1 + $0x1e8] sm:$0xff]   ;;  %v4174_v59 = vld [vmem:[%s4651_s26 + $0x70] ss:$52 sps:$4 sm:$0xff]   ;;  %v4179_v1 = vld [vmem:[%s5629_s1 + $0x158] sm:$0xff]  }
  0x19   : > { %v4195_v57 = vld [vmem:[%s5629_s1 + $0x1a8] sm:$0xff]   ;;  %v4176_v61 = vld [vmem:[%s5629_s1 + $0x110] sm:$0xff]   ;;  %v4203_v2 = vld [vmem:[%s5629_s1 + $0x1f8] sm:$0xff]  }
  0x1a   : > { %3934 = vmatpush3.bf16.msra.mxu1 %v4184_v47  ;;  %v4169_v58 = vld [vmem:[%s5629_s1 + $0x108] sm:$0xff]   ;;  %v4199_v62 = vld [vmem:[%s5629_s1 + $0x1f0] sm:$0xff]   ;;  %v4180_v3 = vld [vmem:[%s5629_s1 + $0x118] sm:$0xff]  }
  0x1b   : > { %3818 = vmatpush3.bf16.msra.mxu0 %v4128_v12  ;;  %3935 = vmatprep.subr.bf16.mxu1 %v4188_v51  ;;  %v4200_v63 = vld [vmem:[%s5629_s1 + $0x1b0] sm:$0xff]   ;;  %v4207_v4 = vld [vmem:[%s5629_s1 + $0x1b8] sm:$0xff]   ;;  %v4186_v6 = vld [vmem:[%s5629_s1 + $0x160] sm:$0xff]  }
  0x1c   : > { %3819 = vmatprep.subr.bf16.mxu0 %v4129_v13  ;;  %v4182_v0 = vld [vmem:[%s4651_s26 + $0xdc] ss:$52 sps:$4 sm:$0xff]   ;;  %v4185_v5 = vld [vmem:[%s4651_s26 + $0xd8] ss:$52 sps:$4 sm:$0xff]   ;;  %v4187_v7 = vld [vmem:[%s5629_s1 + $0x120] sm:$0xff]  }
  0x1d   : > { %v4209_v8 = vld [vmem:[%s4651_s26 + $0x18] ss:$52 sps:$4 sm:$0xff]   ;;  %v4211_v10 = vld [vmem:[%s4651_s26 + $0x1c] ss:$52 sps:$4 sm:$0xff]   ;;  %v4213_v12 = vld [vmem:[%s5629_s1 + $0x2c0] sm:$0xff]  }
  0x1e   : > { %3936 = vmatpush3.bf16.msra.mxu1 %v4189_v53  ;;  %v4190_v9 = vld [vmem:[%s5629_s1 + $0x168] sm:$0xff]   ;;  %v4193_v11 = vld [vmem:[%s4651_s26 + $0x144] ss:$52 sps:$4 sm:$0xff]   ;;  %1634 = vmatprep.mubr.bf16.mxu1 %v4211_v10  ;;  %v4225_v39 = vld [vmem:[%s5629_s1 + $0x210] sm:$0xff]  }
  0x1f   : > { %3820 = vmatpush3.bf16.msra.mxu0 %v4130_v14  ;;  %3937 = vmatprep.subr.bf16.mxu1 %v4192_v56  ;;  %v4214_v13 = vld [vmem:[%s5629_s1 + $0x280] sm:$0xff]   ;;  %v4191_v14 = vld [vmem:[%s5629_s1 + $0x128] sm:$0xff]   ;;  %v4234_v33 = vld [vmem:[%s5629_s1 + $0x298] sm:$0xff]  }
  0x20   : > { %3821 = vmatprep.subr.bf16.mxu0 %v4131_v15  ;;  %v4197_v15 = vld [vmem:[%s5629_s1 + $0x170] sm:$0xff]   ;;  %v4208_v28 = vld [vmem:[%s5629_s1 + $0x240] sm:$0xff]   ;;  %v4221_v36 = vld [vmem:[%s4651_s26 + $0x78] ss:$52 sps:$4 sm:$0xff]  }
  0x21   : > { %v4212_v29 = vld [vmem:[%s5629_s1 + $0x200] sm:$0xff]   ;;  %v4230_v45 = vld [vmem:[%s5629_s1 + $0x218] sm:$0xff]   ;;  %v4243_v51 = vld [vmem:[%s5629_s1 + $0x268] sm:$0xff]  }
  0x22   : > { %3938 = vmatpush3.bf16.msra.mxu1 %v4195_v57  ;;  %v4241_v40 = vld [vmem:[%s5629_s1 + $0x2e0] sm:$0xff]   ;;  %v4244_v56 = vld [vmem:[%s5629_s1 + $0x228] sm:$0xff]   ;;  %v4250_v57 = vld [vmem:[%s5629_s1 + $0x270] sm:$0xff]  }
  0x23   : > { %3822 = vmatpush3.bf16.msra.mxu0 %v4132_v16  ;;  %3939 = vmatprep.subr.bf16.mxu1 %v4199_v62  ;;  %v4196_v16 = vld [vmem:[%s4651_s26 + $0x140] ss:$52 sps:$4 sm:$0xff]   ;;  %v4254_v53 = vld [vmem:[%s4651_s26 + $0x150] ss:$52 sps:$4 sm:$0xff]   ;;  %v4263_v62 = vld [vmem:[%s5629_s1 + $0x2b8] sm:$0xff]  }
  0x24   : > { %3847 = vmatprep.subr.bf16.mxu0 %v4136_v17  ;;  %v4217_v17 = vld [vmem:[%s5629_s1 + $0x2c8] sm:$0xff]   ;;  %v4235_v47 = vld [vmem:[%s4651_s26 + $0xe0] ss:$52 sps:$4 sm:$0xff]   ;;  %vm5190_vm5 = vmpackc.low %vm1909_vm2, %vm4566_vm4 }
  0x25   : > { %v4270_v10 = vld [vmem:[%s4651_s26 + $0x88] ss:$52 sps:$4 sm:$0xff]   ;;  %vm5205_vm6 = vmpackc.low %vm1909_vm2, %vm1909_vm2 }
  0x26   : > { %1440 = vmatmul.mubr.bf16.vlgmr.msra.gmra.mrb[0].mxu0 %v4133_v18  ;;  %3940 = vmatpush3.bf16.msra.mxu1 %v4200_v63  ;;  %v4198_v18 = vld [vmem:[%s5629_s1 + $0x130] sm:$0xff]   ;;  %v4262_v63 = vld [vmem:[%s4651_s26 + $0x24] ss:$52 sps:$4 sm:$0xff]   ;;  %vm5247_vm7 = vmpackc.low %vm4566_vm4, %vm1909_vm2 }
  0x27   : > { %3848 = vmatpush3.bf16.msra.mxu0 %v4137_v19  ;;  %1447 = vmatprep.mubr.bf16.mxu0 %v4140_v20  ;;  %v4201_v19 = vld [vmem:[%s5629_s1 + $0x178] sm:$0xff]   ;;  %v4220_v20 = vld [vmem:[%s5629_s1 + $0x288] sm:$0xff]  }
  0x28   : > { %3849 = vmatprep.subr.bf16.mxu0 %v4138_v21  ;;  %3941 = vmatprep.subr.bf16.mxu1 %v4203_v2  ;;  %v4206_v21 = vld [vmem:[%s4651_s26 + $0x14] ss:$52 sps:$4 sm:$0xff]   ;;  %v4258_v2 = vld [vmem:[%s5629_s1 + $0x238] sm:$0xff]  }
  0x2a   : > { %3942 = vmatpush3.bf16.msra.mxu1 %v4207_v4  ;;  %v4272_v4 = vld [vmem:[%s4651_s26 + $0x94] ss:$52 sps:$4 sm:$0xff]  }
  0x2b   : > { %3850 = vmatpush3.bf16.msra.mxu0 %v4139_v22  ;;  %4007 = vmatprep.subr.bf16.mxu1 %v4213_v12  ;;  %v4223_v22 = vld [vmem:[%s4651_s26 + $0x84] ss:$52 sps:$4 sm:$0xff]   ;;  %v4275_v12 = vld [vmem:[%s4651_s26 + $0xf4] ss:$52 sps:$4 sm:$0xff]  }
  0x2c   : > { %3851 = vmatprep.subr.bf16.mxu0 %v4143_v23  ;;  %v4202_v23 = vld [vmem:[%s5629_s1 + $0x138] sm:$0xff]  }
  0x2d   : > { %1635 = vmatmul.mubr.bf16.vlgmr.msra.gmra.mrb[0].mxu1 %v4209_v8  ;;  %v4274_v8 = vld [vmem:[%s4651_s26 + $0x90] ss:$52 sps:$4 sm:$0xff]  }
  0x2e   : > { %1448 = vmatmul.mubr.bf16.gmra.mrb[4].mxu0 %v4142_v24  ;;  %4008 = vmatpush3.bf16.msra.mxu1 %v4214_v13  ;;  %v4226_v24 = vld [vmem:[%s4651_s26 + $0x80] ss:$52 sps:$4 sm:$0xff]   ;;  %v4281_v13 = vld [vmem:[%s4651_s26 + $0xf8] ss:$52 sps:$4 sm:$0xff]  }
  0x2f   : > { %3852 = vmatpush3.bf16.msra.mxu0 %v4144_v25  ;;  %1455 = vmatprep.mubr.bf16.mxu0 %v4147_v26  ;;  %v4227_v25 = vld [vmem:[%s5629_s1 + $0x2d0] sm:$0xff]  }
  0x30   : > { %3853 = vmatprep.subr.bf16.mxu0 %v4145_v27  ;;  %4009 = vmatprep.subr.bf16.mxu1 %v4217_v17  ;;  %v4228_v26 = vld [vmem:[%s5629_s1 + $0x290] sm:$0xff]  }
  0x31   : > { %1642 = vmatprep.mubr.bf16.mxu1 %v4223_v22  ;;  %v4204_v27 = vld [vmem:[%s4651_s26 + $0x10] ss:$52 sps:$4 sm:$0xff]   ;;  %v4291_v22 = vld [vmem:[%s4651_s26 + $0x100] ss:$52 sps:$4 sm:$0xff]  }
  0x32   : > { %4010 = vmatpush3.bf16.msra.mxu1 %v4220_v20  ;;  %v4282_v17 = vld [vmem:[%s4651_s26 + $0x15c] ss:$52 sps:$4 sm:$0xff]  }
  0x33   : > { %3854 = vmatpush3.bf16.msra.mxu0 %v4146_v30  ;;  %4011 = vmatprep.subr.bf16.mxu1 %v4227_v25  ;;  %v4215_v30 = vld [vmem:[%s5629_s1 + $0x248] sm:$0xff]   ;;  %v4289_v20 = vld [vmem:[%s4651_s26 + $0x30] ss:$52 sps:$4 sm:$0xff]  }
  0x34   : > { %3855 = vmatprep.subr.bf16.mxu0 %v4150_v32  ;;  %v4218_v32 = vld [vmem:[%s4651_s26 + $0x7c] ss:$52 sps:$4 sm:$0xff]   ;;  %v4293_v25 = vld [vmem:[%s5631_s3] ss:$8 sps:$4 sm:$0xff]  }
  0x35   : > { %1643 = vmatmul.mubr.bf16.gmra.mrb[4].mxu1 %v4226_v24  ;;  %v4295_v24 = vld [vmem:[%s5631_s3 + $0x4] ss:$8 sps:$4 sm:$0xff]  }
  0x36   : > { %1456 = vmatmul.mubr.bf16.gmra.mrb[8].mxu0 %v4149_v31  ;;  %4012 = vmatpush3.bf16.msra.mxu1 %v4228_v26  ;;  %v4231_v31 = vld [vmem:[%s5629_s1 + $0x2d8] sm:$0xff]  }
  0x37   : > { %3856 = vmatpush3.bf16.msra.mxu0 %v4151_v34  ;;  %1463 = vmatprep.mubr.bf16.mxu0 %v4154_v35  ;;  %v4216_v34 = vld [vmem:[%s5629_s1 + $0x208] sm:$0xff]   ;;  %v4298_v26 = vld [vmem:[%s5631_s3 + $0x14] ss:$8 sps:$4 sm:$0xff]  }
  0x38   : > { %3857 = vmatprep.subr.bf16.mxu0 %v4152_v37  ;;  %4013 = vmatprep.subr.bf16.mxu1 %v4231_v31  ;;  %v4237_v35 = vld [vmem:[%s4651_s26 + $0xec] ss:$52 sps:$4 sm:$0xff]   ;;  %v4222_v37 = vld [vmem:[%s5629_s1 + $0x250] sm:$0xff]  }
  0x39   : > { %1650 = vmatprep.mubr.bf16.mxu1 %v4237_v35  ;;  %v4302_v31 = vld [vmem:[%s5631_s3 + $0x20] ss:$8 sps:$4 sm:$0xff]   ;;  %v4308_v35 = vld [vmem:[%s5631_s3 + $0x30] ss:$8 sps:$4 sm:$0xff]  }
  0x3a   : > { %4014 = vmatpush3.bf16.msra.mxu1 %v4234_v33  ;;  %v4305_v33 = vld [vmem:[%s5631_s3 + $0x110] ss:$8 sps:$4 sm:$0xff]  }
  0x3b   : > { %3858 = vmatpush3.bf16.msra.mxu0 %v4153_v38  ;;  %v4240_v38 = vld [vmem:[%s4651_s26 + $0xe8] ss:$52 sps:$4 sm:$0xff]   ;;  %4015 = vmatprep.subr.bf16.mxu1 %v4241_v40 }
  0x3c   : > { %3859 = vmatprep.subr.bf16.mxu0 %v4157_v42  ;;  %v4232_v42 = vld [vmem:[%s4651_s26 + $0xe4] ss:$52 sps:$4 sm:$0xff]   ;;  %v4319_v40 = vld [vmem:[%s5631_s3 + $0x134] ss:$8 sps:$4 sm:$0xff]  }
  0x3d   : > { %1651 = vmatmul.mubr.bf16.gmra.mrb[8].mxu1 %v4240_v38  ;;  %v4316_v38 = vld [vmem:[%s5631_s3 + $0x44] ss:$8 sps:$4 sm:$0xff]  }
  0x3e   : > { %1464 = vmatmul.mubr.bf16.gmra.mrb[12].mxu0 %v4156_v41  ;;  %v4242_v41 = vld [vmem:[%s5629_s1 + $0x2a0] sm:$0xff]  }
  0x3f   : > { %3860 = vmatpush3.bf16.msra.mxu0 %v4158_v43  ;;  %1504 = vmatprep.mubr.bf16.mxu0 %v4163_v46  ;;  %v4229_v43 = vld [vmem:[%s5629_s1 + $0x258] sm:$0xff]   ;;  %v4248_v46 = vld [vmem:[%s5629_s1 + $0x2a8] sm:$0xff]  }
  0x40   : > { %3861 = vmatprep.subr.bf16.mxu0 %v4159_v44  ;;  %4016 = vmatpush3.bf16.msra.mxu1 %v4242_v41  ;;  %v4245_v44 = vld [vmem:[%s5629_s1 + $0x2e8] sm:$0xff]   ;;  %v4317_v41 = vld [vmem:[%s5631_s3 + $0x130] ss:$8 sps:$4 sm:$0xff]  }
  0x41   : > { %4017 = vmatprep.subr.bf16.mxu1 %v4245_v44  ;;  %v4325_v44 = vld [vmem:[%s5631_s3 + $0x144] ss:$8 sps:$4 sm:$0xff]  }
  0x43   : > { %3862 = vmatpush3.bf16.msra.mxu0 %v4160_v48  ;;  %v4236_v48 = vld [vmem:[%s5629_s1 + $0x260] sm:$0xff]  }
  0x44   : > { %3887 = vmatprep.subr.bf16.mxu0 %v4164_v49  ;;  %v4239_v49 = vld [vmem:[%s5629_s1 + $0x220] sm:$0xff]   ;;  %4018 = vmatpush3.bf16.msra.mxu1 %v4248_v46 }
  0x45   : > { %v4328_v46 = vld [vmem:[%s5631_s3 + $0x64] ss:$8 sps:$4 sm:$0xff]  }
  0x46   : > { %1505 = vmatmul.mubr.bf16.vlgmr.msra.gmra.mrb[16].mxu0 %v4161_v50  ;;  %v4251_v50 = vld [vmem:[%s4651_s26 + $0x154] ss:$52 sps:$4 sm:$0xff]  }
  0x47   : > { %3888 = vmatpush3.bf16.msra.mxu0 %v4165_v52  ;;  %1512 = vmatprep.mubr.bf16.mxu0 %v4171_v55  ;;  %v4246_v52 = vld [vmem:[%s4651_s26 + $0x14c] ss:$52 sps:$4 sm:$0xff]   ;;  %v4256_v55 = vld [vmem:[%s5629_s1 + $0x2b0] sm:$0xff]  }
  0x48   : > { %3889 = vmatprep.subr.bf16.mxu0 %v4168_v54  ;;  %1658 = vmatprep.mubr.bf16.mxu1 %v4251_v50  ;;  %v4255_v54 = vld [vmem:[%s5629_s1 + $0x2f0] sm:$0xff]  }
  0x49   : > { %1659 = vmatmul.mubr.bf16.gmra.mrb[12].mxu1 %v4254_v53  ;;  %4019 = vmatprep.subr.bf16.mxu1 %v4255_v54  ;;  %v4334_v50 = vld [vmem:[%s5631_s3 + $0x74] ss:$8 sps:$4 sm:$0xff]   ;;  %v4335_v53 = vld [vmem:[%s5631_s3 + $0x160] ss:$8 sps:$4 sm:$0xff]   ;;  %v4340_v54 = vld [vmem:[%s5631_s3 + $0x84] ss:$8 sps:$4 sm:$0xff]  }
  0x4a   : > { %4020 = vmatpush3.bf16.msra.mxu1 %v4256_v55  ;;  %v4338_v55 = vld [vmem:[%s5631_s3 + $0x80] ss:$8 sps:$4 sm:$0xff]  }
  0x4b   : > { %3890 = vmatpush3.bf16.msra.mxu0 %v4169_v58  ;;  %v4259_v58 = vld [vmem:[%s5629_s1 + $0x2f8] sm:$0xff]  }
  0x4c   : > { %3891 = vmatprep.subr.bf16.mxu0 %v4175_v60  ;;  %v4253_v60 = vld [vmem:[%s5629_s1 + $0x230] sm:$0xff]   ;;  %4021 = vmatprep.subr.bf16.mxu1 %v4259_v58 }
  0x4d   : > { %v4346_v58 = vld [vmem:[%s5631_s3 + $0x94] ss:$8 sps:$4 sm:$0xff]  }
  0x4e   : > { %1513 = vmatmul.mubr.bf16.gmra.mrb[20].mxu0 %v4174_v59  ;;  %v4249_v59 = vld [vmem:[%s4651_s26 + $0x148] ss:$52 sps:$4 sm:$0xff]   ;;  %4022 = vmatpush3.bf16.msra.mxu1 %v4263_v62  ;;  %v4352_v62 = vld [vmem:[%s5631_s3 + $0xa4] ss:$8 sps:$4 sm:$0xff]  }
  0x4f   : > { %3892 = vmatpush3.bf16.msra.mxu0 %v4176_v61  ;;  %1520 = vmatprep.mubr.bf16.mxu0 %v4182_v0  ;;  %v4257_v61 = vld [vmem:[%s5629_s1 + $0x278] sm:$0xff]  }
  0x50   : > { %3893 = vmatprep.subr.bf16.mxu0 %v4179_v1  ;;  %v4265_v0 = vld [vmem:[%s4651_s26 + $0x28] ss:$52 sps:$4 sm:$0xff]   ;;  %v4267_v1 = vld [vmem:[%s4651_s26 + $0x2c] ss:$52 sps:$4 sm:$0xff]  }
  0x51   : > { %1764 = vmatprep.mubr.bf16.mxu1 %v4267_v1  ;;  %v4353_v1 = vld [vmem:[%s5631_s3 + $0x190] ss:$8 sps:$4 sm:$0xff]  }
  0x52   : > { %1765 = vmatmul.mubr.bf16.vlgmr.msra.gmra.mrb[16].mxu1 %v4265_v0  ;;  %v4355_v0 = vld [vmem:[%s5631_s3 + $0x194] ss:$8 sps:$4 sm:$0xff]  }
  0x53   : > { %3894 = vmatpush3.bf16.msra.mxu0 %v4180_v3  ;;  %v4264_v3 = vld [vmem:[%s5629_s1 + $0x300] sm:$0xff]   ;;  %1772 = vmatprep.mubr.bf16.mxu1 %v4272_v4 }
  0x54   : > { %3895 = vmatprep.subr.bf16.mxu0 %v4186_v6  ;;  %v4268_v6 = vld [vmem:[%s4651_s26 + $0x8c] ss:$52 sps:$4 sm:$0xff]  }
  0x55   : > { %v4361_v4 = vld [vmem:[%s5631_s3 + $0x1a4] ss:$8 sps:$4 sm:$0xff]  }
  0x56   : > { %1521 = vmatmul.mubr.bf16.gmra.mrb[24].mxu0 %v4185_v5  ;;  %v4260_v5 = vld [vmem:[%s4651_s26 + $0x20] ss:$52 sps:$4 sm:$0xff]  }
  0x57   : > { %3896 = vmatpush3.bf16.msra.mxu0 %v4187_v7  ;;  %1528 = vmatprep.mubr.bf16.mxu0 %v4193_v11  ;;  %v4271_v7 = vld [vmem:[%s5629_s1 + $0x308] sm:$0xff]   ;;  %v4278_v11 = vld [vmem:[%s5629_s1 + $0x310] sm:$0xff]  }
  0x58   : > { %3897 = vmatprep.subr.bf16.mxu0 %v4190_v9  ;;  %v4279_v9 = vld [vmem:[%s4651_s26 + $0xfc] ss:$52 sps:$4 sm:$0xff]  }
  0x5a   : > { %1773 = vmatmul.mubr.bf16.gmra.mrb[20].mxu1 %v4274_v8 }
  0x5b   : > { %3898 = vmatpush3.bf16.msra.mxu0 %v4191_v14  ;;  %1780 = vmatprep.mubr.bf16.mxu1 %v4279_v9  ;;  %v4285_v14 = vld [vmem:[%s5629_s1 + $0x318] sm:$0xff]  }
  0x5c   : > { %3899 = vmatprep.subr.bf16.mxu0 %v4197_v15  ;;  %v4286_v15 = vld [vmem:[%s4651_s26 + $0x164] ss:$52 sps:$4 sm:$0xff]  }
  0x5e   : > { %1529 = vmatmul.mubr.bf16.gmra.mrb[28].mxu0 %v4196_v16  ;;  %v4277_v16 = vld [vmem:[%s4651_s26 + $0xf0] ss:$52 sps:$4 sm:$0xff]  }
  0x5f   : > { %3900 = vmatpush3.bf16.msra.mxu0 %v4198_v18  ;;  %1569 = vmatprep.mubr.bf16.mxu0 %v4206_v21  ;;  %v4288_v18 = vld [vmem:[%s4651_s26 + $0x160] ss:$52 sps:$4 sm:$0xff]   ;;  %v4290_v21 = vld [vmem:[%s4651_s26 + $0x98] ss:$52 sps:$4 sm:$0xff]  }
  0x60   : > { %3901 = vmatprep.subr.bf16.mxu0 %v4201_v19  ;;  %v4284_v19 = vld [vmem:[%s4651_s26 + $0x158] ss:$52 sps:$4 sm:$0xff]  }
  0x62   : > { %1781 = vmatmul.mubr.bf16.gmra.mrb[24].mxu1 %v4281_v13  ;;  %v4367_v13 = vld [vmem:[%s5631_s3 + $0x1b4] ss:$8 sps:$4 sm:$0xff]  }
  0x63   : > { %3902 = vmatpush3.bf16.msra.mxu0 %v4202_v23  ;;  %1788 = vmatprep.mubr.bf16.mxu1 %v4286_v15  ;;  %v4292_v23 = vld [vmem:[%s4651_s26 + $0x168] ss:$52 sps:$4 sm:$0xff]   ;;  %v4365_v15 = vld [vmem:[%s5631_s3 + $0x1b0] ss:$8 sps:$4 sm:$0xff]  }
  0x64   : > { %3967 = vmatprep.subr.bf16.mxu0 %v4208_v28  ;;  %v4301_v28 = vld [vmem:[%s5631_s3 + $0x104] ss:$8 sps:$4 sm:$0xff]  }
  0x65   : > { %2852 = vmatprep.subr.bf16.mxu1 %v4301_v28 }
  0x66   : > { %1570 = vmatmul.mubr.bf16.vlgmr.msra.gmra.mrb[32].mxu0 %v4204_v27  ;;  %v4296_v27 = vld [vmem:[%s5631_s3 + $0x10] ss:$8 sps:$4 sm:$0xff]  }
  0x67   : > { %3968 = vmatpush3.bf16.msra.mxu0 %v4212_v29  ;;  %1577 = vmatprep.mubr.bf16.mxu0 %v4218_v32  ;;  %v4299_v29 = vld [vmem:[%s5631_s3 + $0x100] ss:$8 sps:$4 sm:$0xff]   ;;  %v4307_v32 = vld [vmem:[%s5631_s3 + $0x114] ss:$8 sps:$4 sm:$0xff]  }
  0x68   : > { %3969 = vmatprep.subr.bf16.mxu0 %v4215_v30  ;;  %2853 = vmatpush1.bf16.msra.mxu1 %v4299_v29  ;;  %v4304_v30 = vld [vmem:[%s5631_s3 + $0x24] ss:$8 sps:$4 sm:$0xff]   ;;  %v4377_v29 = vld [vmem:[%s5631_s3 + $0x1d0] ss:$8 sps:$4 sm:$0xff]  }
  0x69   : > { %2854 = vmatprep.subr.bf16.mxu1 %v4307_v32  ;;  %v4385_v32 = vld [vmem:[%s5631_s3 + $0x1e4] ss:$8 sps:$4 sm:$0xff]  }
  0x6a   : > { %1789 = vmatmul.mubr.bf16.gmra.mrb[28].mxu1 %v4288_v18  ;;  %v4373_v18 = vld [vmem:[%s5631_s3 + $0x1c4] ss:$8 sps:$4 sm:$0xff]  }
  0x6b   : > { %3970 = vmatpush3.bf16.msra.mxu0 %v4216_v34  ;;  %v4310_v34 = vld [vmem:[%s5631_s3 + $0x34] ss:$8 sps:$4 sm:$0xff]  }
  0x6c   : > { %3971 = vmatprep.subr.bf16.mxu0 %v4222_v37  ;;  %2855 = vmatpush1.bf16.msra.mxu1 %v4305_v33  ;;  %v4311_v37 = vld [vmem:[%s5631_s3 + $0x120] ss:$8 sps:$4 sm:$0xff]  }
  0x6e   : > { %1578 = vmatmul.mubr.bf16.gmra.mrb[36].mxu0 %v4221_v36  ;;  %v4313_v36 = vld [vmem:[%s5631_s3 + $0x124] ss:$8 sps:$4 sm:$0xff]  }
  0x6f   : > { %3972 = vmatpush3.bf16.msra.mxu0 %v4225_v39  ;;  %1585 = vmatprep.mubr.bf16.mxu0 %v4232_v42  ;;  %v4314_v39 = vld [vmem:[%s5631_s3 + $0x40] ss:$8 sps:$4 sm:$0xff]   ;;  %v4322_v42 = vld [vmem:[%s5631_s3 + $0x54] ss:$8 sps:$4 sm:$0xff]  }
  0x70   : > { %3973 = vmatprep.subr.bf16.mxu0 %v4229_v43  ;;  %2856 = vmatprep.subr.bf16.mxu1 %v4313_v36  ;;  %v4320_v43 = vld [vmem:[%s5631_s3 + $0x50] ss:$8 sps:$4 sm:$0xff]  }
  0x71   : > { %2857 = vmatpush1.bf16.msra.mxu1 %v4311_v37 }
  0x72   : > { %2858 = vmatprep.subr.bf16.mxu1 %v4319_v40  ;;  %v4388_v40 = vld [vmem:[%s5631_s3 + $0x1f4] ss:$8 sps:$4 sm:$0xff]  }
  0x73   : > { %3974 = vmatpush3.bf16.msra.mxu0 %v4230_v45  ;;  %v4323_v45 = vld [vmem:[%s5631_s3 + $0x140] ss:$8 sps:$4 sm:$0xff]  }
  0x74   : > { %3975 = vmatprep.subr.bf16.mxu0 %v4236_v48  ;;  %v4331_v48 = vld [vmem:[%s5631_s3 + $0x154] ss:$8 sps:$4 sm:$0xff]  }
  0x75   : > { %2859 = vmatpush1.bf16.msra.mxu1 %v4317_v41 }
  0x76   : > { %1586 = vmatmul.mubr.bf16.gmra.mrb[40].mxu0 %v4235_v47  ;;  %2860 = vmatprep.subr.bf16.mxu1 %v4325_v44  ;;  %v4326_v47 = vld [vmem:[%s5631_s3 + $0x60] ss:$8 sps:$4 sm:$0xff]  }
  0x77   : > { %3976 = vmatpush3.bf16.msra.mxu0 %v4239_v49  ;;  %1593 = vmatprep.mubr.bf16.mxu0 %v4246_v52  ;;  %v4329_v49 = vld [vmem:[%s5631_s3 + $0x150] ss:$8 sps:$4 sm:$0xff]   ;;  %v4337_v52 = vld [vmem:[%s5631_s3 + $0x164] ss:$8 sps:$4 sm:$0xff]  }
  0x78   : > { %3977 = vmatprep.subr.bf16.mxu0 %v4243_v51  ;;  %v4332_v51 = vld [vmem:[%s5631_s3 + $0x70] ss:$8 sps:$4 sm:$0xff]  }
  0x79   : > { %2861 = vmatpush1.bf16.msra.mxu1 %v4323_v45 }
  0x7a   : > { %2862 = vmatprep.subr.bf16.mxu1 %v4331_v48 }
  0x7b   : > { %3978 = vmatpush3.bf16.msra.mxu0 %v4244_v56  ;;  %v4343_v56 = vld [vmem:[%s5631_s3 + $0x174] ss:$8 sps:$4 sm:$0xff]  }
  0x7c   : > { %3979 = vmatprep.subr.bf16.mxu0 %v4250_v57  ;;  %v4341_v57 = vld [vmem:[%s5631_s3 + $0x170] ss:$8 sps:$4 sm:$0xff]  }
  0x7d   : > { %2863 = vmatpush1.bf16.msra.mxu1 %v4329_v49 }
  0x7e   : > { %1594 = vmatmul.mubr.bf16.gmra.mrb[44].mxu0 %v4249_v59  ;;  %2864 = vmatprep.subr.bf16.mxu1 %v4337_v52  ;;  %v4344_v59 = vld [vmem:[%s5631_s3 + $0x90] ss:$8 sps:$4 sm:$0xff]  }
  0x7f   : > { %3980 = vmatpush3.bf16.msra.mxu0 %v4253_v60  ;;  %1699 = vmatprep.mubr.bf16.mxu0 %v4262_v63  ;;  %v4349_v60 = vld [vmem:[%s5631_s3 + $0x184] ss:$8 sps:$4 sm:$0xff]   ;;  %v4350_v63 = vld [vmem:[%s5631_s3 + $0xa0] ss:$8 sps:$4 sm:$0xff]  }
  0x80   : > { %3981 = vmatprep.subr.bf16.mxu0 %v4257_v61  ;;  %v4347_v61 = vld [vmem:[%s5631_s3 + $0x180] ss:$8 sps:$4 sm:$0xff]  }
  0x81   : > { %2865 = vmatpush1.bf16.msra.mxu1 %v4335_v53 }
  0x82   : > { %2866 = vmatprep.subr.bf16.mxu1 %v4343_v56 }
  0x83   : > { %3982 = vmatpush3.bf16.msra.mxu0 %v4258_v2  ;;  %v4358_v2 = vld [vmem:[%s5631_s3 + $0xb4] ss:$8 sps:$4 sm:$0xff]  }
  0x84   : > { %4055 = vmatprep.subr.bf16.mxu0 %v4264_v3 }
  0x85   : > { %2867 = vmatpush1.bf16.msra.mxu1 %v4341_v57 }
  0x86   : > { %1700 = vmatmul.mubr.bf16.vlgmr.msra.gmra.mrb[48].mxu0 %v4260_v5  ;;  %2868 = vmatprep.subr.bf16.mxu1 %v4349_v60 }
  0x87   : > { %4056 = vmatpush3.bf16.msra.mxu0 %v4264_v3  ;;  %1707 = vmatprep.mubr.bf16.mxu0 %v4268_v6  ;;  %v4356_v3 = vld [vmem:[%s5631_s3 + $0xb0] ss:$8 sps:$4 sm:$0xff]   ;;  %v4359_v6 = vld [vmem:[%s5631_s3 + $0x1a0] ss:$8 sps:$4 sm:$0xff]  }
  0x88   : > { %4057 = vmatprep.subr.bf16.mxu0 %v4271_v7 }
  0x89   : > { %2869 = vmatpush1.bf16.msra.mxu1 %v4347_v61 }
  0x8a   : > { %2870 = vmatprep.subr.bf16.mxu1 %v4355_v0 }
  0x8b   : > { %4058 = vmatpush3.bf16.msra.mxu0 %v4271_v7 }
  0x8c   : > { %4059 = vmatprep.subr.bf16.mxu0 %v4278_v11 }
  0x8d   : > { %2871 = vmatpush1.bf16.msra.mxu1 %v4353_v1 }
  0x8e   : > { %1708 = vmatmul.mubr.bf16.gmra.mrb[52].mxu0 %v4270_v10  ;;  %2872 = vmatprep.subr.bf16.mxu1 %v4361_v4  ;;  %v4364_v10 = vld [vmem:[%s5631_s3 + $0xc4] ss:$8 sps:$4 sm:$0xff]  }
  0x8f   : > { %1715 = vmatprep.mubr.bf16.mxu0 %v4275_v12  ;;  %4060 = vmatpush3.bf16.msra.mxu0 %v4278_v11  ;;  %v4362_v12 = vld [vmem:[%s5631_s3 + $0xc0] ss:$8 sps:$4 sm:$0xff]  }
  0x90   : > { %4061 = vmatprep.subr.bf16.mxu0 %v4285_v14 }
  0x91   : > { %2873 = vmatpush1.bf16.msra.mxu1 %v4359_v6 }
  0x92   : > { %2874 = vmatprep.subr.bf16.mxu1 %v4367_v13 }
  0x93   : > { %4062 = vmatpush3.bf16.msra.mxu0 %v4285_v14 }
  0x94   : > { %2799 = vmatprep.subr.bf16.mxu0 %v4295_v24  ;;  %v4376_v24 = vld [vmem:[%s5631_s3 + $0xe4] ss:$8 sps:$4 sm:$0xff]  }
  0x95   : > { %2875 = vmatpush1.bf16.msra.mxu1 %v4365_v15 }
  0x96   : > { %1716 = vmatmul.mubr.bf16.gmra.mrb[56].mxu0 %v4277_v16  ;;  %v4370_v16 = vld [vmem:[%s5631_s3 + $0xd4] ss:$8 sps:$4 sm:$0xff]   ;;  %2876 = vmatprep.subr.bf16.mxu1 %v4373_v18 }
  0x97   : > { %1723 = vmatprep.mubr.bf16.mxu0 %v4282_v17  ;;  %v4368_v17 = vld [vmem:[%s5631_s3 + $0xd0] ss:$8 sps:$4 sm:$0xff]  }
  0x9e   : > { %1724 = vmatmul.mubr.bf16.gmra.mrb[60].mxu0 %v4284_v19 }
  0x9f   : > { %4063 = vmatprep.mubr.msk.bf16.mxu0 %vm1394_vm0, %v4289_v20  ;;  %v4371_v20 = vld [vmem:[%s5631_s3 + $0x1c0] ss:$8 sps:$4 sm:$0xff]  }
  0xa0   : > { %2877 = vmatpush1.bf16.msra.mxu1 %v4371_v20 }
  0xa6   : > { %4064 = vmatmul.mubr.msk.bf16.vlgmr.msra.gmra.mrb[64].mxu0 %vm1394_vm0, %v4290_v21 }
  0xa7   : > { %4067 = vmatprep.mubr.msk.bf16.mxu0 %vm1394_vm0, %v4291_v22  ;;  %2800 = vmatpush1.bf16.msra.mxu0 %v4293_v25 }
  0xa8   : > { %2801 = vmatprep.subr.bf16.mxu0 %v4298_v26  ;;  %v4374_v26 = vld [vmem:[%s5631_s3 + $0xe0] ss:$8 sps:$4 sm:$0xff]  }
  0xab   : > { %2802 = vmatpush1.bf16.msra.mxu0 %v4296_v27  ;;  %v4379_v27 = vld [vmem:[%s5631_s3 + $0x1d4] ss:$8 sps:$4 sm:$0xff]  }
  0xac   : > { %2803 = vmatprep.subr.bf16.mxu0 %v4304_v30  ;;  %2878 = vmatprep.subr.bf16.mxu1 %v4379_v27  ;;  %v4382_v30 = vld [vmem:[%s5631_s3 + $0xf4] ss:$8 sps:$4 sm:$0xff]  }
  0xad   : > { %2879 = vmatpush1.bf16.msra.mxu1 %v4377_v29 }
  0xae   : > { %4068 = vmatmul.mubr.msk.bf16.gmra.mrb[68].mxu0 %vm1394_vm0, %v4292_v23  ;;  %2880 = vmatprep.subr.bf16.mxu1 %v4385_v32 }
  0xaf   : > { %2804 = vmatpush1.bf16.msra.mxu0 %v4302_v31  ;;  %v4380_v31 = vld [vmem:[%s5631_s3 + $0xf0] ss:$8 sps:$4 sm:$0xff]  }
  0xb0   : > { %2805 = vmatprep.subr.bf16.mxu0 %v4310_v34  ;;  %v4383_v34 = vld [vmem:[%s5631_s3 + $0x1e0] ss:$8 sps:$4 sm:$0xff]  }
  0xb1   : > { %2881 = vmatpush1.bf16.msra.mxu1 %v4383_v34 }
  0xb2   : > { %2882 = vmatprep.subr.bf16.mxu1 %v4388_v40 }
  0xb3   : > { %2806 = vmatpush1.bf16.msra.mxu0 %v4308_v35 }
  0xb4   : > { %2807 = vmatprep.subr.bf16.mxu0 %v4316_v38 }
  0xb7   : > { %2808 = vmatpush1.bf16.msra.mxu0 %v4314_v39  ;;  %v4565_v39 = vmov 0.0|0.0  }
  0xb8   : > { %2809 = vmatprep.subr.bf16.mxu0 %v4322_v42  ;;  %2831 = vmatprep.mubr.bf16.mxu0 %v4565_v39  ;;  %v4386_v42 = vld [vmem:[%s5631_s3 + $0x1f0] ss:$8 sps:$4 sm:$0xff]  }
  0xb9   : > { %2883 = vmatpush1.bf16.msra.mxu1 %v4386_v42 }
  0xbb   : > { %2810 = vmatpush1.bf16.msra.mxu0 %v4320_v43  ;;  %v4391_v43 = vld [vmem:[%s5631_s3 + $0x204] ss:$8 sps:$4 sm:$0xff]  }
  0xbc   : > { %2811 = vmatprep.subr.bf16.mxu0 %v4328_v46  ;;  %2905 = vmatprep.subr.bf16.mxu1 %v4391_v43 }
  0xbf   : > { %2812 = vmatpush1.bf16.msra.mxu0 %v4326_v47 }
  0xc0   : > { %2813 = vmatprep.subr.bf16.mxu0 %v4334_v50 }
  0xc3   : > { %2814 = vmatpush1.bf16.msra.mxu0 %v4332_v51 }
  0xc4   : > { %2815 = vmatprep.subr.bf16.mxu0 %v4340_v54 }
  0xc7   : > { %2816 = vmatpush1.bf16.msra.mxu0 %v4338_v55 }
  0xc8   : > { %2817 = vmatprep.subr.bf16.mxu0 %v4346_v58 }
  0xcb   : > { %2818 = vmatpush1.bf16.msra.mxu0 %v4344_v59 }
  0xcc   : > { %2819 = vmatprep.subr.bf16.mxu0 %v4352_v62 }
  0xcf   : > { %2820 = vmatpush1.bf16.msra.mxu0 %v4350_v63 }
  0xd0   : > { %2821 = vmatprep.subr.bf16.mxu0 %v4358_v2 }
  0xd3   : > { %2822 = vmatpush1.bf16.msra.mxu0 %v4356_v3 }
  0xd4   : > { %2823 = vmatprep.subr.bf16.mxu0 %v4364_v10 }
  0xd7   : > { %2824 = vmatpush1.bf16.msra.mxu0 %v4362_v12 }
  0xd8   : > { %2825 = vmatprep.subr.bf16.mxu0 %v4370_v16 }
  0xdb   : > { %2826 = vmatpush1.bf16.msra.mxu0 %v4368_v17 }
  0xdc   : > { %2827 = vmatprep.subr.bf16.mxu0 %v4376_v24 }
  0xdf   : > { %2828 = vmatpush1.bf16.msra.mxu0 %v4374_v26 }
  0xe0   : > { %2829 = vmatprep.subr.bf16.mxu0 %v4382_v30 }
  0xe3   : > { %2830 = vmatpush1.bf16.msra.mxu0 %v4380_v31 }
  0xe6   : > { %2832 = vmatmul.mubr.bf16.vlgmr.msra.gmra.mrb[72].mxu0 %v4565_v39 }
  0xf9   : > { %v3823_v5 = vpop.f32.mrb[0].mxu0 }
  0xfa   : > { %v3824_v7 = vpop.f32.mrb[1].mxu0 }
  0xfb   : > { %v5116_v8 = vadd.f32 %v3824_v7, %v3823_v5  ;;  %v3826_v9 = vpop.f32.mrb[2].mxu0 }
  0xfc   : > { %v3827_v11 = vpop.f32.mrb[3].mxu0 }
  0xfd   : > { %v5127_v14 = vadd.f32 %v3827_v11, %v3826_v9 }
 0x100   : > { %v3943_v2 = vpop.f32.mrb[0].mxu1 }
 0x101   : > { %v3829_v19 = vpop.f32.mrb[4].mxu0  ;;  %v3944_v4 = vpop.f32.mrb[1].mxu1 }
 0x102   : > { %v3830_v21 = vpop.f32.mrb[5].mxu0  ;;  %v3945_v6 = vadd.f32 %v3944_v4, %v3943_v2  ;;  %v3946_v7 = vpop.f32.mrb[2].mxu1 }
 0x103   : > { %v3831_v22 = vadd.f32 %v3830_v21, %v3829_v19  ;;  %v3832_v23 = vpop.f32.mrb[6].mxu0 }
 0x104   : > { %v3833_v25 = vpop.f32.mrb[7].mxu0 }
 0x105   : > { %v3834_v28 = vadd.f32 %v3833_v25, %v3832_v23 }
 0x109   : > { %v3835_v33 = vpop.f32.mrb[8].mxu0 }
 0x10a   : > { %v3836_v35 = vpop.f32.mrb[9].mxu0 }
 0x10b   : > { %v3837_v36 = vadd.f32 %v3836_v35, %v3835_v33  ;;  %v3838_v37 = vpop.f32.mrb[10].mxu0 }
 0x10c   : > { %v3839_v38 = vpop.f32.mrb[11].mxu0 }
 0x10d   : > { %v3840_v41 = vadd.f32 %v3839_v38, %v3838_v37 }
 0x111   : > { %v3841_v44 = vpop.f32.mrb[12].mxu0 }
 0x112   : > { %v3842_v45 = vpop.f32.mrb[13].mxu0 }
 0x113   : > { %v3843_v46 = vadd.f32 %v3842_v45, %v3841_v44  ;;  %v3844_v47 = vpop.f32.mrb[14].mxu0 }
 0x114   : > { %v3845_v48 = vpop.f32.mrb[15].mxu0 }
 0x115   : > { %v3846_v49 = vadd.f32 %v3845_v48, %v3844_v47 }
 0x119   : > { %v3863_v50 = vpop.f32.mrb[16].mxu0 }
 0x11a   : > { %v3864_v51 = vpop.f32.mrb[17].mxu0 }
 0x11b   : > { %v3865_v52 = vadd.f32 %v3864_v51, %v3863_v50  ;;  %v3866_v53 = vpop.f32.mrb[18].mxu0 }
 0x11c   : > { %v3867_v54 = vpop.f32.mrb[19].mxu0 }
 0x11d   : > { %v1507_v55 = vadd.f32 %v3865_v52, %v5116_v8  ;;  %v3868_v56 = vadd.f32 %v3867_v54, %v3866_v53  ;;  %v3947_v8 = vpop.f32.mrb[3].mxu1 }
 0x11e   : > { %v3948_v12 = vadd.f32 %v3947_v8, %v3946_v7  ;;  %v3949_v20 = vpop.f32.mrb[4].mxu1 }
 0x11f   : > { %v1510_v57 = vadd.f32 %v3868_v56, %v5127_v14 }
 0x121   : > { %v3869_v58 = vpop.f32.mrb[20].mxu0 }
 0x122   : > { %v3870_v59 = vpop.f32.mrb[21].mxu0 }
 0x123   : > { %v3871_v60 = vadd.f32 %v3870_v59, %v3869_v58  ;;  %v3872_v61 = vpop.f32.mrb[22].mxu0 }
 0x124   : > { %v3873_v62 = vpop.f32.mrb[23].mxu0 }
 0x125   : > { %v1515_v63 = vadd.f32 %v3871_v60, %v3831_v22  ;;  %v3874_v0 = vadd.f32 %v3873_v62, %v3872_v61  ;;  %v3950_v22 = vpop.f32.mrb[5].mxu1 }
 0x126   : > { %v3951_v25 = vadd.f32 %v3950_v22, %v3949_v20  ;;  %v3952_v26 = vpop.f32.mrb[6].mxu1 }
 0x127   : > { %v1518_v1 = vadd.f32 %v3874_v0, %v3834_v28  ;;  %v3953_v27 = vpop.f32.mrb[7].mxu1 }
 0x128   : > { %v3954_v29 = vadd.f32 %v3953_v27, %v3952_v26  ;;  %v3955_v37 = vpop.f32.mrb[8].mxu1 }
 0x129   : > { %v3875_v3 = vpop.f32.mrb[24].mxu0  ;;  %v3956_v38 = vpop.f32.mrb[9].mxu1 }
 0x12a   : > { %v3876_v5 = vpop.f32.mrb[25].mxu0  ;;  %v3957_v42 = vadd.f32 %v3956_v38, %v3955_v37  ;;  %v3958_v43 = vpop.f32.mrb[10].mxu1 }
 0x12b   : > { %v3877_v9 = vadd.f32 %v3876_v5, %v3875_v3  ;;  %v3878_v10 = vpop.f32.mrb[26].mxu0  ;;  %v3959_v44 = vpop.f32.mrb[11].mxu1 }
 0x12c   : > { %v3879_v11 = vpop.f32.mrb[27].mxu0  ;;  %v3960_v47 = vadd.f32 %v3959_v44, %v3958_v43 }
 0x12d   : > { %v1523_v13 = vadd.f32 %v3877_v9, %v3837_v36  ;;  %v3880_v14 = vadd.f32 %v3879_v11, %v3878_v10 }
 0x12f   : > { %v1526_v15 = vadd.f32 %v3880_v14, %v3840_v41 }
 0x131   : > { %v3881_v16 = vpop.f32.mrb[28].mxu0 }
 0x132   : > { %v3882_v17 = vpop.f32.mrb[29].mxu0 }
 0x133   : > { %v3883_v18 = vadd.f32 %v3882_v17, %v3881_v16  ;;  %v3884_v19 = vpop.f32.mrb[30].mxu0 }
 0x134   : > { %v3885_v21 = vpop.f32.mrb[31].mxu0 }
 0x135   : > { %v1531_v23 = vadd.f32 %v3883_v18, %v3843_v46  ;;  %v3886_v24 = vadd.f32 %v3885_v21, %v3884_v19 }
 0x137   : > { %v1534_v28 = vadd.f32 %v3886_v24, %v3846_v49 }
 0x139   : > { %v3903_v30 = vpop.f32.mrb[32].mxu0 }
 0x13a   : > { %v3904_v31 = vpop.f32.mrb[33].mxu0 }
 0x13b   : > { %v3905_v32 = vadd.f32 %v3904_v31, %v3903_v30  ;;  %v3906_v33 = vpop.f32.mrb[34].mxu0 }
 0x13c   : > { %v3907_v34 = vpop.f32.mrb[35].mxu0 }
 0x13d   : > { %v1572_v35 = vadd.f32 %v3905_v32, %v1507_v55  ;;  %v3908_v36 = vadd.f32 %v3907_v34, %v3906_v33  ;;  %v3961_v55 = vpop.f32.mrb[12].mxu1 }
 0x13e   : > { %v3962_v60 = vpop.f32.mrb[13].mxu1 }
 0x13f   : > { %v1575_v40 = vadd.f32 %v3908_v36, %v1510_v57  ;;  %v1637_v41 = vadd.f32 %v3945_v6, %v1572_v35  ;;  %v3963_v61 = vadd.f32 %v3962_v60, %v3961_v55  ;;  %v3964_v62 = vpop.f32.mrb[14].mxu1 }
 0x140   : > { %v3965_v3 = vpop.f32.mrb[15].mxu1 }
 0x141   : > { %v1640_v45 = vadd.f32 %v3948_v12, %v1575_v40  ;;  %v3909_v46 = vpop.f32.mrb[36].mxu0  ;;  %v3966_v5 = vadd.f32 %v3965_v3, %v3964_v62  ;;  %v4023_v14 = vpop.f32.mrb[16].mxu1 }
 0x142   : > { %v3910_v48 = vpop.f32.mrb[37].mxu0  ;;  %v4024_v17 = vpop.f32.mrb[17].mxu1 }
 0x143   : > { %v3911_v49 = vadd.f32 %v3910_v48, %v3909_v46  ;;  %v3912_v50 = vpop.f32.mrb[38].mxu0  ;;  %v4025_v20 = vadd.f32 %v4024_v17, %v4023_v14  ;;  %v4026_v21 = vpop.f32.mrb[18].mxu1 }
 0x144   : > { %v3913_v51 = vpop.f32.mrb[39].mxu0  ;;  %v4027_v22 = vpop.f32.mrb[19].mxu1 }
 0x145   : > { %v1580_v52 = vadd.f32 %v3911_v49, %v1515_v63  ;;  %v3914_v53 = vadd.f32 %v3913_v51, %v3912_v50  ;;  %v4028_v26 = vadd.f32 %v4027_v22, %v4026_v21  ;;  %v4029_v31 = vpop.f32.mrb[20].mxu1 }
 0x146   : > { %v4030_v33 = vpop.f32.mrb[21].mxu1 }
 0x147   : > { %v1583_v54 = vadd.f32 %v3914_v53, %v1518_v1  ;;  %v1645_v56 = vadd.f32 %v3951_v25, %v1580_v52  ;;  %v4031_v36 = vadd.f32 %v4030_v33, %v4029_v31  ;;  %v4032_v37 = vpop.f32.mrb[22].mxu1 }
 0x149   : > { %v1648_v58 = vadd.f32 %v3954_v29, %v1583_v54  ;;  %v3915_v59 = vpop.f32.mrb[40].mxu0 }
 0x14a   : > { %v3916_v57 = vpop.f32.mrb[41].mxu0 }
 0x14b   : > { %v3917_v0 = vadd.f32 %v3916_v57, %v3915_v59  ;;  %v3918_v2 = vpop.f32.mrb[42].mxu0 }
 0x14c   : > { %v3919_v4 = vpop.f32.mrb[43].mxu0 }
 0x14d   : > { %v1588_v6 = vadd.f32 %v3917_v0, %v1523_v13  ;;  %v3920_v7 = vadd.f32 %v3919_v4, %v3918_v2 }
 0x14f   : > { %v1591_v9 = vadd.f32 %v3920_v7, %v1526_v15  ;;  %v1653_v10 = vadd.f32 %v3957_v42, %v1588_v6 }
 0x151   : > { %v1656_v63 = vadd.f32 %v3960_v47, %v1591_v9  ;;  %v3921_v8 = vpop.f32.mrb[44].mxu0 }
 0x152   : > { %v3922_v1 = vpop.f32.mrb[45].mxu0 }
 0x153   : > { %v3923_v11 = vadd.f32 %v3922_v1, %v3921_v8  ;;  %v3924_v12 = vpop.f32.mrb[46].mxu0 }
 0x154   : > { %v3925_v16 = vpop.f32.mrb[47].mxu0 }
 0x155   : > { %v1596_v18 = vadd.f32 %v3923_v11, %v1531_v23  ;;  %v3926_v19 = vadd.f32 %v3925_v16, %v3924_v12  ;;  %v4033_v23 = vpop.f32.mrb[23].mxu1 }
 0x156   : > { %v4034_v40 = vadd.f32 %v4033_v23, %v4032_v37  ;;  %v4035_v48 = vpop.f32.mrb[24].mxu1 }
 0x157   : > { %v1599_v24 = vadd.f32 %v3926_v19, %v1534_v28  ;;  %v1661_v25 = vadd.f32 %v3963_v61, %v1596_v18  ;;  %v4036_v50 = vpop.f32.mrb[25].mxu1 }
 0x158   : > { %v4037_v53 = vadd.f32 %v4036_v50, %v4035_v48  ;;  %v4038_v54 = vpop.f32.mrb[26].mxu1 }
 0x159   : > { %v1664_v13 = vadd.f32 %v3966_v5, %v1599_v24  ;;  %v3983_v27 = vpop.f32.mrb[48].mxu0 }
 0x15a   : > { %v3984_v15 = vpop.f32.mrb[49].mxu0 }
 0x15b   : > { %v3985_v29 = vadd.f32 %v3984_v15, %v3983_v27  ;;  %v3986_v30 = vpop.f32.mrb[50].mxu0 }
 0x15c   : > { %v3987_v32 = vpop.f32.mrb[51].mxu0 }
 0x15d   : > { %v1702_v34 = vadd.f32 %v3985_v29, %v1637_v41  ;;  %v3988_v35 = vadd.f32 %v3987_v32, %v3986_v30  ;;  %v4039_v41 = vpop.f32.mrb[27].mxu1 }
 0x15e   : > { %v4040_v59 = vadd.f32 %v4039_v41, %v4038_v54  ;;  %v4041_v2 = vpop.f32.mrb[28].mxu1 }
 0x15f   : > { %v1705_v38 = vadd.f32 %v3988_v35, %v1640_v45  ;;  %v1767_v42 = vadd.f32 %v4025_v20, %v1702_v34  ;;  %v4042_v4 = vpop.f32.mrb[29].mxu1 }
 0x160   : > { %v4043_v7 = vadd.f32 %v4042_v4, %v4041_v2  ;;  %v4044_v9 = vpop.f32.mrb[30].mxu1  ;;  %v4394_v4 = vld [vmem:[%s5631_s3 + $0x214] ss:$8 sps:$4 sm:$0xff]  }
 0x161   : > { %v3989_v43 = vpop.f32.mrb[52].mxu0  ;;  %v1770_v28 = vadd.f32 %v4028_v26, %v1705_v38 }
 0x162   : > { %v3990_v44 = vpop.f32.mrb[53].mxu0 }
 0x163   : > { %v3991_v46 = vadd.f32 %v3990_v44, %v3989_v43  ;;  %v3992_v47 = vpop.f32.mrb[54].mxu0  ;;  %v3582_v43 = vld [vmem:[%s5630_s2] ss:$0 sm:$0xff] }
 0x164   : > { %v3993_v49 = vpop.f32.mrb[55].mxu0 }
 0x165   : > { %v1710_v51 = vadd.f32 %v3991_v46, %v1645_v56  ;;  %v3994_v52 = vadd.f32 %v3993_v49, %v3992_v47  ;;  %v4045_v56 = vpop.f32.mrb[31].mxu1 }
 0x166   : > { %v4046_v1 = vadd.f32 %v4045_v56, %v4044_v9  ;;  %v4392_v9 = vld [vmem:[%s5631_s3 + $0x210] ss:$8 sps:$4 sm:$0xff]  }
 0x167   : > { %v1713_v55 = vadd.f32 %v3994_v52, %v1648_v58  ;;  %v1775_v60 = vadd.f32 %v4031_v36, %v1710_v51 }
 0x169   : > { %v3995_v57 = vpop.f32.mrb[56].mxu0  ;;  %v1778_v45 = vadd.f32 %v4034_v40, %v1713_v55 }
 0x16a   : > { %v3996_v61 = vpop.f32.mrb[57].mxu0 }
 0x16b   : > { %v3997_v62 = vadd.f32 %v3996_v61, %v3995_v57  ;;  %v3998_v0 = vpop.f32.mrb[58].mxu0 }
 0x16c   : > { %v3999_v3 = vpop.f32.mrb[59].mxu0 }
 0x16d   : > { %v1718_v5 = vadd.f32 %v3997_v62, %v1653_v10  ;;  %v4000_v6 = vadd.f32 %v3999_v3, %v3998_v0  ;;  %v4455_v0 = vld [vmem:[%s5631_s3 + $0x360] ss:$8 sps:$4 sm:$0xff]  }
 0x16f   : > { %v1721_v8 = vadd.f32 %v4000_v6, %v1656_v63  ;;  %v1783_v11 = vadd.f32 %v4037_v53, %v1718_v5  ;;  %v4544_v53 = vld [vmem:[%s5633_s5 + $0xb4] ss:$8 sps:$4 sm:$0xff]  }
 0x171   : > { %v4001_v12 = vpop.f32.mrb[60].mxu0  ;;  %v1786_v58 = vadd.f32 %v4040_v59, %v1721_v8  ;;  %v4395_v8 = vld [vmem:[%s5631_s3 + $0x220] ss:$8 sps:$4 sm:$0xff]  }
 0x172   : > { %v4002_v14 = vpop.f32.mrb[61].mxu0 }
 0x173   : > { %v4003_v16 = vadd.f32 %v4002_v14, %v4001_v12  ;;  %v4004_v17 = vpop.f32.mrb[62].mxu0  ;;  %v4400_v12 = vld [vmem:[%s5631_s3 + $0x234] ss:$8 sps:$4 sm:$0xff]   ;;  %v4398_v14 = vld [vmem:[%s5631_s3 + $0x230] ss:$8 sps:$4 sm:$0xff]  }
 0x174   : > { %v4005_v18 = vpop.f32.mrb[63].mxu0 }
 0x175   : > { %v1726_v19 = vadd.f32 %v4003_v16, %v1661_v25  ;;  %v4006_v20 = vadd.f32 %v4005_v18, %v4004_v17  ;;  %v4403_v16 = vld [vmem:[%s5631_s3 + $0x244] ss:$8 sps:$4 sm:$0xff]   ;;  %v4401_v17 = vld [vmem:[%s5631_s3 + $0x240] ss:$8 sps:$4 sm:$0xff]   ;;  %v4406_v18 = vld [vmem:[%s5631_s3 + $0x254] ss:$8 sps:$4 sm:$0xff]  }
 0x177   : > { %v1729_v21 = vadd.f32 %v4006_v20, %v1664_v13  ;;  %v1791_v22 = vadd.f32 %v4043_v7, %v1726_v19  ;;  %v4404_v19 = vld [vmem:[%s5631_s3 + $0x250] ss:$8 sps:$4 sm:$0xff]   ;;  %v4409_v20 = vld [vmem:[%s5631_s3 + $0x264] ss:$8 sps:$4 sm:$0xff]  }
 0x179   : > { %v4065_v24 = vpop.f32.mrb[64].mxu0  ;;  %v1794_v26 = vadd.f32 %v4046_v1, %v1729_v21  ;;  %v4407_v21 = vld [vmem:[%s5631_s3 + $0x260] ss:$8 sps:$4 sm:$0xff]  }
 0x17a   : > { %v1840_v10 = vadd.f32 %v4065_v24, %v1775_v60  ;;  %v1831_v27 = vpop.f32.mrb[65].mxu0  ;;  %v4567_v60 = vmov 0.0   ;;  %v4410_v24 = vld [vmem:[%s5631_s3 + $0x270] ss:$8 sps:$4 sm:$0xff]  }
 0x17b   : > { %v1832_v15 = vadd.f32 %v1831_v27, %v1767_v42  ;;  %v4066_v29 = vpop.f32.mrb[66].mxu0  ;;  %v5238_v56 = vrot.slane %v4567_v60, 4  ;;  %v4418_v27 = vld [vmem:[%s5631_s3 + $0x294] ss:$8 sps:$4 sm:$0xff]  }
 0x17c   : > { %v1843_v30 = vadd.f32 %v4066_v29, %v1778_v45  ;;  %v1834_v63 = vpop.f32.mrb[67].mxu0  ;;  %v4389_v45 = vld [vmem:[%s5631_s3 + $0x200] ss:$8 sps:$4 sm:$0xff]   ;;  %v4421_v29 = vld [vmem:[%s5631_s3 + $0x2a4] ss:$8 sps:$4 sm:$0xff]  }
 0x17d   : > { %v1862_v31 = vmax.f32 %v1832_v15, %v1840_v10  ;;  %v1835_v32 = vadd.f32 %v1834_v63, %v1770_v28  ;;  %v4413_v10 = vld [vmem:[%s5631_s3 + $0x280] ss:$8 sps:$4 sm:$0xff]   ;;  %v4416_v15 = vld [vmem:[%s5631_s3 + $0x290] ss:$8 sps:$4 sm:$0xff]   ;;  %v4424_v63 = vld [vmem:[%s5631_s3 + $0x2b4] ss:$8 sps:$4 sm:$0xff]  }
 0x17f   : > { %v1863_v33 = vmax.f32 %v1835_v32, %v1843_v30  ;;  %v4419_v30 = vld [vmem:[%s5631_s3 + $0x2a0] ss:$8 sps:$4 sm:$0xff]   ;;  %v4427_v32 = vld [vmem:[%s5631_s3 + $0x2c4] ss:$8 sps:$4 sm:$0xff]  }
 0x181   : > { %v4069_v34 = vpop.f32.mrb[68].mxu0 }
 0x182   : > { %v1856_v35 = vadd.f32 %v4069_v34, %v1791_v22  ;;  %v1847_v36 = vpop.f32.mrb[69].mxu0  ;;  %v4412_v22 = vld [vmem:[%s5631_s3 + $0x274] ss:$8 sps:$4 sm:$0xff]  }
 0x183   : > { %v1848_v37 = vadd.f32 %v1847_v36, %v1783_v11  ;;  %v4070_v23 = vpop.f32.mrb[70].mxu0  ;;  %v4430_v34 = vld [vmem:[%s5631_s3 + $0x2d4] ss:$8 sps:$4 sm:$0xff]   ;;  %v4433_v36 = vld [vmem:[%s5631_s3 + $0x2e4] ss:$8 sps:$4 sm:$0xff]  }
 0x184   : > { %v1859_v25 = vadd.f32 %v4070_v23, %v1794_v26  ;;  %v1850_v38 = vpop.f32.mrb[71].mxu0  ;;  %v4415_v26 = vld [vmem:[%s5631_s3 + $0x284] ss:$8 sps:$4 sm:$0xff]   ;;  %v4436_v23 = vld [vmem:[%s5631_s3 + $0x2f4] ss:$8 sps:$4 sm:$0xff]  }
 0x185   : > { %v1864_v13 = vmax.f32 %v1848_v37, %v1856_v35  ;;  %v1851_v40 = vadd.f32 %v1850_v38, %v1786_v58  ;;  %v4428_v35 = vld [vmem:[%s5631_s3 + $0x2d0] ss:$8 sps:$4 sm:$0xff]   ;;  %v4431_v37 = vld [vmem:[%s5631_s3 + $0x2e0] ss:$8 sps:$4 sm:$0xff]  }
 0x186   : > { %v4545_v11 = vld [vmem:[%s5633_s5 + $0xc0] ss:$8 sps:$4 sm:$0xff]  }
 0x187   : > { %v1866_v42 = vmax.f32 %v1862_v31, %v1864_v13  ;;  %v1865_v44 = vmax.f32 %v1851_v40, %v1859_v25  ;;  %v4422_v31 = vld [vmem:[%s5631_s3 + $0x2b0] ss:$8 sps:$4 sm:$0xff]   ;;  %v4439_v13 = vld [vmem:[%s5631_s3 + $0x304] ss:$8 sps:$4 sm:$0xff]  }
 0x188   : > { %v4434_v25 = vld [vmem:[%s5631_s3 + $0x2f0] ss:$8 sps:$4 sm:$0xff]  }
 0x189   : > { %v1875_v46 = vadd.f32 %v3582_v43, %v1866_v42  ;;  %v1867_v47 = vmax.f32 %v1863_v33, %v1865_v44  ;;  %v4425_v33 = vld [vmem:[%s5631_s3 + $0x2c0] ss:$8 sps:$4 sm:$0xff]   ;;  %v4442_v44 = vld [vmem:[%s5631_s3 + $0x314] ss:$8 sps:$4 sm:$0xff]  }
 0x18b   : > { %vm1877_vm1 = vcmp.ge.f32.partialorder %v1875_v46, 0.0  ;;  %v1879_v28 = vmul.f32 0.01, %v1875_v46  ;;  %v1876_v48 = vadd.f32 %v3582_v43, %v1867_v47  ;;  %v4437_v43 = vld [vmem:[%s5631_s3 + $0x300] ss:$8 sps:$4 sm:$0xff]  }
 0x18c   : > { %v4440_v47 = vld [vmem:[%s5631_s3 + $0x310] ss:$8 sps:$4 sm:$0xff]  }
 0x18d   : > { %v5184_v49 = vsel %vm1877_vm1, %v1875_v46, %v1879_v28  ;;  %v1880_v50 = vmul.f32 0.01, %v1876_v48  ;;  %vm1878_vm3 = vcmp.ge.f32.partialorder %v1876_v48, 0.0  ;;  %v4445_v28 = vld [vmem:[%s5631_s3 + $0x324] ss:$8 sps:$4 sm:$0xff]  }
 0x18e   : > { %v1884_v51 = vrot.slane %v5184_v49, 1  ;;  %v1886_v52 = vrot.slane %v5184_v49, 3  ;;  %v5195_v54 = vrot.slane %v5184_v49, 4  ;;  %v1894_v55 = vrot.slane %v5184_v49, 6 }
 0x18f   : > { %v1882_v41 = vsel %vm1878_vm3, %v1876_v48, %v1880_v50  ;;  %v1892_v59 = vrot.slane %v5184_v49, 5  ;;  %v1890_v38 = vrot.slane %v5184_v49, 2  ;;  %v1896_v40 = vrot.slane %v5184_v49, 7  ;;  %v4443_v48 = vld [vmem:[%s5631_s3 + $0x320] ss:$8 sps:$4 sm:$0xff]  }
 0x190   : > { %v3735_v57 = vpack.c.bf16 %v1884_v51, %v4567_v60  ;;  %v1901_v61 = vrot.slane %v1884_v51, 4  ;;  %v1903_v62 = vrot.slane %v1886_v52, 4  ;;  %v5215_v5 = vpack.c.bf16 %v1882_v41, %v1894_v55  ;;  %v4446_v50 = vld [vmem:[%s5631_s3 + $0x330] ss:$8 sps:$4 sm:$0xff]   ;;  %v4454_v55 = vld [vmem:[%s5631_s3 + $0x354] ss:$8 sps:$4 sm:$0xff]  }
 0x191   : > { %v5220_v6 = vpack.c.bf16 %v5195_v54, %v4567_v60  ;;  %v5222_v7 = vpack.c.bf16 %v1892_v59, %v1886_v52  ;;  %v3741_v1 = vpack.c.bf16 %v5238_v56, %v5195_v54  ;;  %v3744_v58 = vpack.c.bf16 %v4567_v60, %v1884_v51  ;;  %v4451_v51 = vld [vmem:[%s5631_s3 + $0x344] ss:$8 sps:$4 sm:$0xff]  }
 0x192   : > { %3736 = vmatprep.mubr.msk.bf16.mxu1 %vm5190_vm5, %v3735_v57  ;;  %v3729_v2 = vpack.c.bf16 %v1901_v61, %v1886_v52  ;;  %v3738_v3 = vpack.c.bf16 %v1903_v62, %v4567_v60  ;;  %v3747_v42 = vpack.c.bf16 %v1890_v38, %v5184_v49  ;;  %v3750_v46 = vpack.c.bf16 %v5238_v56, %v1896_v40  ;;  %v4448_v49 = vld [vmem:[%s5631_s3 + $0x334] ss:$8 sps:$4 sm:$0xff]   ;;  %v4449_v52 = vld [vmem:[%s5631_s3 + $0x340] ss:$8 sps:$4 sm:$0xff]   ;;  %v4452_v61 = vld [vmem:[%s5631_s3 + $0x350] ss:$8 sps:$4 sm:$0xff]  }
 0x193   : > { %2885 = vmatmul.mubr.bf16.vlgmr.msra.gmra.mrb[32].mxu1 %v4565_v39  ;;  %v4397_v39 = vld [vmem:[%s5631_s3 + $0x224] ss:$8 sps:$4 sm:$0xff]   ;;  %v4482_v38 = vld [vmem:[%s5631_s3 + $0x3f0] ss:$8 sps:$4 sm:$0xff]  }
 0x194   : > { %2906 = vmatpush1.bf16.msra.mxu1 %v4389_v45  ;;  %3730 = vmatprep.mubr.msk.bf16.mxu0 %vm5205_vm6, %v3729_v2  ;;  %v4457_v62 = vld [vmem:[%s5631_s3 + $0x364] ss:$8 sps:$4 sm:$0xff]   ;;  %v4460_v2 = vld [vmem:[%s5631_s3 + $0x374] ss:$8 sps:$4 sm:$0xff]   ;;  %v4536_v40 = vld [vmem:[%s5633_s5 + $0x90] ss:$8 sps:$4 sm:$0xff]  }
 0x195   : > { %3739 = vmatprep.mubr.msk.bf16.mxu1 %vm5190_vm5, %v3738_v3  ;;  %3733 = vmatmul.mubr.msk.bf16.gmra.mrb[76].mxu0 %vm5190_vm5, %v5220_v6  ;;  %v4509_v3 = vld [vmem:[%s5633_s5] ss:$8 sps:$4 sm:$0xff]  }
 0x196   : > { %2907 = vmatprep.subr.bf16.mxu1 %v4394_v4  ;;  %v4511_v4 = vld [vmem:[%s5633_s5 + $0x4] ss:$8 sps:$4 sm:$0xff]  }
 0x197   : > { %3296 = vmatprep.subr.bf16.mxu0 %v4511_v4 }
 0x198   : > { %2908 = vmatpush1.bf16.msra.mxu1 %v4392_v9  ;;  %v4463_v9 = vld [vmem:[%s5631_s3 + $0x384] ss:$8 sps:$4 sm:$0xff]   ;;  %3297 = vmatpush1.bf16.msra.mxu0 %v4509_v3 }
 0x199   : > { %2909 = vmatprep.subr.bf16.mxu1 %v4397_v39  ;;  %v4512_v39 = vld [vmem:[%s5633_s5 + $0x10] ss:$8 sps:$4 sm:$0xff]  }
 0x19b   : > { %3742 = vmatmul.mubr.msk.bf16.gmra.mrb[36].mxu1 %vm5205_vm6, %v3741_v1  ;;  %v4461_v1 = vld [vmem:[%s5631_s3 + $0x380] ss:$8 sps:$4 sm:$0xff]  }
 0x19c   : > { %2910 = vmatpush1.bf16.msra.mxu1 %v4395_v8  ;;  %3745 = vmatprep.mubr.msk.bf16.mxu1 %vm5247_vm7, %v3744_v58  ;;  %v4517_v8 = vld [vmem:[%s5633_s5 + $0x24] ss:$8 sps:$4 sm:$0xff]   ;;  %v4515_v58 = vld [vmem:[%s5633_s5 + $0x20] ss:$8 sps:$4 sm:$0xff]  }
 0x19d   : > { %2911 = vmatprep.subr.bf16.mxu1 %v4400_v12  ;;  %v4466_v12 = vld [vmem:[%s5631_s3 + $0x394] ss:$8 sps:$4 sm:$0xff]  }
 0x1a0   : > { %2912 = vmatpush1.bf16.msra.mxu1 %v4398_v14  ;;  %v4520_v14 = vld [vmem:[%s5633_s5 + $0x34] ss:$8 sps:$4 sm:$0xff]  }
 0x1a1   : > { %2913 = vmatprep.subr.bf16.mxu1 %v4403_v16  ;;  %v4464_v16 = vld [vmem:[%s5631_s3 + $0x390] ss:$8 sps:$4 sm:$0xff]  }
 0x1a4   : > { %2914 = vmatpush1.bf16.msra.mxu1 %v4401_v17  ;;  %v4469_v17 = vld [vmem:[%s5631_s3 + $0x3a4] ss:$8 sps:$4 sm:$0xff]  }
 0x1a5   : > { %2915 = vmatprep.subr.bf16.mxu1 %v4406_v18  ;;  %v4518_v18 = vld [vmem:[%s5633_s5 + $0x30] ss:$8 sps:$4 sm:$0xff]  }
 0x1a8   : > { %2916 = vmatpush1.bf16.msra.mxu1 %v4404_v19  ;;  %v4523_v19 = vld [vmem:[%s5633_s5 + $0x44] ss:$8 sps:$4 sm:$0xff]  }
 0x1a9   : > { %2917 = vmatprep.subr.bf16.mxu1 %v4409_v20  ;;  %v4467_v20 = vld [vmem:[%s5631_s3 + $0x3a0] ss:$8 sps:$4 sm:$0xff]  }
 0x1ac   : > { %2918 = vmatpush1.bf16.msra.mxu1 %v4407_v21  ;;  %v4472_v21 = vld [vmem:[%s5631_s3 + $0x3b4] ss:$8 sps:$4 sm:$0xff]  }
 0x1ad   : > { %2919 = vmatprep.subr.bf16.mxu1 %v4412_v22  ;;  %v4521_v22 = vld [vmem:[%s5633_s5 + $0x40] ss:$8 sps:$4 sm:$0xff]  }
 0x1b0   : > { %2920 = vmatpush1.bf16.msra.mxu1 %v4410_v24  ;;  %v4526_v24 = vld [vmem:[%s5633_s5 + $0x54] ss:$8 sps:$4 sm:$0xff]  }
 0x1b1   : > { %2921 = vmatprep.subr.bf16.mxu1 %v4415_v26  ;;  %v4470_v26 = vld [vmem:[%s5631_s3 + $0x3b0] ss:$8 sps:$4 sm:$0xff]  }
 0x1b4   : > { %2922 = vmatpush1.bf16.msra.mxu1 %v4413_v10  ;;  %v4475_v10 = vld [vmem:[%s5631_s3 + $0x3c4] ss:$8 sps:$4 sm:$0xff]  }
 0x1b5   : > { %2923 = vmatprep.subr.bf16.mxu1 %v4418_v27  ;;  %v4524_v27 = vld [vmem:[%s5633_s5 + $0x50] ss:$8 sps:$4 sm:$0xff]  }
 0x1b8   : > { %2924 = vmatpush1.bf16.msra.mxu1 %v4416_v15  ;;  %v4529_v15 = vld [vmem:[%s5633_s5 + $0x64] ss:$8 sps:$4 sm:$0xff]  }
 0x1b9   : > { %2925 = vmatprep.subr.bf16.mxu1 %v4421_v29  ;;  %v5378_v41 = vpop.f32.mrb[72].mxu0  ;;  %v4473_v29 = vld [vmem:[%s5631_s3 + $0x3c0] ss:$8 sps:$4 sm:$0xff]  }
 0x1ba   : > { %v5383_v59 = vpop.f32.mrb[73].mxu0 }
 0x1bb   : > { %v5385_v57 = vpop.f32.mrb[74].mxu0 }
 0x1bc   : > { %2926 = vmatpush1.bf16.msra.mxu1 %v4419_v30  ;;  %v5387_v45 = vpop.f32.mrb[75].mxu0  ;;  %v4478_v30 = vld [vmem:[%s5631_s3 + $0x3d4] ss:$8 sps:$4 sm:$0xff]  }
 0x1bd   : > { %2927 = vmatprep.subr.bf16.mxu1 %v4424_v63  ;;  %v4527_v63 = vld [vmem:[%s5633_s5 + $0x60] ss:$8 sps:$4 sm:$0xff]  }
 0x1c0   : > { %2928 = vmatpush1.bf16.msra.mxu1 %v4422_v31  ;;  %v4532_v31 = vld [vmem:[%s5633_s5 + $0x74] ss:$8 sps:$4 sm:$0xff]  }
 0x1c1   : > { %2929 = vmatprep.subr.bf16.mxu1 %v4427_v32  ;;  %v4476_v32 = vld [vmem:[%s5631_s3 + $0x3d0] ss:$8 sps:$4 sm:$0xff]  }
 0x1c4   : > { %2930 = vmatpush1.bf16.msra.mxu1 %v4425_v33  ;;  %v4481_v33 = vld [vmem:[%s5631_s3 + $0x3e4] ss:$8 sps:$4 sm:$0xff]  }
 0x1c5   : > { %2931 = vmatprep.subr.bf16.mxu1 %v4430_v34  ;;  %v4530_v34 = vld [vmem:[%s5633_s5 + $0x70] ss:$8 sps:$4 sm:$0xff]  }
 0x1c8   : > { %2932 = vmatpush1.bf16.msra.mxu1 %v4428_v35  ;;  %v4535_v35 = vld [vmem:[%s5633_s5 + $0x84] ss:$8 sps:$4 sm:$0xff]  }
 0x1c9   : > { %2933 = vmatprep.subr.bf16.mxu1 %v4433_v36  ;;  %v4479_v36 = vld [vmem:[%s5631_s3 + $0x3e0] ss:$8 sps:$4 sm:$0xff]  }
 0x1cc   : > { %2934 = vmatpush1.bf16.msra.mxu1 %v4431_v37  ;;  %v4484_v37 = vld [vmem:[%s5631_s3 + $0x3f4] ss:$8 sps:$4 sm:$0xff]  }
 0x1cd   : > { %2935 = vmatprep.subr.bf16.mxu1 %v4436_v23  ;;  %v4533_v23 = vld [vmem:[%s5633_s5 + $0x80] ss:$8 sps:$4 sm:$0xff]  }
 0x1d0   : > { %2936 = vmatpush1.bf16.msra.mxu1 %v4434_v25  ;;  %v4538_v25 = vld [vmem:[%s5633_s5 + $0x94] ss:$8 sps:$4 sm:$0xff]  }
 0x1d1   : > { %2958 = vmatprep.subr.bf16.mxu1 %v4439_v13  ;;  %v4487_v13 = vld [vmem:[%s5631_s3 + $0x404] ss:$8 sps:$4 sm:$0xff]  }
 0x1d3   : > { %3748 = vmatmul.mubr.msk.bf16.vlgmr.msra.gmra.mrb[32].mxu1 %vm5205_vm6, %v3747_v42  ;;  %v3762_v42 = vpack.c.bf16 %v5238_v56, %v4567_v60  ;;  %v4493_v56 = vld [vmem:[%s5631_s3 + $0x424] ss:$8 sps:$4 sm:$0xff]  }
 0x1d4   : > { %3751 = vmatprep.mubr.msk.bf16.mxu1 %vm5205_vm6, %v3750_v46  ;;  %2959 = vmatpush1.bf16.msra.mxu1 %v4437_v43  ;;  %v4485_v43 = vld [vmem:[%s5631_s3 + $0x400] ss:$8 sps:$4 sm:$0xff]   ;;  %v4488_v46 = vld [vmem:[%s5631_s3 + $0x410] ss:$8 sps:$4 sm:$0xff]  }
 0x1d5   : > { %2960 = vmatprep.subr.bf16.mxu1 %v4442_v44  ;;  %v4490_v44 = vld [vmem:[%s5631_s3 + $0x414] ss:$8 sps:$4 sm:$0xff]  }
 0x1d8   : > { %2961 = vmatpush1.bf16.msra.mxu1 %v4440_v47  ;;  %v4491_v47 = vld [vmem:[%s5631_s3 + $0x420] ss:$8 sps:$4 sm:$0xff]  }
 0x1d9   : > { %2962 = vmatprep.subr.bf16.mxu1 %v4445_v28  ;;  %v4494_v28 = vld [vmem:[%s5631_s3 + $0x430] ss:$8 sps:$4 sm:$0xff]  }
 0x1db   : > { %3754 = vmatmul.mubr.msk.bf16.gmra.mrb[36].mxu1 %vm5205_vm6, %v5215_v5  ;;  %v4458_v5 = vld [vmem:[%s5631_s3 + $0x370] ss:$8 sps:$4 sm:$0xff]  }
 0x1dc   : > { %2963 = vmatpush1.bf16.msra.mxu1 %v4443_v48  ;;  %3757 = vmatprep.mubr.msk.bf16.mxu1 %vm5205_vm6, %v5222_v7  ;;  %v4514_v7 = vld [vmem:[%s5633_s5 + $0x14] ss:$8 sps:$4 sm:$0xff]   ;;  %v4568_v48 = vmov 0  }
 0x1dd   : > { %2964 = vmatprep.subr.bf16.mxu1 %v4448_v49  ;;  %3298 = vmatprep.subr.bf16.mxu0 %v4514_v7  ;;  %v4499_v49 = vld [vmem:[%s5631_s3 + $0x444] ss:$8 sps:$4 sm:$0xff]  }
 0x1de   : > { %3299 = vmatpush1.bf16.msra.mxu0 %v4512_v39  ;;  %v4539_v39 = vld [vmem:[%s5633_s5 + $0xa0] ss:$8 sps:$4 sm:$0xff]  }
 0x1df   : > { %3300 = vmatprep.subr.bf16.mxu0 %v4517_v8  ;;  %v4550_v8 = vld [vmem:[%s5633_s5 + $0xd4] ss:$8 sps:$4 sm:$0xff]  }
 0x1e0   : > { %2965 = vmatpush1.bf16.msra.mxu1 %v4446_v50  ;;  %v4497_v50 = vld [vmem:[%s5631_s3 + $0x440] ss:$8 sps:$4 sm:$0xff]  }
 0x1e1   : > { %2966 = vmatprep.subr.bf16.mxu1 %v4451_v51  ;;  %v4502_v51 = vld [vmem:[%s5631_s3 + $0x454] ss:$8 sps:$4 sm:$0xff]  }
 0x1e2   : > { %3301 = vmatpush1.bf16.msra.mxu0 %v4515_v58  ;;  %v4551_v58 = vld [vmem:[%s5633_s5 + $0xe0] ss:$8 sps:$4 sm:$0xff]  }
 0x1e3   : > { %3302 = vmatprep.subr.bf16.mxu0 %v4520_v14  ;;  %v4554_v14 = vld [vmem:[%s5633_s5 + $0xf0] ss:$8 sps:$4 sm:$0xff]  }
 0x1e4   : > { %2967 = vmatpush1.bf16.msra.mxu1 %v4449_v52  ;;  %v4500_v52 = vld [vmem:[%s5631_s3 + $0x450] ss:$8 sps:$4 sm:$0xff]  }
 0x1e5   : > { %2968 = vmatprep.subr.bf16.mxu1 %v4454_v55  ;;  %v4505_v55 = vld [vmem:[%s5631_s3 + $0x464] ss:$8 sps:$4 sm:$0xff]  }
 0x1e6   : > { %3303 = vmatpush1.bf16.msra.mxu0 %v4518_v18 }
 0x1e7   : > { %3304 = vmatprep.subr.bf16.mxu0 %v4523_v19 }
 0x1e8   : > { %2969 = vmatpush1.bf16.msra.mxu1 %v4452_v61  ;;  %v4503_v61 = vld [vmem:[%s5631_s3 + $0x460] ss:$8 sps:$4 sm:$0xff]  }
 0x1e9   : > { %2970 = vmatprep.subr.bf16.mxu1 %v4457_v62  ;;  %v4508_v62 = vld [vmem:[%s5631_s3 + $0x474] ss:$8 sps:$4 sm:$0xff]  }
 0x1ea   : > { %3305 = vmatpush1.bf16.msra.mxu0 %v4521_v22 }
 0x1eb   : > { %3306 = vmatprep.subr.bf16.mxu0 %v4526_v24 }
 0x1ec   : > { %2971 = vmatpush1.bf16.msra.mxu1 %v4455_v0  ;;  %v4506_v0 = vld [vmem:[%s5631_s3 + $0x470] ss:$8 sps:$4 sm:$0xff]  }
 0x1ed   : > { %2972 = vmatprep.subr.bf16.mxu1 %v4460_v2  ;;  %v3768_v2 = vpack.c.bf16 %v4567_v60, %v5195_v54  ;;  %v4542_v54 = vld [vmem:[%s5633_s5 + $0xb0] ss:$8 sps:$4 sm:$0xff]   ;;  %v4547_v60 = vld [vmem:[%s5633_s5 + $0xc4] ss:$8 sps:$4 sm:$0xff]  }
 0x1ee   : > { %3307 = vmatpush1.bf16.msra.mxu0 %v4524_v27 }
 0x1ef   : > { %3308 = vmatprep.subr.bf16.mxu0 %v4529_v15 }
 0x1f0   : > { %2973 = vmatpush1.bf16.msra.mxu1 %v4458_v5 }
 0x1f1   : > { %2974 = vmatprep.subr.bf16.mxu1 %v4463_v9  ;;  %v4541_v9 = vld [vmem:[%s5633_s5 + $0xa4] ss:$8 sps:$4 sm:$0xff]  }
 0x1f2   : > { %3309 = vmatpush1.bf16.msra.mxu0 %v4527_v63 }
 0x1f3   : > { %3310 = vmatprep.subr.bf16.mxu0 %v4532_v31 }
 0x1f4   : > { %2975 = vmatpush1.bf16.msra.mxu1 %v4461_v1  ;;  %v4548_v1 = vld [vmem:[%s5633_s5 + $0xd0] ss:$8 sps:$4 sm:$0xff]  }
 0x1f5   : > { %2976 = vmatprep.subr.bf16.mxu1 %v4466_v12  ;;  %v4553_v12 = vld [vmem:[%s5633_s5 + $0xe4] ss:$8 sps:$4 sm:$0xff]  }
 0x1f6   : > { %3311 = vmatpush1.bf16.msra.mxu0 %v4530_v34 }
 0x1f7   : > { %3312 = vmatprep.subr.bf16.mxu0 %v4535_v35 }
 0x1f8   : > { %2977 = vmatpush1.bf16.msra.mxu1 %v4464_v16  ;;  %v4556_v16 = vld [vmem:[%s5633_s5 + $0xf4] ss:$8 sps:$4 sm:$0xff]  }
 0x1f9   : > { %2978 = vmatprep.subr.bf16.mxu1 %v4469_v17 }
 0x1fa   : > { %3313 = vmatpush1.bf16.msra.mxu0 %v4533_v23 }
 0x1fb   : > { %3314 = vmatprep.subr.bf16.mxu0 %v4538_v25 }
 0x1fc   : > { %2979 = vmatpush1.bf16.msra.mxu1 %v4467_v20  ;;  %v3072_v20 = vlaneseq }
 0x1fd   : > { %2980 = vmatprep.subr.bf16.mxu1 %v4472_v21 }
 0x1fe   : > { %3315 = vmatpush1.bf16.msra.mxu0 %v4536_v40  ;;  %v3073_v15 = vshrl.u32 %v3072_v20, 7  ;;  %vm3363_vm12 = vcmp.lt.s32.totalorder %v3072_v20, 256 }
 0x1ff   : > { %3316 = vmatprep.subr.bf16.mxu0 %v4541_v9 }
 0x200   : > { %2981 = vmatpush1.bf16.msra.mxu1 %v4470_v26 }
 0x201   : > { %2982 = vmatprep.subr.bf16.mxu1 %v4475_v10 }
 0x202   : > { %3317 = vmatpush1.bf16.msra.mxu0 %v4539_v39 }
 0x203   : > { %3318 = vmatprep.subr.bf16.mxu0 %v4544_v53 }
 0x204   : > { %2983 = vmatpush1.bf16.msra.mxu1 %v4473_v29 }
 0x205   : > { %2984 = vmatprep.subr.bf16.mxu1 %v4478_v30 }
 0x206   : > { %3319 = vmatpush1.bf16.msra.mxu0 %v4542_v54 }
 0x207   : > { %3320 = vmatprep.subr.bf16.mxu0 %v4547_v60 }
 0x208   : > { %2985 = vmatpush1.bf16.msra.mxu1 %v4476_v32  ;;  %v3074_v32 = vsub.s32 0, %v3073_v15 }
 0x209   : > { %2986 = vmatprep.subr.bf16.mxu1 %v4481_v33 }
 0x20a   : > { %3321 = vmatpush1.bf16.msra.mxu0 %v4545_v11 }
 0x20b   : > { %3322 = vmatprep.subr.bf16.mxu0 %v4550_v8 }
 0x20c   : > { %2987 = vmatpush1.bf16.msra.mxu1 %v4479_v36 }
 0x20d   : > { %2988 = vmatprep.subr.bf16.mxu1 %v4484_v37 }
 0x20e   : > { %3323 = vmatpush1.bf16.msra.mxu0 %v4548_v1 }
 0x20f   : > { %3324 = vmatprep.subr.bf16.mxu0 %v4553_v12 }
 0x210   : > { %2989 = vmatpush1.bf16.msra.mxu1 %v4482_v38 }
 0x211   : > { %3011 = vmatprep.subr.bf16.mxu1 %v4487_v13 }
 0x212   : > { %3325 = vmatpush1.bf16.msra.mxu0 %v4551_v58 }
 0x213   : > { %3760 = vmatmul.mubr.msk.bf16.vlgmr.msra.gmra.mrb[32].mxu1 %vm5190_vm5, %v5220_v6  ;;  %v4496_v6 = vld [vmem:[%s5631_s3 + $0x434] ss:$8 sps:$4 sm:$0xff]   ;;  %3326 = vmatprep.subr.bf16.mxu0 %v4556_v16 }
 0x214   : > { %3012 = vmatpush1.bf16.msra.mxu1 %v4485_v43  ;;  %3763 = vmatprep.mubr.msk.bf16.mxu1 %vm5190_vm5, %v3762_v42 }
 0x215   : > { %3013 = vmatprep.subr.bf16.mxu1 %v4490_v44 }
 0x216   : > { %3327 = vmatpush1.bf16.msra.mxu0 %v4554_v14 }
 0x218   : > { %3014 = vmatpush1.bf16.msra.mxu1 %v4488_v46 }
 0x219   : > { %3015 = vmatprep.subr.bf16.mxu1 %v4493_v56 }
 0x21b   : > { %3766 = vmatmul.mubr.msk.bf16.gmra.mrb[36].mxu1 %vm5190_vm5, %v3762_v42 }
 0x21c   : > { %3016 = vmatpush1.bf16.msra.mxu1 %v4491_v47  ;;  %3043 = vmatprep.mubr.bf16.mxu1 %v4568_v48 }
 0x21d   : > { %3017 = vmatprep.subr.bf16.mxu1 %v4496_v6 }
 0x220   : > { %3018 = vmatpush1.bf16.msra.mxu1 %v4494_v28  ;;  %v3124_v28 = vld [vmem:[%s5634_s6] sm:$0x3] }
 0x221   : > { %3019 = vmatprep.subr.bf16.mxu1 %v4499_v49  ;;  %v4569_v49 = vmov 1966171168  }
 0x224   : > { %3020 = vmatpush1.bf16.msra.mxu1 %v4497_v50  ;;  %v3347_v50 = vunpack.c.l.s4 %v4569_v49 }
 0x225   : > { %3021 = vmatprep.subr.bf16.mxu1 %v4502_v51 }
 0x228   : > { %3022 = vmatpush1.bf16.msra.mxu1 %v4500_v52 }
 0x229   : > { %3023 = vmatprep.subr.bf16.mxu1 %v4505_v55 }
 0x22c   : > { %3024 = vmatpush1.bf16.msra.mxu1 %v4503_v61 }
 0x22d   : > { %3025 = vmatprep.subr.bf16.mxu1 %v4508_v62  ;;  %v3348_v62 = vunpack.c.0.s8 %v3347_v50 }
 0x22f   : > { %v3351_v9 = vsub.s32 %v3348_v62, %v3073_v15 }
 0x230   : > { %3026 = vmatpush1.bf16.msra.mxu1 %v4506_v0 }
 0x233   : > { %3769 = vmatmul.mubr.msk.bf16.vlgmr.msra.gmra.mrb[32].mxu1 %vm5247_vm7, %v3768_v2 }
 0x234   : > { %3053 = vmatprep.mubr.bf16.mxu1 %v4568_v48  ;;  %v3129_v48 = vrot.slane %v3124_v28, %v3074_v32 }
 0x23b   : > { %3772 = vmatmul.mubr.msk.bf16.gmra.mrb[36].mxu1 %vm5190_vm5, %v3762_v42 }
 0x268   : > { %v2843_v3 = vpop.f32.mrb[76].mxu0 }
 0x269   : > { %v2845_v4 = vpop.f32.mrb[77].mxu0 }
 0x26a   : > { %v2847_v5 = vpop.f32.mrb[78].mxu0 }
 0x26b   : > { %v2849_v7 = vpop.f32.mrb[79].mxu0 }
 0x306   : > { %v3045_v17 = vpop.f32.mrb[32].mxu1 }
 0x307   : > { %v4071_v18 = vadd.f32 %v3045_v17, %v5378_v41  ;;  %v3047_v19 = vpop.f32.mrb[33].mxu1  ;;  %v3070_v41 = vld [vmem:[%s5632_s4] sm:$0x3] }
 0x308   : > { %v4072_v21 = vadd.f32 %v3047_v19, %v5383_v59  ;;  %v3049_v22 = vpop.f32.mrb[34].mxu1  ;;  %v3078_v59 = vsub.s32 1, %v3073_v15  ;;  %v3075_v23 = vrot.slane %v3070_v41, %v3074_v32 }
 0x309   : > { %v4073_v24 = vadd.f32 %v3049_v22, %v5385_v57  ;;  %v3051_v26 = vpop.f32.mrb[35].mxu1 }
 0x30a   : > { %v4074_v10 = vadd.f32 %v3051_v26, %v5387_v45  ;;  %v3079_v25 = vrot.slane %v3070_v41, %v3078_v59  ;;  %v3133_v51 = vrot.slane %v3124_v28, %v3078_v59 }
 0x30b   : > { %v3064_v27 = vmax.f32 %v4071_v18, %v4073_v24 }
 0x30c   : > { %v3065_v29 = vmax.f32 %v4072_v21, %v4074_v10 }
 0x30e   : > { %v3055_v30 = vpop.f32.mrb[36].mxu1 }
 0x30f   : > { %v4075_v63 = vadd.f32 %v3055_v30, %v2843_v3  ;;  %v3057_v31 = vpop.f32.mrb[37].mxu1 }
 0x310   : > { %v4076_v33 = vadd.f32 %v3057_v31, %v2845_v4  ;;  %v3059_v34 = vpop.f32.mrb[38].mxu1 }
 0x311   : > { %v4077_v35 = vadd.f32 %v3059_v34, %v2847_v5  ;;  %v3061_v36 = vpop.f32.mrb[39].mxu1 }
 0x312   : > { %v4078_v57 = vadd.f32 %v3061_v36, %v2849_v7 }
 0x313   : > { %v3066_v37 = vmax.f32 %v4075_v63, %v4077_v35 }
 0x314   : > { %v3067_v45 = vmax.f32 %v4076_v33, %v4078_v57 }
 0x315   : > { %v3068_v38 = vmax.f32 %v3064_v27, %v3066_v37 }
 0x316   : > { %v3069_v13 = vmax.f32 %v3065_v29, %v3067_v45 }
 0x317   : > { %v3082_v40 = vadd.f32 %v3075_v23, %v3068_v38 }
 0x318   : > { %v3083_v43 = vadd.f32 %v3079_v25, %v3069_v13 }
 0x319   : > { %vm3084_vm8 = vcmp.ge.f32.partialorder %v3082_v40, 0.0  ;;  %v3086_v42 = vmul.f32 0.01, %v3082_v40 }
 0x31a   : > { %vm3085_vm9 = vcmp.ge.f32.partialorder %v3083_v43, 0.0  ;;  %v3087_v44 = vmul.f32 0.01, %v3083_v43 }
 0x31b   : > { %v3088_v46 = vsel %vm3084_vm8, %v3082_v40, %v3086_v42 }
 0x31c   : > { %v3089_v56 = vsel %vm3085_vm9, %v3083_v43, %v3087_v44  ;;  %v3090_v6 = vpack.c.bf16 %v3088_v46, %v3088_v46 }
 0x31d   : > { %v3091_v47 = vpack.c.bf16 %v3089_v56, %v3089_v56 }
 0x31f   : > { %3328 = vmatprep.mubr.bf16.mxu0 %v3091_v47 }
 0x320   : > { %3329 = vmatmul.mubr.bf16.vlgmr.msra.gmra.mrb[80].mxu0 %v3090_v6 }
 0x3f3   : > { %v3330_v52 = vpop.f32.mrb[80].mxu0 }
 0x3f4   : > { %v3331_v55 = vadd.f32 %v3330_v52, %v3129_v48  ;;  %v3332_v61 = vpop.f32.mrb[81].mxu0 }
 0x3f5   : > { %v3333_v0 = vadd.f32 %v3332_v61, %v3133_v51  ;;  %v3334_v2 = vpop.f32.mrb[82].mxu0 }
 0x3f6   : > { %vm3337_vm10 = vcmp.ge.f32.partialorder %v3331_v55, 0.0  ;;  %v3339_v3 = vmul.f32 0.01, %v3331_v55  ;;  %v3335_v4 = vpop.f32.mrb[83].mxu0 }
 0x3f7   : > { %vm3338_vm11 = vcmp.ge.f32.partialorder %v3333_v0, 0.0  ;;  %v3340_v5 = vmul.f32 0.01, %v3333_v0 }
 0x3f8   : > { %v3341_v7 = vsel %vm3337_vm10, %v3331_v55, %v3339_v3 }
 0x3f9   : > { %v3342_v39 = vsel %vm3338_vm11, %v3333_v0, %v3340_v5 }
 0x3fa   : > { %v3345_v54 = vcombine.low %v3341_v7, %v3342_v39 }
 0x3fc   : > { %v3352_v53 = vrot.slane %v3345_v54, %v3351_v9 }
 0x3fe   : > { %v3359_v60 = vrot.slane %v3352_v53, %v3351_v9 }
 0x400   : > { %3365 = vst.msk [vmem:[%s276_s10] sm:$0x3] %vm3363_vm12, %v3359_v60 }
 0x401 PF: > { %s17_s24 = sadd.s32 1, %s4563_s24  }
 0x402   : > { %p14_p4 = scmp.ge.s32.totalorder %s17_s24, 4  }
 0x404   :  { %16 = sbr.rel (!%p14_p4) target bundleno = 1 (0x1), region = 78 }

</bundles_post_ra>
